<compile_context>
chip_gen: v7x
topology: tpu7x:2x2x1
jax: 0.10.0
libtpu: 0.0.40
codegen_flags: <defaults>
</compile_context>

<pallas_src>
import jax
import jax.numpy as jnp
from jax.experimental import pallas as pl
from jax.experimental.pallas import tpu as pltpu

D_MODEL = 32
N_HEAD = 4
DIM_FF = 64
NUM_LAYERS = 2
EPS = 1e-5  # nn.LayerNorm default


# ------------------------------ fused kernel --------------------------------

def _decoder_kernel(tgt_ref, mem_ref, pos_ref, qpos_ref,
                    wqkv_ref, bqkv_ref, wos_ref, bos_ref,
                    wqc_ref, bqc_ref, wkc_ref, bkc_ref, wvc_ref, bvc_ref,
                    woc_ref, boc_ref,
                    w1_ref, b1_ref, w2_ref, b2_ref,
                    lng_ref, lnb_ref,
                    o_ref):
    B, Lq, D = tgt_ref.shape
    Lk = mem_ref.shape[1]
    H = N_HEAD
    Dh = D // H
    f32 = jnp.float32
    N = B * Lq

    # ---- load everything once (stays in vregs/VMEM for the whole kernel) ----
    tgt2 = tgt_ref[...].astype(f32).reshape(N, D)
    qpos2 = qpos_ref[...].astype(f32).reshape(N, D)
    mem = mem_ref[...].astype(f32)
    pos = pos_ref[...].astype(f32)

    wqkv = wqkv_ref[...]          # (D, 3D)  [Q columns pre-scaled by 1/sqrt(Dh)]
    bqkv = bqkv_ref[...]          # (1, 3D)
    wos, bos = wos_ref[...], bos_ref[...]
    wqc, bqc = wqc_ref[...], bqc_ref[...]      # pre-scaled
    wkc, bkc = wkc_ref[...], bkc_ref[...]
    wvc, bvc = wvc_ref[...], bvc_ref[...]
    woc, boc = woc_ref[...], boc_ref[...]
    w1, b1 = w1_ref[...], b1_ref[...]
    w2, b2 = w2_ref[...], b2_ref[...]
    lng, lnb = lng_ref[...], lnb_ref[...]      # (3, D) packed LayerNorm params

    # Hoist all (1, X) -> (N, X) broadcasts out of the layer loop (JAX does not
    # CSE broadcast_in_dim).
    bcast = lambda v: jnp.broadcast_to(v, (N, v.shape[-1]))
    bos_b, boc_b = bcast(bos), bcast(boc)
    b1_b, b2_b = bcast(b1), bcast(b2)
    g1, g2, g3 = bcast(lng[0:1, :]), bcast(lng[1:2, :]), bcast(lng[2:3, :])
    e1, e2, e3 = bcast(lnb[0:1, :]), bcast(lnb[1:2, :]), bcast(lnb[2:3, :])

    def add_ln(x, y, g, b):
        s = x + y
        mu = jnp.mean(s, axis=-1, keepdims=True)
        var = jnp.mean(jnp.square(s - mu), axis=-1, keepdims=True)
        return (s - mu) * jax.lax.rsqrt(var + EPS) * g + b

    def mha(q2, k3, v3):
        # q2: (N, D) scaled queries; k3/v3: (B, Lkv, D) keys/values.
        q3 = q2.reshape(B, Lq, D)
        outs = []
        for h in range(H):                       # unrolled, all-batch per head
            sl = slice(h * Dh, (h + 1) * Dh)
            qh, kh, vh = q3[:, :, sl], k3[:, :, sl], v3[:, :, sl]
            s = jnp.einsum('bqd,bkd->bqk', qh, kh,
                           preferred_element_type=f32)       # (B, Lq, Lkv)
            m = jnp.max(s, axis=-1, keepdims=True)
            p = jnp.exp(s - m)
            p = p * pl.reciprocal(jnp.sum(p, axis=-1, keepdims=True), approx=True)
            oh = jnp.einsum('bqk,bkd->bqd', p, vh,
                            preferred_element_type=f32)      # (B, Lq, Dh)
            outs.append(oh.reshape(N, Dh))
        return jnp.concatenate(outs, axis=-1)                # (N, D) lane-dense

    # ---- loop-invariant precompute (params shared across layers) ----
    # Self-attn: q/k get the +query_pos contribution, v does not.
    qk_add = jnp.dot(qpos2, wqkv[:, :2 * D], preferred_element_type=f32)
    add_s = jnp.concatenate([qk_add, jnp.zeros((N, D), f32)], axis=-1) + bqkv
    # Cross-attn: query_pos projection of q; K/V depend only on memory/pos.
    qc_add = jnp.dot(qpos2, wqc, preferred_element_type=f32) + bqc
    memk2 = (mem + pos).reshape(B * Lk, D)
    mem2 = mem.reshape(B * Lk, D)
    kc3 = (jnp.dot(memk2, wkc, preferred_element_type=f32) + bkc).reshape(B, Lk, D)
    vc3 = (jnp.dot(mem2, wvc, preferred_element_type=f32) + bvc).reshape(B, Lk, D)

    # ---- layer loop (copy.deepcopy clones => identical params per layer) ----
    for _ in range(NUM_LAYERS):
        # self attention (one fused (N,32)@(32,96) projection)
        qkv = jnp.dot(tgt2, wqkv, preferred_element_type=f32) + add_s
        sa = mha(qkv[:, :D],
                 qkv[:, D:2 * D].reshape(B, Lq, D),
                 qkv[:, 2 * D:].reshape(B, Lq, D))
        sa = jnp.dot(sa, wos, preferred_element_type=f32) + bos_b
        tgt2 = add_ln(tgt2, sa, g1, e1)

        # cross attention (K/V precomputed, loop-invariant)
        qc = jnp.dot(tgt2, wqc, preferred_element_type=f32) + qc_add
        ca = mha(qc, kc3, vc3)
        ca = jnp.dot(ca, woc, preferred_element_type=f32) + boc_b
        tgt2 = add_ln(tgt2, ca, g2, e2)

        # feed-forward (kept in f32 throughout)
        hid = jnp.maximum(jnp.dot(tgt2, w1, preferred_element_type=f32) + b1_b, 0.0)
        ff = jnp.dot(hid, w2, preferred_element_type=f32) + b2_b
        tgt2 = add_ln(tgt2, ff, g3, e3)

    o_ref[...] = tgt2.reshape(B, Lq, D).astype(o_ref.dtype)


# ------------------------------ host wrapper ---------------------------------

def prepare_fused_params(p):
    """Fuse/scale raw per-matrix params into the kernel's layout."""
    D = D_MODEL
    scale = 1.0 / ((D // N_HEAD) ** 0.5)
    sa, ca = p["self_attn"], p["cross_attn"]
    return dict(
        wqkv=jnp.concatenate([sa["wq"] * scale, sa["wk"], sa["wv"]], axis=1),
        bqkv=jnp.concatenate([sa["bq"] * scale, sa["bk"], sa["bv"]]).reshape(1, 3 * D),
        wos=sa["wo"], bos=sa["bo"].reshape(1, D),
        wqc=ca["wq"] * scale, bqc=(ca["bq"] * scale).reshape(1, D),
        wkc=ca["wk"], bkc=ca["bk"].reshape(1, D),
        wvc=ca["wv"], bvc=ca["bv"].reshape(1, D),
        woc=ca["wo"], boc=ca["bo"].reshape(1, D),
        w1=p["w1"], b1=p["b1"].reshape(1, -1),
        w2=p["w2"], b2=p["b2"].reshape(1, -1),
        lng=jnp.stack([p["norm1_g"], p["norm2_g"], p["norm3_g"]]),
        lnb=jnp.stack([p["norm1_b"], p["norm2_b"], p["norm3_b"]]),
    )


@jax.jit
def transformer_decoder(tgt, memory, pos, query_pos, fused):
    B, Lq, D = tgt.shape
    args = (tgt, memory, pos, query_pos,
            fused["wqkv"], fused["bqkv"], fused["wos"], fused["bos"],
            fused["wqc"], fused["bqc"], fused["wkc"], fused["bkc"],
            fused["wvc"], fused["bvc"], fused["woc"], fused["boc"],
            fused["w1"], fused["b1"], fused["w2"], fused["b2"],
            fused["lng"], fused["lnb"])
    vmem = pl.BlockSpec(memory_space=pltpu.MemorySpace.VMEM)
    return pl.pallas_call(
        _decoder_kernel,
        out_shape=jax.ShapeDtypeStruct((B, Lq, D), tgt.dtype),
        in_specs=[vmem] * len(args),
        out_specs=vmem,
    )(*args)


# ------------------------------ params init ----------------------------------

def init_layer_params(key, d_model=D_MODEL, dim_ff=DIM_FF):
    keys = jax.random.split(key, 16)
    s = 0.02

    def attn_params(ks):
        return {
            "wq": s * jax.random.normal(ks[0], (d_model, d_model), jnp.float32),
            "bq": jnp.zeros((d_model,), jnp.float32),
            "wk": s * jax.random.normal(ks[1], (d_model, d_model), jnp.float32),
            "bk": jnp.zeros((d_model,), jnp.float32),
            "wv": s * jax.random.normal(ks[2], (d_model, d_model), jnp.float32),
            "bv": jnp.zeros((d_model,), jnp.float32),
            "wo": s * jax.random.normal(ks[3], (d_model, d_model), jnp.float32),
            "bo": jnp.zeros((d_model,), jnp.float32),
        }

    return {
        "self_attn": attn_params(keys[0:4]),
        "cross_attn": attn_params(keys[4:8]),
        "w1": s * jax.random.normal(keys[8], (d_model, dim_ff), jnp.float32),
        "b1": jnp.zeros((dim_ff,), jnp.float32),
        "w2": s * jax.random.normal(keys[9], (dim_ff, d_model), jnp.float32),
        "b2": jnp.zeros((d_model,), jnp.float32),
        "norm1_g": jnp.ones((d_model,), jnp.float32),
        "norm1_b": jnp.zeros((d_model,), jnp.float32),
        "norm2_g": jnp.ones((d_model,), jnp.float32),
        "norm2_b": jnp.zeros((d_model,), jnp.float32),
        "norm3_g": jnp.ones((d_model,), jnp.float32),
        "norm3_b": jnp.zeros((d_model,), jnp.float32),
    }


# --------------------------- pure-JAX reference -------------------------------

def _reference_forward(tgt, memory, pos, query_pos, p):
    def mha_ref(q_in, k_in, v_in, ap):
        B, Lq, D = q_in.shape
        Lk = k_in.shape[1]
        Dh = D // N_HEAD
        q = q_in @ ap["wq"] + ap["bq"]
        k = k_in @ ap["wk"] + ap["bk"]
        v = v_in @ ap["wv"] + ap["bv"]
        q = q.reshape(B, Lq, N_HEAD, Dh).transpose(0, 2, 1, 3)
        k = k.reshape(B, Lk, N_HEAD, Dh).transpose(0, 2, 1, 3)
        v = v.reshape(B, Lk, N_HEAD, Dh).transpose(0, 2, 1, 3)
        s = jnp.einsum('bhqd,bhkd->bhqk', q, k) / (Dh ** 0.5)
        a = jax.nn.softmax(s, axis=-1)
        o = jnp.einsum('bhqk,bhkd->bhqd', a, v)
        o = o.transpose(0, 2, 1, 3).reshape(B, Lq, D)
        return o @ ap["wo"] + ap["bo"]

    def ln(x, g, b):
        mu = jnp.mean(x, axis=-1, keepdims=True)
        var = jnp.mean((x - mu) ** 2, axis=-1, keepdims=True)
        return (x - mu) / jnp.sqrt(var + EPS) * g + b

    out = tgt
    for _ in range(NUM_LAYERS):
        qk = out + query_pos
        out = ln(out + mha_ref(qk, qk, out, p["self_attn"]),
                 p["norm1_g"], p["norm1_b"])
        out = ln(out + mha_ref(out + query_pos, memory + pos, memory,
                               p["cross_attn"]),
                 p["norm2_g"], p["norm2_b"])
        ff = jnp.maximum(out @ p["w1"] + p["b1"], 0.0) @ p["w2"] + p["b2"]
        out = ln(out + ff, p["norm3_g"], p["norm3_b"])
    return out


# --------------------------------- main ---------------------------------------

if __name__ == "__main__":
    key = jax.random.PRNGKey(0)
    k_tgt, k_mem, k_pos, k_qpos, k_par = jax.random.split(key, 5)

    B, Lq, Lmem, D = 2, 8, 16, D_MODEL
    tgt = jax.random.normal(k_tgt, (B, Lq, D), jnp.float32)
    memory = jax.random.normal(k_mem, (B, Lmem, D), jnp.float32)
    pos = jax.random.normal(k_pos, (B, Lmem, D), jnp.float32)
    query_pos = jax.random.normal(k_qpos, (B, Lq, D), jnp.float32)

    raw_params = init_layer_params(k_par)
    fused_params = prepare_fused_params(raw_params)

    out = transformer_decoder(tgt, memory, pos, query_pos, fused_params)
    out = jax.block_until_ready(out)

    assert out.shape == (B, Lq, D)
    assert jnp.all(jnp.isfinite(out))

    # Cross-check against a pure-JAX reference (loose tol: approx reciprocal).
    ref = _reference_forward(tgt, memory, pos, query_pos, raw_params)
    max_err = float(jnp.max(jnp.abs(out - ref)))
    assert max_err < 5e-2, f"mismatch vs reference: {max_err}"

    print("KERNEL_OK")
</pallas_src>

<mosaic_0001>
module attributes {stable_mosaic.version = 11 : i64} {
  func.func @_decoder_kernel(%arg0: memref<2x8x32xf32, #tpu.memory_space<vmem>>, %arg1: memref<2x16x32xf32, #tpu.memory_space<vmem>>, %arg2: memref<2x16x32xf32, #tpu.memory_space<vmem>>, %arg3: memref<2x8x32xf32, #tpu.memory_space<vmem>>, %arg4: memref<32x96xf32, #tpu.memory_space<vmem>>, %arg5: memref<1x96xf32, #tpu.memory_space<vmem>>, %arg6: memref<32x32xf32, #tpu.memory_space<vmem>>, %arg7: memref<1x32xf32, #tpu.memory_space<vmem>>, %arg8: memref<32x32xf32, #tpu.memory_space<vmem>>, %arg9: memref<1x32xf32, #tpu.memory_space<vmem>>, %arg10: memref<32x32xf32, #tpu.memory_space<vmem>>, %arg11: memref<1x32xf32, #tpu.memory_space<vmem>>, %arg12: memref<32x32xf32, #tpu.memory_space<vmem>>, %arg13: memref<1x32xf32, #tpu.memory_space<vmem>>, %arg14: memref<32x32xf32, #tpu.memory_space<vmem>>, %arg15: memref<1x32xf32, #tpu.memory_space<vmem>>, %arg16: memref<32x64xf32, #tpu.memory_space<vmem>>, %arg17: memref<1x64xf32, #tpu.memory_space<vmem>>, %arg18: memref<64x32xf32, #tpu.memory_space<vmem>>, %arg19: memref<1x32xf32, #tpu.memory_space<vmem>>, %arg20: memref<3x32xf32, #tpu.memory_space<vmem>>, %arg21: memref<3x32xf32, #tpu.memory_space<vmem>>, %arg22: memref<2x8x32xf32, #tpu.memory_space<vmem>>) attributes {dimension_semantics = [], scalar_prefetch = 0 : i64, scratch_operands = 0 : i64, tpu.core_type = #tpu.core_type<tc>} {
    %c0 = arith.constant 0 : index
    %c0_0 = arith.constant 0 : index
    %c0_1 = arith.constant 0 : index
    %0 = vector.load %arg0[%c0, %c0_0, %c0_1] : memref<2x8x32xf32, #tpu.memory_space<vmem>>, vector<2x8x32xf32>
    %1 = vector.shape_cast %0 : vector<2x8x32xf32> to vector<16x32xf32>
    %c0_2 = arith.constant 0 : index
    %c0_3 = arith.constant 0 : index
    %c0_4 = arith.constant 0 : index
    %2 = vector.load %arg3[%c0_2, %c0_3, %c0_4] : memref<2x8x32xf32, #tpu.memory_space<vmem>>, vector<2x8x32xf32>
    %3 = vector.shape_cast %2 : vector<2x8x32xf32> to vector<16x32xf32>
    %c0_5 = arith.constant 0 : index
    %c0_6 = arith.constant 0 : index
    %c0_7 = arith.constant 0 : index
    %4 = vector.load %arg1[%c0_5, %c0_6, %c0_7] : memref<2x16x32xf32, #tpu.memory_space<vmem>>, vector<2x16x32xf32>
    %c0_8 = arith.constant 0 : index
    %c0_9 = arith.constant 0 : index
    %c0_10 = arith.constant 0 : index
    %5 = vector.load %arg2[%c0_8, %c0_9, %c0_10] : memref<2x16x32xf32, #tpu.memory_space<vmem>>, vector<2x16x32xf32>
    %c0_11 = arith.constant 0 : index
    %c0_12 = arith.constant 0 : index
    %6 = vector.load %arg4[%c0_11, %c0_12] : memref<32x96xf32, #tpu.memory_space<vmem>>, vector<32x96xf32>
    %c0_13 = arith.constant 0 : index
    %c0_14 = arith.constant 0 : index
    %7 = vector.load %arg5[%c0_13, %c0_14] : memref<1x96xf32, #tpu.memory_space<vmem>>, vector<1x96xf32>
    %c0_15 = arith.constant 0 : index
    %c0_16 = arith.constant 0 : index
    %8 = vector.load %arg6[%c0_15, %c0_16] : memref<32x32xf32, #tpu.memory_space<vmem>>, vector<32x32xf32>
    %c0_17 = arith.constant 0 : index
    %c0_18 = arith.constant 0 : index
    %9 = vector.load %arg7[%c0_17, %c0_18] : memref<1x32xf32, #tpu.memory_space<vmem>>, vector<1x32xf32>
    %c0_19 = arith.constant 0 : index
    %c0_20 = arith.constant 0 : index
    %10 = vector.load %arg8[%c0_19, %c0_20] : memref<32x32xf32, #tpu.memory_space<vmem>>, vector<32x32xf32>
    %c0_21 = arith.constant 0 : index
    %c0_22 = arith.constant 0 : index
    %11 = vector.load %arg9[%c0_21, %c0_22] : memref<1x32xf32, #tpu.memory_space<vmem>>, vector<1x32xf32>
    %c0_23 = arith.constant 0 : index
    %c0_24 = arith.constant 0 : index
    %12 = vector.load %arg10[%c0_23, %c0_24] : memref<32x32xf32, #tpu.memory_space<vmem>>, vector<32x32xf32>
    %c0_25 = arith.constant 0 : index
    %c0_26 = arith.constant 0 : index
    %13 = vector.load %arg11[%c0_25, %c0_26] : memref<1x32xf32, #tpu.memory_space<vmem>>, vector<1x32xf32>
    %c0_27 = arith.constant 0 : index
    %c0_28 = arith.constant 0 : index
    %14 = vector.load %arg12[%c0_27, %c0_28] : memref<32x32xf32, #tpu.memory_space<vmem>>, vector<32x32xf32>
    %c0_29 = arith.constant 0 : index
    %c0_30 = arith.constant 0 : index
    %15 = vector.load %arg13[%c0_29, %c0_30] : memref<1x32xf32, #tpu.memory_space<vmem>>, vector<1x32xf32>
    %c0_31 = arith.constant 0 : index
    %c0_32 = arith.constant 0 : index
    %16 = vector.load %arg14[%c0_31, %c0_32] : memref<32x32xf32, #tpu.memory_space<vmem>>, vector<32x32xf32>
    %c0_33 = arith.constant 0 : index
    %c0_34 = arith.constant 0 : index
    %17 = vector.load %arg15[%c0_33, %c0_34] : memref<1x32xf32, #tpu.memory_space<vmem>>, vector<1x32xf32>
    %c0_35 = arith.constant 0 : index
    %c0_36 = arith.constant 0 : index
    %18 = vector.load %arg16[%c0_35, %c0_36] : memref<32x64xf32, #tpu.memory_space<vmem>>, vector<32x64xf32>
    %c0_37 = arith.constant 0 : index
    %c0_38 = arith.constant 0 : index
    %19 = vector.load %arg17[%c0_37, %c0_38] : memref<1x64xf32, #tpu.memory_space<vmem>>, vector<1x64xf32>
    %c0_39 = arith.constant 0 : index
    %c0_40 = arith.constant 0 : index
    %20 = vector.load %arg18[%c0_39, %c0_40] : memref<64x32xf32, #tpu.memory_space<vmem>>, vector<64x32xf32>
    %c0_41 = arith.constant 0 : index
    %c0_42 = arith.constant 0 : index
    %21 = vector.load %arg19[%c0_41, %c0_42] : memref<1x32xf32, #tpu.memory_space<vmem>>, vector<1x32xf32>
    %c0_43 = arith.constant 0 : index
    %c0_44 = arith.constant 0 : index
    %22 = vector.load %arg20[%c0_43, %c0_44] : memref<3x32xf32, #tpu.memory_space<vmem>>, vector<3x32xf32>
    %c0_45 = arith.constant 0 : index
    %c0_46 = arith.constant 0 : index
    %23 = vector.load %arg21[%c0_45, %c0_46] : memref<3x32xf32, #tpu.memory_space<vmem>>, vector<3x32xf32>
    %24 = vector.shape_cast %9 : vector<1x32xf32> to vector<1x32xf32>
    %25 = vector.broadcast %24 : vector<1x32xf32> to vector<16x32xf32>
    %26 = vector.shape_cast %17 : vector<1x32xf32> to vector<1x32xf32>
    %27 = vector.broadcast %26 : vector<1x32xf32> to vector<16x32xf32>
    %28 = vector.shape_cast %19 : vector<1x64xf32> to vector<1x64xf32>
    %29 = vector.broadcast %28 : vector<1x64xf32> to vector<16x64xf32>
    %30 = vector.shape_cast %21 : vector<1x32xf32> to vector<1x32xf32>
    %31 = vector.broadcast %30 : vector<1x32xf32> to vector<16x32xf32>
    %32 = vector.extract_strided_slice %22 {offsets = [0, 0], sizes = [1, 32], strides = [1, 1]} : vector<3x32xf32> to vector<1x32xf32>
    %33 = vector.shape_cast %32 : vector<1x32xf32> to vector<1x32xf32>
    %34 = vector.broadcast %33 : vector<1x32xf32> to vector<16x32xf32>
    %35 = vector.extract_strided_slice %22 {offsets = [1, 0], sizes = [1, 32], strides = [1, 1]} : vector<3x32xf32> to vector<1x32xf32>
    %36 = vector.shape_cast %35 : vector<1x32xf32> to vector<1x32xf32>
    %37 = vector.broadcast %36 : vector<1x32xf32> to vector<16x32xf32>
    %38 = vector.extract_strided_slice %22 {offsets = [2, 0], sizes = [1, 32], strides = [1, 1]} : vector<3x32xf32> to vector<1x32xf32>
    %39 = vector.shape_cast %38 : vector<1x32xf32> to vector<1x32xf32>
    %40 = vector.broadcast %39 : vector<1x32xf32> to vector<16x32xf32>
    %41 = vector.extract_strided_slice %23 {offsets = [0, 0], sizes = [1, 32], strides = [1, 1]} : vector<3x32xf32> to vector<1x32xf32>
    %42 = vector.shape_cast %41 : vector<1x32xf32> to vector<1x32xf32>
    %43 = vector.broadcast %42 : vector<1x32xf32> to vector<16x32xf32>
    %44 = vector.extract_strided_slice %23 {offsets = [1, 0], sizes = [1, 32], strides = [1, 1]} : vector<3x32xf32> to vector<1x32xf32>
    %45 = vector.shape_cast %44 : vector<1x32xf32> to vector<1x32xf32>
    %46 = vector.broadcast %45 : vector<1x32xf32> to vector<16x32xf32>
    %47 = vector.extract_strided_slice %23 {offsets = [2, 0], sizes = [1, 32], strides = [1, 1]} : vector<3x32xf32> to vector<1x32xf32>
    %48 = vector.shape_cast %47 : vector<1x32xf32> to vector<1x32xf32>
    %49 = vector.broadcast %48 : vector<1x32xf32> to vector<16x32xf32>
    %50 = vector.extract_strided_slice %6 {offsets = [0, 0], sizes = [32, 64], strides = [1, 1]} : vector<32x96xf32> to vector<32x64xf32>
    %cst = arith.constant dense<0.000000e+00> : vector<16x64xf32>
    %51 = tpu.matmul %3, %50, %cst {dimension_numbers = #tpu.dot_dimension_numbers<[1], [0], [0], [1], [0, 0, 1, 1], [], []>} : vector<16x32xf32>, vector<32x64xf32>, vector<16x64xf32> -> vector<16x64xf32>
    %cst_47 = arith.constant 0.000000e+00 : f32
    %52 = vector.broadcast %cst_47 : f32 to vector<16x32xf32>
    %53 = tpu.concatenate %51, %52 in 1 : vector<16x64xf32>, vector<16x32xf32> -> vector<16x96xf32>
    %54 = vector.broadcast %7 : vector<1x96xf32> to vector<16x96xf32>
    %55 = arith.addf %53, %54 : vector<16x96xf32>
    %cst_48 = arith.constant dense<0.000000e+00> : vector<16x32xf32>
    %56 = tpu.matmul %3, %10, %cst_48 {dimension_numbers = #tpu.dot_dimension_numbers<[1], [0], [0], [1], [0, 0, 1, 1], [], []>} : vector<16x32xf32>, vector<32x32xf32>, vector<16x32xf32> -> vector<16x32xf32>
    %57 = vector.broadcast %11 : vector<1x32xf32> to vector<16x32xf32>
    %58 = arith.addf %56, %57 : vector<16x32xf32>
    %59 = arith.addf %4, %5 : vector<2x16x32xf32>
    %60 = vector.shape_cast %59 : vector<2x16x32xf32> to vector<32x32xf32>
    %61 = vector.shape_cast %4 : vector<2x16x32xf32> to vector<32x32xf32>
    %cst_49 = arith.constant dense<0.000000e+00> : vector<32x32xf32>
    %62 = tpu.matmul %60, %12, %cst_49 {dimension_numbers = #tpu.dot_dimension_numbers<[1], [0], [0], [1], [0, 0, 1, 1], [], []>} : vector<32x32xf32>, vector<32x32xf32>, vector<32x32xf32> -> vector<32x32xf32>
    %63 = vector.broadcast %13 : vector<1x32xf32> to vector<32x32xf32>
    %64 = arith.addf %62, %63 : vector<32x32xf32>
    %65 = vector.shape_cast %64 : vector<32x32xf32> to vector<2x16x32xf32>
    %cst_50 = arith.constant dense<0.000000e+00> : vector<32x32xf32>
    %66 = tpu.matmul %61, %14, %cst_50 {dimension_numbers = #tpu.dot_dimension_numbers<[1], [0], [0], [1], [0, 0, 1, 1], [], []>} : vector<32x32xf32>, vector<32x32xf32>, vector<32x32xf32> -> vector<32x32xf32>
    %67 = vector.broadcast %15 : vector<1x32xf32> to vector<32x32xf32>
    %68 = arith.addf %66, %67 : vector<32x32xf32>
    %69 = vector.shape_cast %68 : vector<32x32xf32> to vector<2x16x32xf32>
    %cst_51 = arith.constant dense<0.000000e+00> : vector<16x96xf32>
    %70 = tpu.matmul %1, %6, %cst_51 {dimension_numbers = #tpu.dot_dimension_numbers<[1], [0], [0], [1], [0, 0, 1, 1], [], []>} : vector<16x32xf32>, vector<32x96xf32>, vector<16x96xf32> -> vector<16x96xf32>
    %71 = arith.addf %70, %55 : vector<16x96xf32>
    %72 = vector.extract_strided_slice %71 {offsets = [0, 0], sizes = [16, 32], strides = [1, 1]} : vector<16x96xf32> to vector<16x32xf32>
    %73 = vector.extract_strided_slice %71 {offsets = [0, 32], sizes = [16, 32], strides = [1, 1]} : vector<16x96xf32> to vector<16x32xf32>
    %74 = vector.shape_cast %73 : vector<16x32xf32> to vector<2x8x32xf32>
    %75 = vector.extract_strided_slice %71 {offsets = [0, 64], sizes = [16, 32], strides = [1, 1]} : vector<16x96xf32> to vector<16x32xf32>
    %76 = vector.shape_cast %75 : vector<16x32xf32> to vector<2x8x32xf32>
    %77 = vector.shape_cast %72 : vector<16x32xf32> to vector<2x8x32xf32>
    %78 = vector.extract_strided_slice %77 {offsets = [0, 0, 0], sizes = [2, 8, 8], strides = [1, 1, 1]} : vector<2x8x32xf32> to vector<2x8x8xf32>
    %79 = vector.extract_strided_slice %74 {offsets = [0, 0, 0], sizes = [2, 8, 8], strides = [1, 1, 1]} : vector<2x8x32xf32> to vector<2x8x8xf32>
    %80 = vector.extract_strided_slice %76 {offsets = [0, 0, 0], sizes = [2, 8, 8], strides = [1, 1, 1]} : vector<2x8x32xf32> to vector<2x8x8xf32>
    "tpu.trace_start"() <{level = 10 : i32, message = "bqd,bkd->bqk"}> : () -> ()
    %cst_52 = arith.constant dense<0.000000e+00> : vector<2x8x8xf32>
    %81 = tpu.matmul %78, %79, %cst_52 {dimension_numbers = #tpu.dot_dimension_numbers<[2], [2], [1], [1], [0, 0, 0, 1, 1, 1], [0], [0]>} : vector<2x8x8xf32>, vector<2x8x8xf32>, vector<2x8x8xf32> -> vector<2x8x8xf32>
    "tpu.trace_stop"() : () -> ()
    %cst_53 = arith.constant dense<0xFF800000> : vector<2x8xf32>
    %82 = vector.multi_reduction <maximumf>, %81, %cst_53 [2] : vector<2x8x8xf32> to vector<2x8xf32>
    %83 = vector.shape_cast %82 : vector<2x8xf32> to vector<2x8x1xf32>
    %84 = vector.broadcast %83 : vector<2x8x1xf32> to vector<2x8x8xf32>
    %85 = arith.subf %81, %84 : vector<2x8x8xf32>
    %86 = math.exp %85 : vector<2x8x8xf32>
    %cst_54 = arith.constant dense<0.000000e+00> : vector<2x8xf32>
    %87 = vector.multi_reduction <add>, %86, %cst_54 [2] : vector<2x8x8xf32> to vector<2x8xf32>
    %88 = vector.shape_cast %87 : vector<2x8xf32> to vector<2x8x1xf32>
    %89 = tpu.reciprocal %88 {approx = true} : vector<2x8x1xf32> -> vector<2x8x1xf32>
    %90 = vector.broadcast %89 : vector<2x8x1xf32> to vector<2x8x8xf32>
    %91 = arith.mulf %86, %90 : vector<2x8x8xf32>
    "tpu.trace_start"() <{level = 10 : i32, message = "bqk,bkd->bqd"}> : () -> ()
    %cst_55 = arith.constant dense<0.000000e+00> : vector<2x8x8xf32>
    %92 = tpu.matmul %91, %80, %cst_55 {dimension_numbers = #tpu.dot_dimension_numbers<[2], [1], [1], [2], [0, 0, 0, 1, 1, 2], [0], [0]>} : vector<2x8x8xf32>, vector<2x8x8xf32>, vector<2x8x8xf32> -> vector<2x8x8xf32>
    "tpu.trace_stop"() : () -> ()
    %93 = vector.shape_cast %92 : vector<2x8x8xf32> to vector<16x8xf32>
    %94 = vector.extract_strided_slice %77 {offsets = [0, 0, 8], sizes = [2, 8, 8], strides = [1, 1, 1]} : vector<2x8x32xf32> to vector<2x8x8xf32>
    %95 = vector.extract_strided_slice %74 {offsets = [0, 0, 8], sizes = [2, 8, 8], strides = [1, 1, 1]} : vector<2x8x32xf32> to vector<2x8x8xf32>
    %96 = vector.extract_strided_slice %76 {offsets = [0, 0, 8], sizes = [2, 8, 8], strides = [1, 1, 1]} : vector<2x8x32xf32> to vector<2x8x8xf32>
    "tpu.trace_start"() <{level = 10 : i32, message = "bqd,bkd->bqk"}> : () -> ()
    %cst_56 = arith.constant dense<0.000000e+00> : vector<2x8x8xf32>
    %97 = tpu.matmul %94, %95, %cst_56 {dimension_numbers = #tpu.dot_dimension_numbers<[2], [2], [1], [1], [0, 0, 0, 1, 1, 1], [0], [0]>} : vector<2x8x8xf32>, vector<2x8x8xf32>, vector<2x8x8xf32> -> vector<2x8x8xf32>
    "tpu.trace_stop"() : () -> ()
    %cst_57 = arith.constant dense<0xFF800000> : vector<2x8xf32>
    %98 = vector.multi_reduction <maximumf>, %97, %cst_57 [2] : vector<2x8x8xf32> to vector<2x8xf32>
    %99 = vector.shape_cast %98 : vector<2x8xf32> to vector<2x8x1xf32>
    %100 = vector.broadcast %99 : vector<2x8x1xf32> to vector<2x8x8xf32>
    %101 = arith.subf %97, %100 : vector<2x8x8xf32>
    %102 = math.exp %101 : vector<2x8x8xf32>
    %cst_58 = arith.constant dense<0.000000e+00> : vector<2x8xf32>
    %103 = vector.multi_reduction <add>, %102, %cst_58 [2] : vector<2x8x8xf32> to vector<2x8xf32>
    %104 = vector.shape_cast %103 : vector<2x8xf32> to vector<2x8x1xf32>
    %105 = tpu.reciprocal %104 {approx = true} : vector<2x8x1xf32> -> vector<2x8x1xf32>
    %106 = vector.broadcast %105 : vector<2x8x1xf32> to vector<2x8x8xf32>
    %107 = arith.mulf %102, %106 : vector<2x8x8xf32>
    "tpu.trace_start"() <{level = 10 : i32, message = "bqk,bkd->bqd"}> : () -> ()
    %cst_59 = arith.constant dense<0.000000e+00> : vector<2x8x8xf32>
    %108 = tpu.matmul %107, %96, %cst_59 {dimension_numbers = #tpu.dot_dimension_numbers<[2], [1], [1], [2], [0, 0, 0, 1, 1, 2], [0], [0]>} : vector<2x8x8xf32>, vector<2x8x8xf32>, vector<2x8x8xf32> -> vector<2x8x8xf32>
    "tpu.trace_stop"() : () -> ()
    %109 = vector.shape_cast %108 : vector<2x8x8xf32> to vector<16x8xf32>
    %110 = vector.extract_strided_slice %77 {offsets = [0, 0, 16], sizes = [2, 8, 8], strides = [1, 1, 1]} : vector<2x8x32xf32> to vector<2x8x8xf32>
    %111 = vector.extract_strided_slice %74 {offsets = [0, 0, 16], sizes = [2, 8, 8], strides = [1, 1, 1]} : vector<2x8x32xf32> to vector<2x8x8xf32>
    %112 = vector.extract_strided_slice %76 {offsets = [0, 0, 16], sizes = [2, 8, 8], strides = [1, 1, 1]} : vector<2x8x32xf32> to vector<2x8x8xf32>
    "tpu.trace_start"() <{level = 10 : i32, message = "bqd,bkd->bqk"}> : () -> ()
    %cst_60 = arith.constant dense<0.000000e+00> : vector<2x8x8xf32>
    %113 = tpu.matmul %110, %111, %cst_60 {dimension_numbers = #tpu.dot_dimension_numbers<[2], [2], [1], [1], [0, 0, 0, 1, 1, 1], [0], [0]>} : vector<2x8x8xf32>, vector<2x8x8xf32>, vector<2x8x8xf32> -> vector<2x8x8xf32>
    "tpu.trace_stop"() : () -> ()
    %cst_61 = arith.constant dense<0xFF800000> : vector<2x8xf32>
    %114 = vector.multi_reduction <maximumf>, %113, %cst_61 [2] : vector<2x8x8xf32> to vector<2x8xf32>
    %115 = vector.shape_cast %114 : vector<2x8xf32> to vector<2x8x1xf32>
    %116 = vector.broadcast %115 : vector<2x8x1xf32> to vector<2x8x8xf32>
    %117 = arith.subf %113, %116 : vector<2x8x8xf32>
    %118 = math.exp %117 : vector<2x8x8xf32>
    %cst_62 = arith.constant dense<0.000000e+00> : vector<2x8xf32>
    %119 = vector.multi_reduction <add>, %118, %cst_62 [2] : vector<2x8x8xf32> to vector<2x8xf32>
    %120 = vector.shape_cast %119 : vector<2x8xf32> to vector<2x8x1xf32>
    %121 = tpu.reciprocal %120 {approx = true} : vector<2x8x1xf32> -> vector<2x8x1xf32>
    %122 = vector.broadcast %121 : vector<2x8x1xf32> to vector<2x8x8xf32>
    %123 = arith.mulf %118, %122 : vector<2x8x8xf32>
    "tpu.trace_start"() <{level = 10 : i32, message = "bqk,bkd->bqd"}> : () -> ()
    %cst_63 = arith.constant dense<0.000000e+00> : vector<2x8x8xf32>
    %124 = tpu.matmul %123, %112, %cst_63 {dimension_numbers = #tpu.dot_dimension_numbers<[2], [1], [1], [2], [0, 0, 0, 1, 1, 2], [0], [0]>} : vector<2x8x8xf32>, vector<2x8x8xf32>, vector<2x8x8xf32> -> vector<2x8x8xf32>
    "tpu.trace_stop"() : () -> ()
    %125 = vector.shape_cast %124 : vector<2x8x8xf32> to vector<16x8xf32>
    %126 = vector.extract_strided_slice %77 {offsets = [0, 0, 24], sizes = [2, 8, 8], strides = [1, 1, 1]} : vector<2x8x32xf32> to vector<2x8x8xf32>
    %127 = vector.extract_strided_slice %74 {offsets = [0, 0, 24], sizes = [2, 8, 8], strides = [1, 1, 1]} : vector<2x8x32xf32> to vector<2x8x8xf32>
    %128 = vector.extract_strided_slice %76 {offsets = [0, 0, 24], sizes = [2, 8, 8], strides = [1, 1, 1]} : vector<2x8x32xf32> to vector<2x8x8xf32>
    "tpu.trace_start"() <{level = 10 : i32, message = "bqd,bkd->bqk"}> : () -> ()
    %cst_64 = arith.constant dense<0.000000e+00> : vector<2x8x8xf32>
    %129 = tpu.matmul %126, %127, %cst_64 {dimension_numbers = #tpu.dot_dimension_numbers<[2], [2], [1], [1], [0, 0, 0, 1, 1, 1], [0], [0]>} : vector<2x8x8xf32>, vector<2x8x8xf32>, vector<2x8x8xf32> -> vector<2x8x8xf32>
    "tpu.trace_stop"() : () -> ()
    %cst_65 = arith.constant dense<0xFF800000> : vector<2x8xf32>
    %130 = vector.multi_reduction <maximumf>, %129, %cst_65 [2] : vector<2x8x8xf32> to vector<2x8xf32>
    %131 = vector.shape_cast %130 : vector<2x8xf32> to vector<2x8x1xf32>
    %132 = vector.broadcast %131 : vector<2x8x1xf32> to vector<2x8x8xf32>
    %133 = arith.subf %129, %132 : vector<2x8x8xf32>
    %134 = math.exp %133 : vector<2x8x8xf32>
    %cst_66 = arith.constant dense<0.000000e+00> : vector<2x8xf32>
    %135 = vector.multi_reduction <add>, %134, %cst_66 [2] : vector<2x8x8xf32> to vector<2x8xf32>
    %136 = vector.shape_cast %135 : vector<2x8xf32> to vector<2x8x1xf32>
    %137 = tpu.reciprocal %136 {approx = true} : vector<2x8x1xf32> -> vector<2x8x1xf32>
    %138 = vector.broadcast %137 : vector<2x8x1xf32> to vector<2x8x8xf32>
    %139 = arith.mulf %134, %138 : vector<2x8x8xf32>
    "tpu.trace_start"() <{level = 10 : i32, message = "bqk,bkd->bqd"}> : () -> ()
    %cst_67 = arith.constant dense<0.000000e+00> : vector<2x8x8xf32>
    %140 = tpu.matmul %139, %128, %cst_67 {dimension_numbers = #tpu.dot_dimension_numbers<[2], [1], [1], [2], [0, 0, 0, 1, 1, 2], [0], [0]>} : vector<2x8x8xf32>, vector<2x8x8xf32>, vector<2x8x8xf32> -> vector<2x8x8xf32>
    "tpu.trace_stop"() : () -> ()
    %141 = vector.shape_cast %140 : vector<2x8x8xf32> to vector<16x8xf32>
    %142 = tpu.concatenate %93, %109, %125, %141 in 1 : vector<16x8xf32>, vector<16x8xf32>, vector<16x8xf32>, vector<16x8xf32> -> vector<16x32xf32>
    %cst_68 = arith.constant dense<0.000000e+00> : vector<16x32xf32>
    %143 = tpu.matmul %142, %8, %cst_68 {dimension_numbers = #tpu.dot_dimension_numbers<[1], [0], [0], [1], [0, 0, 1, 1], [], []>} : vector<16x32xf32>, vector<32x32xf32>, vector<16x32xf32> -> vector<16x32xf32>
    %144 = arith.addf %143, %25 : vector<16x32xf32>
    %145 = arith.addf %1, %144 : vector<16x32xf32>
    %cst_69 = arith.constant dense<0.000000e+00> : vector<16xf32>
    %146 = vector.multi_reduction <add>, %145, %cst_69 [1] : vector<16x32xf32> to vector<16xf32>
    %147 = vector.shape_cast %146 : vector<16xf32> to vector<16x1xf32>
    %cst_70 = arith.constant 3.200000e+01 : f32
    %148 = vector.broadcast %cst_70 : f32 to vector<16x1xf32>
    %149 = arith.divf %147, %148 : vector<16x1xf32>
    %150 = vector.broadcast %149 : vector<16x1xf32> to vector<16x32xf32>
    %151 = arith.subf %145, %150 : vector<16x32xf32>
    %152 = arith.mulf %151, %151 : vector<16x32xf32>
    %cst_71 = arith.constant dense<0.000000e+00> : vector<16xf32>
    %153 = vector.multi_reduction <add>, %152, %cst_71 [1] : vector<16x32xf32> to vector<16xf32>
    %154 = vector.shape_cast %153 : vector<16xf32> to vector<16x1xf32>
    %cst_72 = arith.constant 3.200000e+01 : f32
    %155 = vector.broadcast %cst_72 : f32 to vector<16x1xf32>
    %156 = arith.divf %154, %155 : vector<16x1xf32>
    %157 = vector.broadcast %149 : vector<16x1xf32> to vector<16x32xf32>
    %158 = arith.subf %145, %157 : vector<16x32xf32>
    %cst_73 = arith.constant 9.99999974E-6 : f32
    %159 = vector.broadcast %cst_73 : f32 to vector<16x1xf32>
    %160 = arith.addf %156, %159 : vector<16x1xf32>
    %161 = math.rsqrt %160 : vector<16x1xf32>
    %162 = vector.broadcast %161 : vector<16x1xf32> to vector<16x32xf32>
    %163 = arith.mulf %158, %162 : vector<16x32xf32>
    %164 = arith.mulf %163, %34 : vector<16x32xf32>
    %165 = arith.addf %164, %43 : vector<16x32xf32>
    %cst_74 = arith.constant dense<0.000000e+00> : vector<16x32xf32>
    %166 = tpu.matmul %165, %10, %cst_74 {dimension_numbers = #tpu.dot_dimension_numbers<[1], [0], [0], [1], [0, 0, 1, 1], [], []>} : vector<16x32xf32>, vector<32x32xf32>, vector<16x32xf32> -> vector<16x32xf32>
    %167 = arith.addf %166, %58 : vector<16x32xf32>
    %168 = vector.shape_cast %167 : vector<16x32xf32> to vector<2x8x32xf32>
    %169 = vector.extract_strided_slice %168 {offsets = [0, 0, 0], sizes = [2, 8, 8], strides = [1, 1, 1]} : vector<2x8x32xf32> to vector<2x8x8xf32>
    %170 = vector.extract_strided_slice %65 {offsets = [0, 0, 0], sizes = [2, 16, 8], strides = [1, 1, 1]} : vector<2x16x32xf32> to vector<2x16x8xf32>
    %171 = vector.extract_strided_slice %69 {offsets = [0, 0, 0], sizes = [2, 16, 8], strides = [1, 1, 1]} : vector<2x16x32xf32> to vector<2x16x8xf32>
    "tpu.trace_start"() <{level = 10 : i32, message = "bqd,bkd->bqk"}> : () -> ()
    %cst_75 = arith.constant dense<0.000000e+00> : vector<2x8x16xf32>
    %172 = tpu.matmul %169, %170, %cst_75 {dimension_numbers = #tpu.dot_dimension_numbers<[2], [2], [1], [1], [0, 0, 0, 1, 1, 1], [0], [0]>} : vector<2x8x8xf32>, vector<2x16x8xf32>, vector<2x8x16xf32> -> vector<2x8x16xf32>
    "tpu.trace_stop"() : () -> ()
    %cst_76 = arith.constant dense<0xFF800000> : vector<2x8xf32>
    %173 = vector.multi_reduction <maximumf>, %172, %cst_76 [2] : vector<2x8x16xf32> to vector<2x8xf32>
    %174 = vector.shape_cast %173 : vector<2x8xf32> to vector<2x8x1xf32>
    %175 = vector.broadcast %174 : vector<2x8x1xf32> to vector<2x8x16xf32>
    %176 = arith.subf %172, %175 : vector<2x8x16xf32>
    %177 = math.exp %176 : vector<2x8x16xf32>
    %cst_77 = arith.constant dense<0.000000e+00> : vector<2x8xf32>
    %178 = vector.multi_reduction <add>, %177, %cst_77 [2] : vector<2x8x16xf32> to vector<2x8xf32>
    %179 = vector.shape_cast %178 : vector<2x8xf32> to vector<2x8x1xf32>
    %180 = tpu.reciprocal %179 {approx = true} : vector<2x8x1xf32> -> vector<2x8x1xf32>
    %181 = vector.broadcast %180 : vector<2x8x1xf32> to vector<2x8x16xf32>
    %182 = arith.mulf %177, %181 : vector<2x8x16xf32>
    "tpu.trace_start"() <{level = 10 : i32, message = "bqk,bkd->bqd"}> : () -> ()
    %cst_78 = arith.constant dense<0.000000e+00> : vector<2x8x8xf32>
    %183 = tpu.matmul %182, %171, %cst_78 {dimension_numbers = #tpu.dot_dimension_numbers<[2], [1], [1], [2], [0, 0, 0, 1, 1, 2], [0], [0]>} : vector<2x8x16xf32>, vector<2x16x8xf32>, vector<2x8x8xf32> -> vector<2x8x8xf32>
    "tpu.trace_stop"() : () -> ()
    %184 = vector.shape_cast %183 : vector<2x8x8xf32> to vector<16x8xf32>
    %185 = vector.extract_strided_slice %168 {offsets = [0, 0, 8], sizes = [2, 8, 8], strides = [1, 1, 1]} : vector<2x8x32xf32> to vector<2x8x8xf32>
    %186 = vector.extract_strided_slice %65 {offsets = [0, 0, 8], sizes = [2, 16, 8], strides = [1, 1, 1]} : vector<2x16x32xf32> to vector<2x16x8xf32>
    %187 = vector.extract_strided_slice %69 {offsets = [0, 0, 8], sizes = [2, 16, 8], strides = [1, 1, 1]} : vector<2x16x32xf32> to vector<2x16x8xf32>
    "tpu.trace_start"() <{level = 10 : i32, message = "bqd,bkd->bqk"}> : () -> ()
    %cst_79 = arith.constant dense<0.000000e+00> : vector<2x8x16xf32>
    %188 = tpu.matmul %185, %186, %cst_79 {dimension_numbers = #tpu.dot_dimension_numbers<[2], [2], [1], [1], [0, 0, 0, 1, 1, 1], [0], [0]>} : vector<2x8x8xf32>, vector<2x16x8xf32>, vector<2x8x16xf32> -> vector<2x8x16xf32>
    "tpu.trace_stop"() : () -> ()
    %cst_80 = arith.constant dense<0xFF800000> : vector<2x8xf32>
    %189 = vector.multi_reduction <maximumf>, %188, %cst_80 [2] : vector<2x8x16xf32> to vector<2x8xf32>
    %190 = vector.shape_cast %189 : vector<2x8xf32> to vector<2x8x1xf32>
    %191 = vector.broadcast %190 : vector<2x8x1xf32> to vector<2x8x16xf32>
    %192 = arith.subf %188, %191 : vector<2x8x16xf32>
    %193 = math.exp %192 : vector<2x8x16xf32>
    %cst_81 = arith.constant dense<0.000000e+00> : vector<2x8xf32>
    %194 = vector.multi_reduction <add>, %193, %cst_81 [2] : vector<2x8x16xf32> to vector<2x8xf32>
    %195 = vector.shape_cast %194 : vector<2x8xf32> to vector<2x8x1xf32>
    %196 = tpu.reciprocal %195 {approx = true} : vector<2x8x1xf32> -> vector<2x8x1xf32>
    %197 = vector.broadcast %196 : vector<2x8x1xf32> to vector<2x8x16xf32>
    %198 = arith.mulf %193, %197 : vector<2x8x16xf32>
    "tpu.trace_start"() <{level = 10 : i32, message = "bqk,bkd->bqd"}> : () -> ()
    %cst_82 = arith.constant dense<0.000000e+00> : vector<2x8x8xf32>
    %199 = tpu.matmul %198, %187, %cst_82 {dimension_numbers = #tpu.dot_dimension_numbers<[2], [1], [1], [2], [0, 0, 0, 1, 1, 2], [0], [0]>} : vector<2x8x16xf32>, vector<2x16x8xf32>, vector<2x8x8xf32> -> vector<2x8x8xf32>
    "tpu.trace_stop"() : () -> ()
    %200 = vector.shape_cast %199 : vector<2x8x8xf32> to vector<16x8xf32>
    %201 = vector.extract_strided_slice %168 {offsets = [0, 0, 16], sizes = [2, 8, 8], strides = [1, 1, 1]} : vector<2x8x32xf32> to vector<2x8x8xf32>
    %202 = vector.extract_strided_slice %65 {offsets = [0, 0, 16], sizes = [2, 16, 8], strides = [1, 1, 1]} : vector<2x16x32xf32> to vector<2x16x8xf32>
    %203 = vector.extract_strided_slice %69 {offsets = [0, 0, 16], sizes = [2, 16, 8], strides = [1, 1, 1]} : vector<2x16x32xf32> to vector<2x16x8xf32>
    "tpu.trace_start"() <{level = 10 : i32, message = "bqd,bkd->bqk"}> : () -> ()
    %cst_83 = arith.constant dense<0.000000e+00> : vector<2x8x16xf32>
    %204 = tpu.matmul %201, %202, %cst_83 {dimension_numbers = #tpu.dot_dimension_numbers<[2], [2], [1], [1], [0, 0, 0, 1, 1, 1], [0], [0]>} : vector<2x8x8xf32>, vector<2x16x8xf32>, vector<2x8x16xf32> -> vector<2x8x16xf32>
    "tpu.trace_stop"() : () -> ()
    %cst_84 = arith.constant dense<0xFF800000> : vector<2x8xf32>
    %205 = vector.multi_reduction <maximumf>, %204, %cst_84 [2] : vector<2x8x16xf32> to vector<2x8xf32>
    %206 = vector.shape_cast %205 : vector<2x8xf32> to vector<2x8x1xf32>
    %207 = vector.broadcast %206 : vector<2x8x1xf32> to vector<2x8x16xf32>
    %208 = arith.subf %204, %207 : vector<2x8x16xf32>
    %209 = math.exp %208 : vector<2x8x16xf32>
    %cst_85 = arith.constant dense<0.000000e+00> : vector<2x8xf32>
    %210 = vector.multi_reduction <add>, %209, %cst_85 [2] : vector<2x8x16xf32> to vector<2x8xf32>
    %211 = vector.shape_cast %210 : vector<2x8xf32> to vector<2x8x1xf32>
    %212 = tpu.reciprocal %211 {approx = true} : vector<2x8x1xf32> -> vector<2x8x1xf32>
    %213 = vector.broadcast %212 : vector<2x8x1xf32> to vector<2x8x16xf32>
    %214 = arith.mulf %209, %213 : vector<2x8x16xf32>
    "tpu.trace_start"() <{level = 10 : i32, message = "bqk,bkd->bqd"}> : () -> ()
    %cst_86 = arith.constant dense<0.000000e+00> : vector<2x8x8xf32>
    %215 = tpu.matmul %214, %203, %cst_86 {dimension_numbers = #tpu.dot_dimension_numbers<[2], [1], [1], [2], [0, 0, 0, 1, 1, 2], [0], [0]>} : vector<2x8x16xf32>, vector<2x16x8xf32>, vector<2x8x8xf32> -> vector<2x8x8xf32>
    "tpu.trace_stop"() : () -> ()
    %216 = vector.shape_cast %215 : vector<2x8x8xf32> to vector<16x8xf32>
    %217 = vector.extract_strided_slice %168 {offsets = [0, 0, 24], sizes = [2, 8, 8], strides = [1, 1, 1]} : vector<2x8x32xf32> to vector<2x8x8xf32>
    %218 = vector.extract_strided_slice %65 {offsets = [0, 0, 24], sizes = [2, 16, 8], strides = [1, 1, 1]} : vector<2x16x32xf32> to vector<2x16x8xf32>
    %219 = vector.extract_strided_slice %69 {offsets = [0, 0, 24], sizes = [2, 16, 8], strides = [1, 1, 1]} : vector<2x16x32xf32> to vector<2x16x8xf32>
    "tpu.trace_start"() <{level = 10 : i32, message = "bqd,bkd->bqk"}> : () -> ()
    %cst_87 = arith.constant dense<0.000000e+00> : vector<2x8x16xf32>
    %220 = tpu.matmul %217, %218, %cst_87 {dimension_numbers = #tpu.dot_dimension_numbers<[2], [2], [1], [1], [0, 0, 0, 1, 1, 1], [0], [0]>} : vector<2x8x8xf32>, vector<2x16x8xf32>, vector<2x8x16xf32> -> vector<2x8x16xf32>
    "tpu.trace_stop"() : () -> ()
    %cst_88 = arith.constant dense<0xFF800000> : vector<2x8xf32>
    %221 = vector.multi_reduction <maximumf>, %220, %cst_88 [2] : vector<2x8x16xf32> to vector<2x8xf32>
    %222 = vector.shape_cast %221 : vector<2x8xf32> to vector<2x8x1xf32>
    %223 = vector.broadcast %222 : vector<2x8x1xf32> to vector<2x8x16xf32>
    %224 = arith.subf %220, %223 : vector<2x8x16xf32>
    %225 = math.exp %224 : vector<2x8x16xf32>
    %cst_89 = arith.constant dense<0.000000e+00> : vector<2x8xf32>
    %226 = vector.multi_reduction <add>, %225, %cst_89 [2] : vector<2x8x16xf32> to vector<2x8xf32>
    %227 = vector.shape_cast %226 : vector<2x8xf32> to vector<2x8x1xf32>
    %228 = tpu.reciprocal %227 {approx = true} : vector<2x8x1xf32> -> vector<2x8x1xf32>
    %229 = vector.broadcast %228 : vector<2x8x1xf32> to vector<2x8x16xf32>
    %230 = arith.mulf %225, %229 : vector<2x8x16xf32>
    "tpu.trace_start"() <{level = 10 : i32, message = "bqk,bkd->bqd"}> : () -> ()
    %cst_90 = arith.constant dense<0.000000e+00> : vector<2x8x8xf32>
    %231 = tpu.matmul %230, %219, %cst_90 {dimension_numbers = #tpu.dot_dimension_numbers<[2], [1], [1], [2], [0, 0, 0, 1, 1, 2], [0], [0]>} : vector<2x8x16xf32>, vector<2x16x8xf32>, vector<2x8x8xf32> -> vector<2x8x8xf32>
    "tpu.trace_stop"() : () -> ()
    %232 = vector.shape_cast %231 : vector<2x8x8xf32> to vector<16x8xf32>
    %233 = tpu.concatenate %184, %200, %216, %232 in 1 : vector<16x8xf32>, vector<16x8xf32>, vector<16x8xf32>, vector<16x8xf32> -> vector<16x32xf32>
    %cst_91 = arith.constant dense<0.000000e+00> : vector<16x32xf32>
    %234 = tpu.matmul %233, %16, %cst_91 {dimension_numbers = #tpu.dot_dimension_numbers<[1], [0], [0], [1], [0, 0, 1, 1], [], []>} : vector<16x32xf32>, vector<32x32xf32>, vector<16x32xf32> -> vector<16x32xf32>
    %235 = arith.addf %234, %27 : vector<16x32xf32>
    %236 = arith.addf %165, %235 : vector<16x32xf32>
    %cst_92 = arith.constant dense<0.000000e+00> : vector<16xf32>
    %237 = vector.multi_reduction <add>, %236, %cst_92 [1] : vector<16x32xf32> to vector<16xf32>
    %238 = vector.shape_cast %237 : vector<16xf32> to vector<16x1xf32>
    %cst_93 = arith.constant 3.200000e+01 : f32
    %239 = vector.broadcast %cst_93 : f32 to vector<16x1xf32>
    %240 = arith.divf %238, %239 : vector<16x1xf32>
    %241 = vector.broadcast %240 : vector<16x1xf32> to vector<16x32xf32>
    %242 = arith.subf %236, %241 : vector<16x32xf32>
    %243 = arith.mulf %242, %242 : vector<16x32xf32>
    %cst_94 = arith.constant dense<0.000000e+00> : vector<16xf32>
    %244 = vector.multi_reduction <add>, %243, %cst_94 [1] : vector<16x32xf32> to vector<16xf32>
    %245 = vector.shape_cast %244 : vector<16xf32> to vector<16x1xf32>
    %cst_95 = arith.constant 3.200000e+01 : f32
    %246 = vector.broadcast %cst_95 : f32 to vector<16x1xf32>
    %247 = arith.divf %245, %246 : vector<16x1xf32>
    %248 = vector.broadcast %240 : vector<16x1xf32> to vector<16x32xf32>
    %249 = arith.subf %236, %248 : vector<16x32xf32>
    %cst_96 = arith.constant 9.99999974E-6 : f32
    %250 = vector.broadcast %cst_96 : f32 to vector<16x1xf32>
    %251 = arith.addf %247, %250 : vector<16x1xf32>
    %252 = math.rsqrt %251 : vector<16x1xf32>
    %253 = vector.broadcast %252 : vector<16x1xf32> to vector<16x32xf32>
    %254 = arith.mulf %249, %253 : vector<16x32xf32>
    %255 = arith.mulf %254, %37 : vector<16x32xf32>
    %256 = arith.addf %255, %46 : vector<16x32xf32>
    %cst_97 = arith.constant dense<0.000000e+00> : vector<16x64xf32>
    %257 = tpu.matmul %256, %18, %cst_97 {dimension_numbers = #tpu.dot_dimension_numbers<[1], [0], [0], [1], [0, 0, 1, 1], [], []>} : vector<16x32xf32>, vector<32x64xf32>, vector<16x64xf32> -> vector<16x64xf32>
    %258 = arith.addf %257, %29 : vector<16x64xf32>
    %cst_98 = arith.constant 0.000000e+00 : f32
    %259 = vector.broadcast %cst_98 : f32 to vector<16x64xf32>
    %260 = arith.maximumf %258, %259 : vector<16x64xf32>
    %cst_99 = arith.constant dense<0.000000e+00> : vector<16x32xf32>
    %261 = tpu.matmul %260, %20, %cst_99 {dimension_numbers = #tpu.dot_dimension_numbers<[1], [0], [0], [1], [0, 0, 1, 1], [], []>} : vector<16x64xf32>, vector<64x32xf32>, vector<16x32xf32> -> vector<16x32xf32>
    %262 = arith.addf %261, %31 : vector<16x32xf32>
    %263 = arith.addf %256, %262 : vector<16x32xf32>
    %cst_100 = arith.constant dense<0.000000e+00> : vector<16xf32>
    %264 = vector.multi_reduction <add>, %263, %cst_100 [1] : vector<16x32xf32> to vector<16xf32>
    %265 = vector.shape_cast %264 : vector<16xf32> to vector<16x1xf32>
    %cst_101 = arith.constant 3.200000e+01 : f32
    %266 = vector.broadcast %cst_101 : f32 to vector<16x1xf32>
    %267 = arith.divf %265, %266 : vector<16x1xf32>
    %268 = vector.broadcast %267 : vector<16x1xf32> to vector<16x32xf32>
    %269 = arith.subf %263, %268 : vector<16x32xf32>
    %270 = arith.mulf %269, %269 : vector<16x32xf32>
    %cst_102 = arith.constant dense<0.000000e+00> : vector<16xf32>
    %271 = vector.multi_reduction <add>, %270, %cst_102 [1] : vector<16x32xf32> to vector<16xf32>
    %272 = vector.shape_cast %271 : vector<16xf32> to vector<16x1xf32>
    %cst_103 = arith.constant 3.200000e+01 : f32
    %273 = vector.broadcast %cst_103 : f32 to vector<16x1xf32>
    %274 = arith.divf %272, %273 : vector<16x1xf32>
    %275 = vector.broadcast %267 : vector<16x1xf32> to vector<16x32xf32>
    %276 = arith.subf %263, %275 : vector<16x32xf32>
    %cst_104 = arith.constant 9.99999974E-6 : f32
    %277 = vector.broadcast %cst_104 : f32 to vector<16x1xf32>
    %278 = arith.addf %274, %277 : vector<16x1xf32>
    %279 = math.rsqrt %278 : vector<16x1xf32>
    %280 = vector.broadcast %279 : vector<16x1xf32> to vector<16x32xf32>
    %281 = arith.mulf %276, %280 : vector<16x32xf32>
    %282 = arith.mulf %281, %40 : vector<16x32xf32>
    %283 = arith.addf %282, %49 : vector<16x32xf32>
    %cst_105 = arith.constant dense<0.000000e+00> : vector<16x96xf32>
    %284 = tpu.matmul %283, %6, %cst_105 {dimension_numbers = #tpu.dot_dimension_numbers<[1], [0], [0], [1], [0, 0, 1, 1], [], []>} : vector<16x32xf32>, vector<32x96xf32>, vector<16x96xf32> -> vector<16x96xf32>
    %285 = arith.addf %284, %55 : vector<16x96xf32>
    %286 = vector.extract_strided_slice %285 {offsets = [0, 0], sizes = [16, 32], strides = [1, 1]} : vector<16x96xf32> to vector<16x32xf32>
    %287 = vector.extract_strided_slice %285 {offsets = [0, 32], sizes = [16, 32], strides = [1, 1]} : vector<16x96xf32> to vector<16x32xf32>
    %288 = vector.shape_cast %287 : vector<16x32xf32> to vector<2x8x32xf32>
    %289 = vector.extract_strided_slice %285 {offsets = [0, 64], sizes = [16, 32], strides = [1, 1]} : vector<16x96xf32> to vector<16x32xf32>
    %290 = vector.shape_cast %289 : vector<16x32xf32> to vector<2x8x32xf32>
    %291 = vector.shape_cast %286 : vector<16x32xf32> to vector<2x8x32xf32>
    %292 = vector.extract_strided_slice %291 {offsets = [0, 0, 0], sizes = [2, 8, 8], strides = [1, 1, 1]} : vector<2x8x32xf32> to vector<2x8x8xf32>
    %293 = vector.extract_strided_slice %288 {offsets = [0, 0, 0], sizes = [2, 8, 8], strides = [1, 1, 1]} : vector<2x8x32xf32> to vector<2x8x8xf32>
    %294 = vector.extract_strided_slice %290 {offsets = [0, 0, 0], sizes = [2, 8, 8], strides = [1, 1, 1]} : vector<2x8x32xf32> to vector<2x8x8xf32>
    "tpu.trace_start"() <{level = 10 : i32, message = "bqd,bkd->bqk"}> : () -> ()
    %cst_106 = arith.constant dense<0.000000e+00> : vector<2x8x8xf32>
    %295 = tpu.matmul %292, %293, %cst_106 {dimension_numbers = #tpu.dot_dimension_numbers<[2], [2], [1], [1], [0, 0, 0, 1, 1, 1], [0], [0]>} : vector<2x8x8xf32>, vector<2x8x8xf32>, vector<2x8x8xf32> -> vector<2x8x8xf32>
    "tpu.trace_stop"() : () -> ()
    %cst_107 = arith.constant dense<0xFF800000> : vector<2x8xf32>
    %296 = vector.multi_reduction <maximumf>, %295, %cst_107 [2] : vector<2x8x8xf32> to vector<2x8xf32>
    %297 = vector.shape_cast %296 : vector<2x8xf32> to vector<2x8x1xf32>
    %298 = vector.broadcast %297 : vector<2x8x1xf32> to vector<2x8x8xf32>
    %299 = arith.subf %295, %298 : vector<2x8x8xf32>
    %300 = math.exp %299 : vector<2x8x8xf32>
    %cst_108 = arith.constant dense<0.000000e+00> : vector<2x8xf32>
    %301 = vector.multi_reduction <add>, %300, %cst_108 [2] : vector<2x8x8xf32> to vector<2x8xf32>
    %302 = vector.shape_cast %301 : vector<2x8xf32> to vector<2x8x1xf32>
    %303 = tpu.reciprocal %302 {approx = true} : vector<2x8x1xf32> -> vector<2x8x1xf32>
    %304 = vector.broadcast %303 : vector<2x8x1xf32> to vector<2x8x8xf32>
    %305 = arith.mulf %300, %304 : vector<2x8x8xf32>
    "tpu.trace_start"() <{level = 10 : i32, message = "bqk,bkd->bqd"}> : () -> ()
    %cst_109 = arith.constant dense<0.000000e+00> : vector<2x8x8xf32>
    %306 = tpu.matmul %305, %294, %cst_109 {dimension_numbers = #tpu.dot_dimension_numbers<[2], [1], [1], [2], [0, 0, 0, 1, 1, 2], [0], [0]>} : vector<2x8x8xf32>, vector<2x8x8xf32>, vector<2x8x8xf32> -> vector<2x8x8xf32>
    "tpu.trace_stop"() : () -> ()
    %307 = vector.shape_cast %306 : vector<2x8x8xf32> to vector<16x8xf32>
    %308 = vector.extract_strided_slice %291 {offsets = [0, 0, 8], sizes = [2, 8, 8], strides = [1, 1, 1]} : vector<2x8x32xf32> to vector<2x8x8xf32>
    %309 = vector.extract_strided_slice %288 {offsets = [0, 0, 8], sizes = [2, 8, 8], strides = [1, 1, 1]} : vector<2x8x32xf32> to vector<2x8x8xf32>
    %310 = vector.extract_strided_slice %290 {offsets = [0, 0, 8], sizes = [2, 8, 8], strides = [1, 1, 1]} : vector<2x8x32xf32> to vector<2x8x8xf32>
    "tpu.trace_start"() <{level = 10 : i32, message = "bqd,bkd->bqk"}> : () -> ()
    %cst_110 = arith.constant dense<0.000000e+00> : vector<2x8x8xf32>
    %311 = tpu.matmul %308, %309, %cst_110 {dimension_numbers = #tpu.dot_dimension_numbers<[2], [2], [1], [1], [0, 0, 0, 1, 1, 1], [0], [0]>} : vector<2x8x8xf32>, vector<2x8x8xf32>, vector<2x8x8xf32> -> vector<2x8x8xf32>
    "tpu.trace_stop"() : () -> ()
    %cst_111 = arith.constant dense<0xFF800000> : vector<2x8xf32>
    %312 = vector.multi_reduction <maximumf>, %311, %cst_111 [2] : vector<2x8x8xf32> to vector<2x8xf32>
    %313 = vector.shape_cast %312 : vector<2x8xf32> to vector<2x8x1xf32>
    %314 = vector.broadcast %313 : vector<2x8x1xf32> to vector<2x8x8xf32>
    %315 = arith.subf %311, %314 : vector<2x8x8xf32>
    %316 = math.exp %315 : vector<2x8x8xf32>
    %cst_112 = arith.constant dense<0.000000e+00> : vector<2x8xf32>
    %317 = vector.multi_reduction <add>, %316, %cst_112 [2] : vector<2x8x8xf32> to vector<2x8xf32>
    %318 = vector.shape_cast %317 : vector<2x8xf32> to vector<2x8x1xf32>
    %319 = tpu.reciprocal %318 {approx = true} : vector<2x8x1xf32> -> vector<2x8x1xf32>
    %320 = vector.broadcast %319 : vector<2x8x1xf32> to vector<2x8x8xf32>
    %321 = arith.mulf %316, %320 : vector<2x8x8xf32>
    "tpu.trace_start"() <{level = 10 : i32, message = "bqk,bkd->bqd"}> : () -> ()
    %cst_113 = arith.constant dense<0.000000e+00> : vector<2x8x8xf32>
    %322 = tpu.matmul %321, %310, %cst_113 {dimension_numbers = #tpu.dot_dimension_numbers<[2], [1], [1], [2], [0, 0, 0, 1, 1, 2], [0], [0]>} : vector<2x8x8xf32>, vector<2x8x8xf32>, vector<2x8x8xf32> -> vector<2x8x8xf32>
    "tpu.trace_stop"() : () -> ()
    %323 = vector.shape_cast %322 : vector<2x8x8xf32> to vector<16x8xf32>
    %324 = vector.extract_strided_slice %291 {offsets = [0, 0, 16], sizes = [2, 8, 8], strides = [1, 1, 1]} : vector<2x8x32xf32> to vector<2x8x8xf32>
    %325 = vector.extract_strided_slice %288 {offsets = [0, 0, 16], sizes = [2, 8, 8], strides = [1, 1, 1]} : vector<2x8x32xf32> to vector<2x8x8xf32>
    %326 = vector.extract_strided_slice %290 {offsets = [0, 0, 16], sizes = [2, 8, 8], strides = [1, 1, 1]} : vector<2x8x32xf32> to vector<2x8x8xf32>
    "tpu.trace_start"() <{level = 10 : i32, message = "bqd,bkd->bqk"}> : () -> ()
    %cst_114 = arith.constant dense<0.000000e+00> : vector<2x8x8xf32>
    %327 = tpu.matmul %324, %325, %cst_114 {dimension_numbers = #tpu.dot_dimension_numbers<[2], [2], [1], [1], [0, 0, 0, 1, 1, 1], [0], [0]>} : vector<2x8x8xf32>, vector<2x8x8xf32>, vector<2x8x8xf32> -> vector<2x8x8xf32>
    "tpu.trace_stop"() : () -> ()
    %cst_115 = arith.constant dense<0xFF800000> : vector<2x8xf32>
    %328 = vector.multi_reduction <maximumf>, %327, %cst_115 [2] : vector<2x8x8xf32> to vector<2x8xf32>
    %329 = vector.shape_cast %328 : vector<2x8xf32> to vector<2x8x1xf32>
    %330 = vector.broadcast %329 : vector<2x8x1xf32> to vector<2x8x8xf32>
    %331 = arith.subf %327, %330 : vector<2x8x8xf32>
    %332 = math.exp %331 : vector<2x8x8xf32>
    %cst_116 = arith.constant dense<0.000000e+00> : vector<2x8xf32>
    %333 = vector.multi_reduction <add>, %332, %cst_116 [2] : vector<2x8x8xf32> to vector<2x8xf32>
    %334 = vector.shape_cast %333 : vector<2x8xf32> to vector<2x8x1xf32>
    %335 = tpu.reciprocal %334 {approx = true} : vector<2x8x1xf32> -> vector<2x8x1xf32>
    %336 = vector.broadcast %335 : vector<2x8x1xf32> to vector<2x8x8xf32>
    %337 = arith.mulf %332, %336 : vector<2x8x8xf32>
    "tpu.trace_start"() <{level = 10 : i32, message = "bqk,bkd->bqd"}> : () -> ()
    %cst_117 = arith.constant dense<0.000000e+00> : vector<2x8x8xf32>
    %338 = tpu.matmul %337, %326, %cst_117 {dimension_numbers = #tpu.dot_dimension_numbers<[2], [1], [1], [2], [0, 0, 0, 1, 1, 2], [0], [0]>} : vector<2x8x8xf32>, vector<2x8x8xf32>, vector<2x8x8xf32> -> vector<2x8x8xf32>
    "tpu.trace_stop"() : () -> ()
    %339 = vector.shape_cast %338 : vector<2x8x8xf32> to vector<16x8xf32>
    %340 = vector.extract_strided_slice %291 {offsets = [0, 0, 24], sizes = [2, 8, 8], strides = [1, 1, 1]} : vector<2x8x32xf32> to vector<2x8x8xf32>
    %341 = vector.extract_strided_slice %288 {offsets = [0, 0, 24], sizes = [2, 8, 8], strides = [1, 1, 1]} : vector<2x8x32xf32> to vector<2x8x8xf32>
    %342 = vector.extract_strided_slice %290 {offsets = [0, 0, 24], sizes = [2, 8, 8], strides = [1, 1, 1]} : vector<2x8x32xf32> to vector<2x8x8xf32>
    "tpu.trace_start"() <{level = 10 : i32, message = "bqd,bkd->bqk"}> : () -> ()
    %cst_118 = arith.constant dense<0.000000e+00> : vector<2x8x8xf32>
    %343 = tpu.matmul %340, %341, %cst_118 {dimension_numbers = #tpu.dot_dimension_numbers<[2], [2], [1], [1], [0, 0, 0, 1, 1, 1], [0], [0]>} : vector<2x8x8xf32>, vector<2x8x8xf32>, vector<2x8x8xf32> -> vector<2x8x8xf32>
    "tpu.trace_stop"() : () -> ()
    %cst_119 = arith.constant dense<0xFF800000> : vector<2x8xf32>
    %344 = vector.multi_reduction <maximumf>, %343, %cst_119 [2] : vector<2x8x8xf32> to vector<2x8xf32>
    %345 = vector.shape_cast %344 : vector<2x8xf32> to vector<2x8x1xf32>
    %346 = vector.broadcast %345 : vector<2x8x1xf32> to vector<2x8x8xf32>
    %347 = arith.subf %343, %346 : vector<2x8x8xf32>
    %348 = math.exp %347 : vector<2x8x8xf32>
    %cst_120 = arith.constant dense<0.000000e+00> : vector<2x8xf32>
    %349 = vector.multi_reduction <add>, %348, %cst_120 [2] : vector<2x8x8xf32> to vector<2x8xf32>
    %350 = vector.shape_cast %349 : vector<2x8xf32> to vector<2x8x1xf32>
    %351 = tpu.reciprocal %350 {approx = true} : vector<2x8x1xf32> -> vector<2x8x1xf32>
    %352 = vector.broadcast %351 : vector<2x8x1xf32> to vector<2x8x8xf32>
    %353 = arith.mulf %348, %352 : vector<2x8x8xf32>
    "tpu.trace_start"() <{level = 10 : i32, message = "bqk,bkd->bqd"}> : () -> ()
    %cst_121 = arith.constant dense<0.000000e+00> : vector<2x8x8xf32>
    %354 = tpu.matmul %353, %342, %cst_121 {dimension_numbers = #tpu.dot_dimension_numbers<[2], [1], [1], [2], [0, 0, 0, 1, 1, 2], [0], [0]>} : vector<2x8x8xf32>, vector<2x8x8xf32>, vector<2x8x8xf32> -> vector<2x8x8xf32>
    "tpu.trace_stop"() : () -> ()
    %355 = vector.shape_cast %354 : vector<2x8x8xf32> to vector<16x8xf32>
    %356 = tpu.concatenate %307, %323, %339, %355 in 1 : vector<16x8xf32>, vector<16x8xf32>, vector<16x8xf32>, vector<16x8xf32> -> vector<16x32xf32>
    %cst_122 = arith.constant dense<0.000000e+00> : vector<16x32xf32>
    %357 = tpu.matmul %356, %8, %cst_122 {dimension_numbers = #tpu.dot_dimension_numbers<[1], [0], [0], [1], [0, 0, 1, 1], [], []>} : vector<16x32xf32>, vector<32x32xf32>, vector<16x32xf32> -> vector<16x32xf32>
    %358 = arith.addf %357, %25 : vector<16x32xf32>
    %359 = arith.addf %283, %358 : vector<16x32xf32>
    %cst_123 = arith.constant dense<0.000000e+00> : vector<16xf32>
    %360 = vector.multi_reduction <add>, %359, %cst_123 [1] : vector<16x32xf32> to vector<16xf32>
    %361 = vector.shape_cast %360 : vector<16xf32> to vector<16x1xf32>
    %cst_124 = arith.constant 3.200000e+01 : f32
    %362 = vector.broadcast %cst_124 : f32 to vector<16x1xf32>
    %363 = arith.divf %361, %362 : vector<16x1xf32>
    %364 = vector.broadcast %363 : vector<16x1xf32> to vector<16x32xf32>
    %365 = arith.subf %359, %364 : vector<16x32xf32>
    %366 = arith.mulf %365, %365 : vector<16x32xf32>
    %cst_125 = arith.constant dense<0.000000e+00> : vector<16xf32>
    %367 = vector.multi_reduction <add>, %366, %cst_125 [1] : vector<16x32xf32> to vector<16xf32>
    %368 = vector.shape_cast %367 : vector<16xf32> to vector<16x1xf32>
    %cst_126 = arith.constant 3.200000e+01 : f32
    %369 = vector.broadcast %cst_126 : f32 to vector<16x1xf32>
    %370 = arith.divf %368, %369 : vector<16x1xf32>
    %371 = vector.broadcast %363 : vector<16x1xf32> to vector<16x32xf32>
    %372 = arith.subf %359, %371 : vector<16x32xf32>
    %cst_127 = arith.constant 9.99999974E-6 : f32
    %373 = vector.broadcast %cst_127 : f32 to vector<16x1xf32>
    %374 = arith.addf %370, %373 : vector<16x1xf32>
    %375 = math.rsqrt %374 : vector<16x1xf32>
    %376 = vector.broadcast %375 : vector<16x1xf32> to vector<16x32xf32>
    %377 = arith.mulf %372, %376 : vector<16x32xf32>
    %378 = arith.mulf %377, %34 : vector<16x32xf32>
    %379 = arith.addf %378, %43 : vector<16x32xf32>
    %cst_128 = arith.constant dense<0.000000e+00> : vector<16x32xf32>
    %380 = tpu.matmul %379, %10, %cst_128 {dimension_numbers = #tpu.dot_dimension_numbers<[1], [0], [0], [1], [0, 0, 1, 1], [], []>} : vector<16x32xf32>, vector<32x32xf32>, vector<16x32xf32> -> vector<16x32xf32>
    %381 = arith.addf %380, %58 : vector<16x32xf32>
    %382 = vector.shape_cast %381 : vector<16x32xf32> to vector<2x8x32xf32>
    %383 = vector.extract_strided_slice %382 {offsets = [0, 0, 0], sizes = [2, 8, 8], strides = [1, 1, 1]} : vector<2x8x32xf32> to vector<2x8x8xf32>
    %384 = vector.extract_strided_slice %65 {offsets = [0, 0, 0], sizes = [2, 16, 8], strides = [1, 1, 1]} : vector<2x16x32xf32> to vector<2x16x8xf32>
    %385 = vector.extract_strided_slice %69 {offsets = [0, 0, 0], sizes = [2, 16, 8], strides = [1, 1, 1]} : vector<2x16x32xf32> to vector<2x16x8xf32>
    "tpu.trace_start"() <{level = 10 : i32, message = "bqd,bkd->bqk"}> : () -> ()
    %cst_129 = arith.constant dense<0.000000e+00> : vector<2x8x16xf32>
    %386 = tpu.matmul %383, %384, %cst_129 {dimension_numbers = #tpu.dot_dimension_numbers<[2], [2], [1], [1], [0, 0, 0, 1, 1, 1], [0], [0]>} : vector<2x8x8xf32>, vector<2x16x8xf32>, vector<2x8x16xf32> -> vector<2x8x16xf32>
    "tpu.trace_stop"() : () -> ()
    %cst_130 = arith.constant dense<0xFF800000> : vector<2x8xf32>
    %387 = vector.multi_reduction <maximumf>, %386, %cst_130 [2] : vector<2x8x16xf32> to vector<2x8xf32>
    %388 = vector.shape_cast %387 : vector<2x8xf32> to vector<2x8x1xf32>
    %389 = vector.broadcast %388 : vector<2x8x1xf32> to vector<2x8x16xf32>
    %390 = arith.subf %386, %389 : vector<2x8x16xf32>
    %391 = math.exp %390 : vector<2x8x16xf32>
    %cst_131 = arith.constant dense<0.000000e+00> : vector<2x8xf32>
    %392 = vector.multi_reduction <add>, %391, %cst_131 [2] : vector<2x8x16xf32> to vector<2x8xf32>
    %393 = vector.shape_cast %392 : vector<2x8xf32> to vector<2x8x1xf32>
    %394 = tpu.reciprocal %393 {approx = true} : vector<2x8x1xf32> -> vector<2x8x1xf32>
    %395 = vector.broadcast %394 : vector<2x8x1xf32> to vector<2x8x16xf32>
    %396 = arith.mulf %391, %395 : vector<2x8x16xf32>
    "tpu.trace_start"() <{level = 10 : i32, message = "bqk,bkd->bqd"}> : () -> ()
    %cst_132 = arith.constant dense<0.000000e+00> : vector<2x8x8xf32>
    %397 = tpu.matmul %396, %385, %cst_132 {dimension_numbers = #tpu.dot_dimension_numbers<[2], [1], [1], [2], [0, 0, 0, 1, 1, 2], [0], [0]>} : vector<2x8x16xf32>, vector<2x16x8xf32>, vector<2x8x8xf32> -> vector<2x8x8xf32>
    "tpu.trace_stop"() : () -> ()
    %398 = vector.shape_cast %397 : vector<2x8x8xf32> to vector<16x8xf32>
    %399 = vector.extract_strided_slice %382 {offsets = [0, 0, 8], sizes = [2, 8, 8], strides = [1, 1, 1]} : vector<2x8x32xf32> to vector<2x8x8xf32>
    %400 = vector.extract_strided_slice %65 {offsets = [0, 0, 8], sizes = [2, 16, 8], strides = [1, 1, 1]} : vector<2x16x32xf32> to vector<2x16x8xf32>
    %401 = vector.extract_strided_slice %69 {offsets = [0, 0, 8], sizes = [2, 16, 8], strides = [1, 1, 1]} : vector<2x16x32xf32> to vector<2x16x8xf32>
    "tpu.trace_start"() <{level = 10 : i32, message = "bqd,bkd->bqk"}> : () -> ()
    %cst_133 = arith.constant dense<0.000000e+00> : vector<2x8x16xf32>
    %402 = tpu.matmul %399, %400, %cst_133 {dimension_numbers = #tpu.dot_dimension_numbers<[2], [2], [1], [1], [0, 0, 0, 1, 1, 1], [0], [0]>} : vector<2x8x8xf32>, vector<2x16x8xf32>, vector<2x8x16xf32> -> vector<2x8x16xf32>
    "tpu.trace_stop"() : () -> ()
    %cst_134 = arith.constant dense<0xFF800000> : vector<2x8xf32>
    %403 = vector.multi_reduction <maximumf>, %402, %cst_134 [2] : vector<2x8x16xf32> to vector<2x8xf32>
    %404 = vector.shape_cast %403 : vector<2x8xf32> to vector<2x8x1xf32>
    %405 = vector.broadcast %404 : vector<2x8x1xf32> to vector<2x8x16xf32>
    %406 = arith.subf %402, %405 : vector<2x8x16xf32>
    %407 = math.exp %406 : vector<2x8x16xf32>
    %cst_135 = arith.constant dense<0.000000e+00> : vector<2x8xf32>
    %408 = vector.multi_reduction <add>, %407, %cst_135 [2] : vector<2x8x16xf32> to vector<2x8xf32>
    %409 = vector.shape_cast %408 : vector<2x8xf32> to vector<2x8x1xf32>
    %410 = tpu.reciprocal %409 {approx = true} : vector<2x8x1xf32> -> vector<2x8x1xf32>
    %411 = vector.broadcast %410 : vector<2x8x1xf32> to vector<2x8x16xf32>
    %412 = arith.mulf %407, %411 : vector<2x8x16xf32>
    "tpu.trace_start"() <{level = 10 : i32, message = "bqk,bkd->bqd"}> : () -> ()
    %cst_136 = arith.constant dense<0.000000e+00> : vector<2x8x8xf32>
    %413 = tpu.matmul %412, %401, %cst_136 {dimension_numbers = #tpu.dot_dimension_numbers<[2], [1], [1], [2], [0, 0, 0, 1, 1, 2], [0], [0]>} : vector<2x8x16xf32>, vector<2x16x8xf32>, vector<2x8x8xf32> -> vector<2x8x8xf32>
    "tpu.trace_stop"() : () -> ()
    %414 = vector.shape_cast %413 : vector<2x8x8xf32> to vector<16x8xf32>
    %415 = vector.extract_strided_slice %382 {offsets = [0, 0, 16], sizes = [2, 8, 8], strides = [1, 1, 1]} : vector<2x8x32xf32> to vector<2x8x8xf32>
    %416 = vector.extract_strided_slice %65 {offsets = [0, 0, 16], sizes = [2, 16, 8], strides = [1, 1, 1]} : vector<2x16x32xf32> to vector<2x16x8xf32>
    %417 = vector.extract_strided_slice %69 {offsets = [0, 0, 16], sizes = [2, 16, 8], strides = [1, 1, 1]} : vector<2x16x32xf32> to vector<2x16x8xf32>
    "tpu.trace_start"() <{level = 10 : i32, message = "bqd,bkd->bqk"}> : () -> ()
    %cst_137 = arith.constant dense<0.000000e+00> : vector<2x8x16xf32>
    %418 = tpu.matmul %415, %416, %cst_137 {dimension_numbers = #tpu.dot_dimension_numbers<[2], [2], [1], [1], [0, 0, 0, 1, 1, 1], [0], [0]>} : vector<2x8x8xf32>, vector<2x16x8xf32>, vector<2x8x16xf32> -> vector<2x8x16xf32>
    "tpu.trace_stop"() : () -> ()
    %cst_138 = arith.constant dense<0xFF800000> : vector<2x8xf32>
    %419 = vector.multi_reduction <maximumf>, %418, %cst_138 [2] : vector<2x8x16xf32> to vector<2x8xf32>
    %420 = vector.shape_cast %419 : vector<2x8xf32> to vector<2x8x1xf32>
    %421 = vector.broadcast %420 : vector<2x8x1xf32> to vector<2x8x16xf32>
    %422 = arith.subf %418, %421 : vector<2x8x16xf32>
    %423 = math.exp %422 : vector<2x8x16xf32>
    %cst_139 = arith.constant dense<0.000000e+00> : vector<2x8xf32>
    %424 = vector.multi_reduction <add>, %423, %cst_139 [2] : vector<2x8x16xf32> to vector<2x8xf32>
    %425 = vector.shape_cast %424 : vector<2x8xf32> to vector<2x8x1xf32>
    %426 = tpu.reciprocal %425 {approx = true} : vector<2x8x1xf32> -> vector<2x8x1xf32>
    %427 = vector.broadcast %426 : vector<2x8x1xf32> to vector<2x8x16xf32>
    %428 = arith.mulf %423, %427 : vector<2x8x16xf32>
    "tpu.trace_start"() <{level = 10 : i32, message = "bqk,bkd->bqd"}> : () -> ()
    %cst_140 = arith.constant dense<0.000000e+00> : vector<2x8x8xf32>
    %429 = tpu.matmul %428, %417, %cst_140 {dimension_numbers = #tpu.dot_dimension_numbers<[2], [1], [1], [2], [0, 0, 0, 1, 1, 2], [0], [0]>} : vector<2x8x16xf32>, vector<2x16x8xf32>, vector<2x8x8xf32> -> vector<2x8x8xf32>
    "tpu.trace_stop"() : () -> ()
    %430 = vector.shape_cast %429 : vector<2x8x8xf32> to vector<16x8xf32>
    %431 = vector.extract_strided_slice %382 {offsets = [0, 0, 24], sizes = [2, 8, 8], strides = [1, 1, 1]} : vector<2x8x32xf32> to vector<2x8x8xf32>
    %432 = vector.extract_strided_slice %65 {offsets = [0, 0, 24], sizes = [2, 16, 8], strides = [1, 1, 1]} : vector<2x16x32xf32> to vector<2x16x8xf32>
    %433 = vector.extract_strided_slice %69 {offsets = [0, 0, 24], sizes = [2, 16, 8], strides = [1, 1, 1]} : vector<2x16x32xf32> to vector<2x16x8xf32>
    "tpu.trace_start"() <{level = 10 : i32, message = "bqd,bkd->bqk"}> : () -> ()
    %cst_141 = arith.constant dense<0.000000e+00> : vector<2x8x16xf32>
    %434 = tpu.matmul %431, %432, %cst_141 {dimension_numbers = #tpu.dot_dimension_numbers<[2], [2], [1], [1], [0, 0, 0, 1, 1, 1], [0], [0]>} : vector<2x8x8xf32>, vector<2x16x8xf32>, vector<2x8x16xf32> -> vector<2x8x16xf32>
    "tpu.trace_stop"() : () -> ()
    %cst_142 = arith.constant dense<0xFF800000> : vector<2x8xf32>
    %435 = vector.multi_reduction <maximumf>, %434, %cst_142 [2] : vector<2x8x16xf32> to vector<2x8xf32>
    %436 = vector.shape_cast %435 : vector<2x8xf32> to vector<2x8x1xf32>
    %437 = vector.broadcast %436 : vector<2x8x1xf32> to vector<2x8x16xf32>
    %438 = arith.subf %434, %437 : vector<2x8x16xf32>
    %439 = math.exp %438 : vector<2x8x16xf32>
    %cst_143 = arith.constant dense<0.000000e+00> : vector<2x8xf32>
    %440 = vector.multi_reduction <add>, %439, %cst_143 [2] : vector<2x8x16xf32> to vector<2x8xf32>
    %441 = vector.shape_cast %440 : vector<2x8xf32> to vector<2x8x1xf32>
    %442 = tpu.reciprocal %441 {approx = true} : vector<2x8x1xf32> -> vector<2x8x1xf32>
    %443 = vector.broadcast %442 : vector<2x8x1xf32> to vector<2x8x16xf32>
    %444 = arith.mulf %439, %443 : vector<2x8x16xf32>
    "tpu.trace_start"() <{level = 10 : i32, message = "bqk,bkd->bqd"}> : () -> ()
    %cst_144 = arith.constant dense<0.000000e+00> : vector<2x8x8xf32>
    %445 = tpu.matmul %444, %433, %cst_144 {dimension_numbers = #tpu.dot_dimension_numbers<[2], [1], [1], [2], [0, 0, 0, 1, 1, 2], [0], [0]>} : vector<2x8x16xf32>, vector<2x16x8xf32>, vector<2x8x8xf32> -> vector<2x8x8xf32>
    "tpu.trace_stop"() : () -> ()
    %446 = vector.shape_cast %445 : vector<2x8x8xf32> to vector<16x8xf32>
    %447 = tpu.concatenate %398, %414, %430, %446 in 1 : vector<16x8xf32>, vector<16x8xf32>, vector<16x8xf32>, vector<16x8xf32> -> vector<16x32xf32>
    %cst_145 = arith.constant dense<0.000000e+00> : vector<16x32xf32>
    %448 = tpu.matmul %447, %16, %cst_145 {dimension_numbers = #tpu.dot_dimension_numbers<[1], [0], [0], [1], [0, 0, 1, 1], [], []>} : vector<16x32xf32>, vector<32x32xf32>, vector<16x32xf32> -> vector<16x32xf32>
    %449 = arith.addf %448, %27 : vector<16x32xf32>
    %450 = arith.addf %379, %449 : vector<16x32xf32>
    %cst_146 = arith.constant dense<0.000000e+00> : vector<16xf32>
    %451 = vector.multi_reduction <add>, %450, %cst_146 [1] : vector<16x32xf32> to vector<16xf32>
    %452 = vector.shape_cast %451 : vector<16xf32> to vector<16x1xf32>
    %cst_147 = arith.constant 3.200000e+01 : f32
    %453 = vector.broadcast %cst_147 : f32 to vector<16x1xf32>
    %454 = arith.divf %452, %453 : vector<16x1xf32>
    %455 = vector.broadcast %454 : vector<16x1xf32> to vector<16x32xf32>
    %456 = arith.subf %450, %455 : vector<16x32xf32>
    %457 = arith.mulf %456, %456 : vector<16x32xf32>
    %cst_148 = arith.constant dense<0.000000e+00> : vector<16xf32>
    %458 = vector.multi_reduction <add>, %457, %cst_148 [1] : vector<16x32xf32> to vector<16xf32>
    %459 = vector.shape_cast %458 : vector<16xf32> to vector<16x1xf32>
    %cst_149 = arith.constant 3.200000e+01 : f32
    %460 = vector.broadcast %cst_149 : f32 to vector<16x1xf32>
    %461 = arith.divf %459, %460 : vector<16x1xf32>
    %462 = vector.broadcast %454 : vector<16x1xf32> to vector<16x32xf32>
    %463 = arith.subf %450, %462 : vector<16x32xf32>
    %cst_150 = arith.constant 9.99999974E-6 : f32
    %464 = vector.broadcast %cst_150 : f32 to vector<16x1xf32>
    %465 = arith.addf %461, %464 : vector<16x1xf32>
    %466 = math.rsqrt %465 : vector<16x1xf32>
    %467 = vector.broadcast %466 : vector<16x1xf32> to vector<16x32xf32>
    %468 = arith.mulf %463, %467 : vector<16x32xf32>
    %469 = arith.mulf %468, %37 : vector<16x32xf32>
    %470 = arith.addf %469, %46 : vector<16x32xf32>
    %cst_151 = arith.constant dense<0.000000e+00> : vector<16x64xf32>
    %471 = tpu.matmul %470, %18, %cst_151 {dimension_numbers = #tpu.dot_dimension_numbers<[1], [0], [0], [1], [0, 0, 1, 1], [], []>} : vector<16x32xf32>, vector<32x64xf32>, vector<16x64xf32> -> vector<16x64xf32>
    %472 = arith.addf %471, %29 : vector<16x64xf32>
    %cst_152 = arith.constant 0.000000e+00 : f32
    %473 = vector.broadcast %cst_152 : f32 to vector<16x64xf32>
    %474 = arith.maximumf %472, %473 : vector<16x64xf32>
    %cst_153 = arith.constant dense<0.000000e+00> : vector<16x32xf32>
    %475 = tpu.matmul %474, %20, %cst_153 {dimension_numbers = #tpu.dot_dimension_numbers<[1], [0], [0], [1], [0, 0, 1, 1], [], []>} : vector<16x64xf32>, vector<64x32xf32>, vector<16x32xf32> -> vector<16x32xf32>
    %476 = arith.addf %475, %31 : vector<16x32xf32>
    %477 = arith.addf %470, %476 : vector<16x32xf32>
    %cst_154 = arith.constant dense<0.000000e+00> : vector<16xf32>
    %478 = vector.multi_reduction <add>, %477, %cst_154 [1] : vector<16x32xf32> to vector<16xf32>
    %479 = vector.shape_cast %478 : vector<16xf32> to vector<16x1xf32>
    %cst_155 = arith.constant 3.200000e+01 : f32
    %480 = vector.broadcast %cst_155 : f32 to vector<16x1xf32>
    %481 = arith.divf %479, %480 : vector<16x1xf32>
    %482 = vector.broadcast %481 : vector<16x1xf32> to vector<16x32xf32>
    %483 = arith.subf %477, %482 : vector<16x32xf32>
    %484 = arith.mulf %483, %483 : vector<16x32xf32>
    %cst_156 = arith.constant dense<0.000000e+00> : vector<16xf32>
    %485 = vector.multi_reduction <add>, %484, %cst_156 [1] : vector<16x32xf32> to vector<16xf32>
    %486 = vector.shape_cast %485 : vector<16xf32> to vector<16x1xf32>
    %cst_157 = arith.constant 3.200000e+01 : f32
    %487 = vector.broadcast %cst_157 : f32 to vector<16x1xf32>
    %488 = arith.divf %486, %487 : vector<16x1xf32>
    %489 = vector.broadcast %481 : vector<16x1xf32> to vector<16x32xf32>
    %490 = arith.subf %477, %489 : vector<16x32xf32>
    %cst_158 = arith.constant 9.99999974E-6 : f32
    %491 = vector.broadcast %cst_158 : f32 to vector<16x1xf32>
    %492 = arith.addf %488, %491 : vector<16x1xf32>
    %493 = math.rsqrt %492 : vector<16x1xf32>
    %494 = vector.broadcast %493 : vector<16x1xf32> to vector<16x32xf32>
    %495 = arith.mulf %490, %494 : vector<16x32xf32>
    %496 = arith.mulf %495, %40 : vector<16x32xf32>
    %497 = arith.addf %496, %49 : vector<16x32xf32>
    %498 = vector.shape_cast %497 : vector<16x32xf32> to vector<2x8x32xf32>
    %c0_159 = arith.constant 0 : index
    %c0_160 = arith.constant 0 : index
    %c0_161 = arith.constant 0 : index
    %499 = vector.load %arg22[%c0_159, %c0_160, %c0_161] : memref<2x8x32xf32, #tpu.memory_space<vmem>>, vector<2x8x32xf32>
    tpu.vector_store %arg22[%c0_159, %c0_160, %c0_161], %498 {strides = array<i32>} : memref<2x8x32xf32, #tpu.memory_space<vmem>>, vector<2x8x32xf32>,
    return
  }
}

</mosaic_0001>

<bundles_post_ra>
// kernel: transformer_decoder.1
= control target key start
LH: loop header
LB: loop body
LE: loop exit
PB: predicated region body
PF: predicated region fallthrough
CT: control target
= control target key end

     0   :  { %s10729_s0 = inlined_call_operand.hbm [shape: f32[2,8,32], index: 0, kind: input, shape index: {}]   ;;  %s10730_s1 = inlined_call_operand.vmem [shape: f32[2,16,32], index: 1, kind: input, shape index: {}]   ;;  %s10731_s2 = inlined_call_operand.vmem [shape: f32[2,16,32], index: 2, kind: input, shape index: {}]   ;;  %s10732_s3 = inlined_call_operand.hbm [shape: f32[2,8,32], index: 3, kind: input, shape index: {}]   ;;  %s10733_s4 = inlined_call_operand.vmem [shape: f32[32,96], index: 4, kind: input, shape index: {}]   ;;  %s10734_s5 = inlined_call_operand.hbm [shape: f32[1,96], index: 5, kind: input, shape index: {}]   ;;  %s10735_s6 = inlined_call_operand.vmem [shape: f32[32,32], index: 6, kind: input, shape index: {}]   ;;  %s10736_s7 = inlined_call_operand.hbm [shape: f32[1,32], index: 7, kind: input, shape index: {}]   ;;  %s10737_s8 = inlined_call_operand.hbm [shape: f32[32,32], index: 8, kind: input, shape index: {}]   ;;  %s10738_s9 = inlined_call_operand.hbm [shape: f32[1,32], index: 9, kind: input, shape index: {}]   ;;  %s10739_s10 = inlined_call_operand.hbm [shape: f32[32,32], index: 10, kind: input, shape index: {}]   ;;  %s10740_s11 = inlined_call_operand.hbm [shape: f32[1,32], index: 11, kind: input, shape index: {}]   ;;  %s10741_s12 = inlined_call_operand.hbm [shape: f32[32,32], index: 12, kind: input, shape index: {}]   ;;  %s10742_s13 = inlined_call_operand.hbm [shape: f32[1,32], index: 13, kind: input, shape index: {}]   ;;  %s10743_s14 = inlined_call_operand.hbm [shape: f32[32,32], index: 14, kind: input, shape index: {}]   ;;  %s10744_s15 = inlined_call_operand.hbm [shape: f32[1,32], index: 15, kind: input, shape index: {}]   ;;  %s10745_s16 = inlined_call_operand.hbm [shape: f32[32,64], index: 16, kind: input, shape index: {}]   ;;  %s10746_s17 = inlined_call_operand.hbm [shape: f32[1,64], index: 17, kind: input, shape index: {}]   ;;  %s10747_s18 = inlined_call_operand.vmem [shape: f32[64,32], index: 18, kind: input, shape index: {}]   ;;  %s10748_s19 = inlined_call_operand.hbm [shape: f32[1,32], index: 19, kind: input, shape index: {}]   ;;  %s10749_s20 = inlined_call_operand.hbm [shape: f32[3,32], index: 20, kind: input, shape index: {}]   ;;  %s10750_s21 = inlined_call_operand.hbm [shape: f32[3,32], index: 21, kind: input, shape index: {}]   ;;  %s10751_s22 = inlined_call_operand.hbm [shape: f32[2,8,32], index: 22, kind: output, shape index: {}]  }
   0x1   :  { %10761 = sst [smem:[#allocation40_spill]] %s10729_s0 }
   0x2   :  { %10762 = sst [smem:[#allocation41_spill]] %s10730_s1 }
   0x3   :  { %10763 = sst [smem:[#allocation42_spill]] %s10731_s2 }
   0x4   :  { %10764 = sst [smem:[#allocation43_spill]] %s10732_s3 }
   0x5   :  { %10765 = sst [smem:[#allocation44_spill]] %s10733_s4 }
   0x6   :  { %10766 = sst [smem:[#allocation45_spill]] %s10734_s5 }
   0x7   :  { %10767 = sst [smem:[#allocation46_spill]] %s10735_s6 }
   0x8   :  { %27 = vsyncpa [#allocation3], 0 }
   0x9   :  { %28 = vsyncpa [#allocation6], 0 }
   0xa   :  { %29 = vsyncpa [#allocation9], 0 }
   0xb   :  { %30 = vsyncpa [#allocation12], 0 }
   0xc   :  { %31 = vsyncpa [#allocation15], 0 }
   0xd   :  { %32 = vsyncpa [#allocation18], 0 }
   0xe   :  { %33 = vsyncpa [#allocation21], 0 }
   0xf   :  { %34 = vsyncpa [#allocation24], 0 }
  0x10   :  { %35 = vsyncpa [#allocation27], 0 }
  0x11   :  { %36 = vsyncpa [#allocation4], 0  ;;  %s9281_s3 = smov [#allocation5]   ;;  %s9282_s29 = smov [#allocation8]  }
  0x12   :  { %s58_s28 = sshll.u32 %s9281_s3, 4  ;;  %s85_s30 = sshll.u32 %s9282_s29, 4  ;;  %s59_s28 = int_to_ptr.vmem [resolvable:$true] %s58_s28  ;;  %s9432_s30 = int_to_ptr.vmem [resolvable:$true] %s85_s30 }
  0x13   :  { %s10768_s23 = sld [smem:[#allocation43_spill]] }
  0x19   :  { %s8865_s1 = scalar_lea.hbm %s10768_s23, 256 }
  0x1a   :  { %p8866_p0 = scmp.ne.s32.totalorder %s10768_s23, %s8865_s1  ;;  %p8869_p1 = scmp.lt.u32.totalorder %s8865_s1, %s10768_s23 }
  0x1c   :  { %p8871_p2 = pnand %p8869_p1, %p8866_p0 }
  0x1e   :  { %8874 = shalt.err (!%p8871_p2)
}
  0x1f   :  { %s8875_s26 = scalar_lea.vmem %s59_s28, 256  ;;  %p8880_p4 = scmp.lt.s32.totalorder %s59_s28, %s59_s28 }
  0x20   :  { %p8876_p3 = scmp.ne.s32.totalorder %s59_s28, %s8875_s26  ;;  %p8881_p5 = scmp.lt.s32.totalorder %s8875_s26, %s8875_s26 }
  0x22   :  { %p8882_p6 = por %p8881_p5, %p8880_p4 }
  0x24   :  { %p8883_p7 = pnand %p8882_p6, %p8876_p3 }
  0x26   :  { %8886 = shalt.err (!%p8883_p7)
}
  0x27   :  { %s10759_s2 = smov 128   ;;  %s9284_s27 = smov 8  }
  0x28   :  { %64 = dma.hbm_to_vmem [thread:$0]  %s10768_s23, 256, %s59_s28, [#allocation6], %s10759_s2, %s10759_s2, %s9284_s27  }
  0x29   :  { %s8887_s1 = scalar_lea.hbm %s10736_s7, 16 }
  0x2a   :  { %p8888_p8 = scmp.ne.s32.totalorder %s10736_s7, %s8887_s1  ;;  %p8891_p9 = scmp.lt.u32.totalorder %s8887_s1, %s10736_s7 }
  0x2c   :  { %p8893_p10 = pnand %p8891_p9, %p8888_p8 }
  0x2e   :  { %8896 = shalt.err (!%p8893_p10)
}
  0x2f   :  { %s8897_s26 = scalar_lea.vmem %s9432_s30, 16  ;;  %s8901_s28 = scalar_lea.vmem %s9432_s30, 32 }
  0x30   :  { %p8898_p11 = scmp.ne.s32.totalorder %s9432_s30, %s8897_s26  ;;  %p8902_p12 = scmp.lt.s32.totalorder %s9432_s30, %s9432_s30 }
  0x31   :  { %p8903_p13 = scmp.lt.s32.totalorder %s8901_s28, %s8897_s26 }
  0x33   :  { %p8904_p0 = por %p8903_p13, %p8902_p12 }
  0x35   :  { %p8905_p1 = pnand %p8904_p0, %p8898_p11 }
  0x37   :  { %8908 = shalt.err (!%p8905_p1)
}
  0x38   :  { %88 = dma.hbm_to_vmem [thread:$0]  %s10736_s7, 16, %s9432_s30, [#allocation9]  }
  0x39   :  { %s9285_s29 = smov [#allocation11]   ;;  %s9286_s0 = smov [#allocation14]  }
  0x3a   :  { %s107_s4 = sshll.u32 %s9285_s29, 4  ;;  %s129_s1 = sshll.u32 %s9286_s0, 4  ;;  %s108_s4 = int_to_ptr.vmem [resolvable:$true] %s107_s4  ;;  %s130_s1 = int_to_ptr.vmem [resolvable:$true] %s129_s1 }
  0x3b   :  { %s8909_s6 = scalar_lea.hbm %s10738_s9, 16 }
  0x3c   :  { %p8910_p2 = scmp.ne.s32.totalorder %s10738_s9, %s8909_s6  ;;  %p8913_p3 = scmp.lt.u32.totalorder %s8909_s6, %s10738_s9 }
  0x3e   :  { %p8915_p4 = pnand %p8913_p3, %p8910_p2 }
  0x40   :  { %8918 = shalt.err (!%p8915_p4)
}
  0x41   :  { %s8919_s7 = scalar_lea.vmem %s108_s4, 16  ;;  %s8923_s30 = scalar_lea.vmem %s108_s4, 32 }
  0x42   :  { %p8920_p5 = scmp.ne.s32.totalorder %s108_s4, %s8919_s7  ;;  %p8924_p6 = scmp.lt.s32.totalorder %s108_s4, %s108_s4 }
  0x43   :  { %p8925_p7 = scmp.lt.s32.totalorder %s8923_s30, %s8919_s7 }
  0x45   :  { %p8926_p8 = por %p8925_p7, %p8924_p6 }
  0x47   :  { %p8927_p9 = pnand %p8926_p8, %p8920_p5 }
  0x49   :  { %8930 = shalt.err (!%p8927_p9)
}
  0x4a   :  { %110 = dma.hbm_to_vmem [thread:$0]  %s10738_s9, 16, %s108_s4, [#allocation12]  }
  0x4b   :  { %s8931_s5 = scalar_lea.hbm %s10740_s11, 16 }
  0x4c   :  { %p8932_p10 = scmp.ne.s32.totalorder %s10740_s11, %s8931_s5  ;;  %p8935_p11 = scmp.lt.u32.totalorder %s8931_s5, %s10740_s11 }
  0x4e   :  { %p8937_p12 = pnand %p8935_p11, %p8932_p10 }
  0x50   :  { %8940 = shalt.err (!%p8937_p12)
}
  0x51   :  { %s8941_s26 = scalar_lea.vmem %s130_s1, 16  ;;  %s8945_s28 = scalar_lea.vmem %s130_s1, 32 }
  0x52   :  { %p8942_p13 = scmp.ne.s32.totalorder %s130_s1, %s8941_s26  ;;  %p8946_p0 = scmp.lt.s32.totalorder %s130_s1, %s130_s1 }
  0x53   :  { %p8947_p1 = scmp.lt.s32.totalorder %s8945_s28, %s8941_s26 }
  0x55   :  { %p8948_p2 = por %p8947_p1, %p8946_p0 }
  0x57   :  { %p8949_p3 = pnand %p8948_p2, %p8942_p13 }
  0x59   :  { %8952 = shalt.err (!%p8949_p3)
}
  0x5a   :  { %132 = dma.hbm_to_vmem [thread:$0]  %s10740_s11, 16, %s130_s1, [#allocation15]  }
  0x5b   :  { %s9287_s7 = smov [#allocation17]   ;;  %s9288_s23 = smov [#allocation20]  }
  0x5c   :  { %s151_s30 = sshll.u32 %s9287_s7, 4  ;;  %s173_s3 = sshll.u32 %s9288_s23, 4  ;;  %s152_s30 = int_to_ptr.vmem [resolvable:$true] %s151_s30  ;;  %s174_s3 = int_to_ptr.vmem [resolvable:$true] %s173_s3 }
  0x5d   :  { %s8953_s5 = scalar_lea.hbm %s10742_s13, 16 }
  0x5e   :  { %p8954_p4 = scmp.ne.s32.totalorder %s10742_s13, %s8953_s5  ;;  %p8957_p5 = scmp.lt.u32.totalorder %s8953_s5, %s10742_s13 }
  0x60   :  { %p8959_p6 = pnand %p8957_p5, %p8954_p4 }
  0x62   :  { %8962 = shalt.err (!%p8959_p6)
}
  0x63   :  { %s8963_s11 = scalar_lea.vmem %s152_s30, 16  ;;  %s8967_s1 = scalar_lea.vmem %s152_s30, 32 }
  0x64   :  { %p8964_p7 = scmp.ne.s32.totalorder %s152_s30, %s8963_s11  ;;  %p8968_p8 = scmp.lt.s32.totalorder %s152_s30, %s152_s30 }
  0x65   :  { %p8969_p9 = scmp.lt.s32.totalorder %s8967_s1, %s8963_s11 }
  0x67   :  { %p8970_p10 = por %p8969_p9, %p8968_p8 }
  0x69   :  { %p8971_p11 = pnand %p8970_p10, %p8964_p7 }
  0x6b   :  { %8974 = shalt.err (!%p8971_p11)
}
  0x6c   :  { %154 = dma.hbm_to_vmem [thread:$0]  %s10742_s13, 16, %s152_s30, [#allocation18]  }
  0x6d   :  { %s8975_s7 = scalar_lea.hbm %s10744_s15, 16 }
  0x6e   :  { %p8976_p12 = scmp.ne.s32.totalorder %s10744_s15, %s8975_s7  ;;  %p8979_p13 = scmp.lt.u32.totalorder %s8975_s7, %s10744_s15 }
  0x70   :  { %p8981_p0 = pnand %p8979_p13, %p8976_p12 }
  0x72   :  { %8984 = shalt.err (!%p8981_p0)
}
  0x73   :  { %s8985_s2 = scalar_lea.vmem %s174_s3, 16  ;;  %s8989_s24 = scalar_lea.vmem %s174_s3, 32 }
  0x74   :  { %p8986_p1 = scmp.ne.s32.totalorder %s174_s3, %s8985_s2  ;;  %p8990_p2 = scmp.lt.s32.totalorder %s174_s3, %s174_s3 }
  0x75   :  { %p8991_p3 = scmp.lt.s32.totalorder %s8989_s24, %s8985_s2 }
  0x77   :  { %p8992_p4 = por %p8991_p3, %p8990_p2 }
  0x79   :  { %p8993_p5 = pnand %p8992_p4, %p8986_p1 }
  0x7b   :  { %8996 = shalt.err (!%p8993_p5)
}
  0x7c   :  { %176 = dma.hbm_to_vmem [thread:$0]  %s10744_s15, 16, %s174_s3, [#allocation21]  }
  0x7d   :  { %s9289_s6 = smov [#allocation23]   ;;  %s9290_s11 = smov [#allocation26]  }
  0x7e   :  { %s195_s25 = sshll.u32 %s9289_s6, 4  ;;  %s217_s1 = sshll.u32 %s9290_s11, 4  ;;  %s196_s25 = int_to_ptr.vmem [resolvable:$true] %s195_s25  ;;  %s218_s1 = int_to_ptr.vmem [resolvable:$true] %s217_s1 }
  0x7f   :  { %s8997_s9 = scalar_lea.hbm %s10746_s17, 16 }
  0x80   :  { %p8998_p6 = scmp.ne.s32.totalorder %s10746_s17, %s8997_s9  ;;  %p9001_p7 = scmp.lt.u32.totalorder %s8997_s9, %s10746_s17 }
  0x82   :  { %p9003_p8 = pnand %p9001_p7, %p8998_p6 }
  0x84   :  { %9006 = shalt.err (!%p9003_p8)
}
  0x85   :  { %s9007_s15 = scalar_lea.vmem %s196_s25, 16  ;;  %s9011_s3 = scalar_lea.vmem %s196_s25, 32 }
  0x86   :  { %p9008_p9 = scmp.ne.s32.totalorder %s196_s25, %s9007_s15  ;;  %p9012_p10 = scmp.lt.s32.totalorder %s196_s25, %s196_s25 }
  0x87   :  { %p9013_p11 = scmp.lt.s32.totalorder %s9011_s3, %s9007_s15 }
  0x89   :  { %p9014_p12 = por %p9013_p11, %p9012_p10 }
  0x8b   :  { %p9015_p13 = pnand %p9014_p12, %p9008_p9 }
  0x8d   :  { %9018 = shalt.err (!%p9015_p13)
}
  0x8e   :  { %198 = dma.hbm_to_vmem [thread:$0]  %s10746_s17, 16, %s196_s25, [#allocation24]  }
  0x8f   :  { %s9019_s13 = scalar_lea.hbm %s10749_s20, 64 }
  0x90   :  { %p9020_p0 = scmp.ne.s32.totalorder %s10749_s20, %s9019_s13  ;;  %p9023_p1 = scmp.lt.u32.totalorder %s9019_s13, %s10749_s20 }
  0x92   :  { %p9025_p2 = pnand %p9023_p1, %p9020_p0 }
  0x94   :  { %9028 = shalt.err (!%p9025_p2)
}
  0x95   :  { %s9029_s28 = scalar_lea.vmem %s218_s1, 64  ;;  %p9034_p4 = scmp.lt.s32.totalorder %s218_s1, %s218_s1 }
  0x96   :  { %p9030_p3 = scmp.ne.s32.totalorder %s218_s1, %s9029_s28  ;;  %p9035_p5 = scmp.lt.s32.totalorder %s9029_s28, %s9029_s28 }
  0x98   :  { %p9036_p6 = por %p9035_p5, %p9034_p4 }
  0x9a   :  { %p9037_p7 = pnand %p9036_p6, %p9030_p3 }
  0x9c   :  { %9040 = shalt.err (!%p9037_p7)
}
  0x9d   :  { %220 = dma.hbm_to_vmem [thread:$0]  %s10749_s20, 64, %s218_s1, [#allocation27]  }
  0x9e   :  { %s9291_s9 = smov [#allocation2]   ;;  %s9292_s7 = smov [#allocation7]  }
  0x9f   :  { %s42_s4 = sshll.u32 %s9291_s9, 4  ;;  %s73_s23 = sshll.u32 %s9292_s7, 4  ;;  %s43_s4 = int_to_ptr.vmem [resolvable:$true] %s42_s4  ;;  %s74_s23 = int_to_ptr.vmem [resolvable:$true] %s73_s23 }
  0xa0   :  { %s10769_s3 = sld [smem:[#allocation40_spill]] }
  0xa6   :  { %s9041_s0 = scalar_lea.hbm %s10769_s3, 256 }
  0xa7   :  { %p9042_p8 = scmp.ne.s32.totalorder %s10769_s3, %s9041_s0  ;;  %p9045_p9 = scmp.lt.u32.totalorder %s9041_s0, %s10769_s3 }
  0xa9   :  { %p9047_p10 = pnand %p9045_p9, %p9042_p8 }
  0xab   :  { %9050 = shalt.err (!%p9047_p10)
}
  0xac   :  { %s9051_s20 = scalar_lea.vmem %s43_s4, 256  ;;  %p9056_p12 = scmp.lt.s32.totalorder %s43_s4, %s43_s4 }
  0xad   :  { %p9052_p11 = scmp.ne.s32.totalorder %s43_s4, %s9051_s20  ;;  %p9057_p13 = scmp.lt.s32.totalorder %s9051_s20, %s9051_s20 }
  0xaf   :  { %p9058_p0 = por %p9057_p13, %p9056_p12 }
  0xb1   :  { %p9059_p1 = pnand %p9058_p0, %p9052_p11 }
  0xb3   :  { %9062 = shalt.err (!%p9059_p1)
}
  0xb4   :  { %s10770_s1 = smov 128   ;;  %s10771_s28 = sld [smem:[#allocation45_spill]] }
  0xb5   :  { %48 = dma.hbm_to_vmem [thread:$0]  %s10769_s3, 256, %s43_s4, [#allocation3], %s10770_s1, %s10770_s1, %s9284_s27  }
  0xba   :  { %s9063_s17 = scalar_lea.hbm %s10771_s28, 16 }
  0xbb   :  { %p9064_p2 = scmp.ne.s32.totalorder %s10771_s28, %s9063_s17  ;;  %p9067_p3 = scmp.lt.u32.totalorder %s9063_s17, %s10771_s28 }
  0xbd   :  { %p9069_p4 = pnand %p9067_p3, %p9064_p2 }
  0xbf   :  { %9072 = shalt.err (!%p9069_p4)
}
  0xc0   :  { %s9073_s15 = scalar_lea.vmem %s74_s23, 16  ;;  %s9077_s0 = scalar_lea.vmem %s74_s23, 32 }
  0xc1   :  { %p9074_p5 = scmp.ne.s32.totalorder %s74_s23, %s9073_s15  ;;  %p9078_p6 = scmp.lt.s32.totalorder %s74_s23, %s74_s23 }
  0xc2   :  { %p9079_p7 = scmp.lt.s32.totalorder %s9077_s0, %s9073_s15 }
  0xc4   :  { %p9080_p8 = por %p9079_p7, %p9078_p6 }
  0xc6   :  { %p9081_p9 = pnand %p9080_p8, %p9074_p5 }
  0xc8   :  { %9084 = shalt.err (!%p9081_p9)
}
  0xc9   :  { %76 = dma.hbm_to_vmem [thread:$0]  %s10771_s28, 16, %s74_s23, [#allocation6]  }
  0xca   :  { %s9293_s5 = smov [#allocation10]   ;;  %s9294_s24 = smov [#allocation13]  }
  0xcb   :  { %s94_s2 = sshll.u32 %s9293_s5, 4  ;;  %s116_s13 = sshll.u32 %s9294_s24, 4  ;;  %s95_s2 = int_to_ptr.vmem [resolvable:$true] %s94_s2  ;;  %s9566_s13 = int_to_ptr.vmem [resolvable:$true] %s116_s13 }
  0xcc   :  { %s9085_s6 = scalar_lea.hbm %s10737_s8, 512 }
  0xcd   :  { %p9086_p10 = scmp.ne.s32.totalorder %s10737_s8, %s9085_s6  ;;  %p9089_p11 = scmp.lt.u32.totalorder %s9085_s6, %s10737_s8 }
  0xcf   :  { %p9091_p12 = pnand %p9089_p11, %p9086_p10 }
  0xd1   :  { %9094 = shalt.err (!%p9091_p12)
}
  0xd2   :  { %s9095_s23 = scalar_lea.vmem %s95_s2, 512  ;;  %p9100_p0 = scmp.lt.s32.totalorder %s95_s2, %s95_s2 }
  0xd3   :  { %p9096_p13 = scmp.ne.s32.totalorder %s95_s2, %s9095_s23  ;;  %p9101_p1 = scmp.lt.s32.totalorder %s9095_s23, %s9095_s23 }
  0xd5   :  { %p9102_p2 = por %p9101_p1, %p9100_p0 }
  0xd7   :  { %p9103_p3 = pnand %p9102_p2, %p9096_p13 }
  0xd9   :  { %9106 = shalt.err (!%p9103_p3)
}
  0xda   :  { %100 = dma.hbm_to_vmem [thread:$0]  %s10737_s8, 512, %s95_s2, [#allocation9], %s10770_s1, %s10770_s1, %s9284_s27  }
  0xdb   :  { %s9107_s15 = scalar_lea.hbm %s10739_s10, 512 }
  0xdc   :  { %p9108_p4 = scmp.ne.s32.totalorder %s10739_s10, %s9107_s15  ;;  %p9111_p5 = scmp.lt.u32.totalorder %s9107_s15, %s10739_s10 }
  0xde   :  { %p9113_p6 = pnand %p9111_p5, %p9108_p4 }
  0xe0   :  { %9116 = shalt.err (!%p9113_p6)
}
  0xe1   :  { %s9117_s24 = scalar_lea.vmem %s9566_s13, 512  ;;  %p9122_p8 = scmp.lt.s32.totalorder %s9566_s13, %s9566_s13 }
  0xe2   :  { %p9118_p7 = scmp.ne.s32.totalorder %s9566_s13, %s9117_s24  ;;  %p9123_p9 = scmp.lt.s32.totalorder %s9117_s24, %s9117_s24 }
  0xe4   :  { %p9124_p10 = por %p9123_p9, %p9122_p8 }
  0xe6   :  { %p9125_p11 = pnand %p9124_p10, %p9118_p7 }
  0xe8   :  { %9128 = shalt.err (!%p9125_p11)
}
  0xe9   :  { %122 = dma.hbm_to_vmem [thread:$0]  %s10739_s10, 512, %s9566_s13, [#allocation12], %s10770_s1, %s10770_s1, %s9284_s27  }
  0xea   :  { %s9295_s20 = smov [#allocation16]   ;;  %s9296_s6 = smov [#allocation19]  }
  0xeb   :  { %s138_s30 = sshll.u32 %s9295_s20, 4  ;;  %s160_s11 = sshll.u32 %s9296_s6, 4  ;;  %s139_s30 = int_to_ptr.vmem [resolvable:$true] %s138_s30  ;;  %s9603_s11 = int_to_ptr.vmem [resolvable:$true] %s160_s11 }
  0xec   :  { %s9129_s25 = scalar_lea.hbm %s10741_s12, 512 }
  0xed   :  { %p9130_p12 = scmp.ne.s32.totalorder %s10741_s12, %s9129_s25  ;;  %p9133_p13 = scmp.lt.u32.totalorder %s9129_s25, %s10741_s12 }
  0xef   :  { %p9135_p0 = pnand %p9133_p13, %p9130_p12 }
  0xf1   :  { %9138 = shalt.err (!%p9135_p0)
}
  0xf2   :  { %s9139_s10 = scalar_lea.vmem %s139_s30, 512  ;;  %p9144_p2 = scmp.lt.s32.totalorder %s139_s30, %s139_s30 }
  0xf3   :  { %p9140_p1 = scmp.ne.s32.totalorder %s139_s30, %s9139_s10  ;;  %p9145_p3 = scmp.lt.s32.totalorder %s9139_s10, %s9139_s10 }
  0xf5   :  { %p9146_p4 = por %p9145_p3, %p9144_p2 }
  0xf7   :  { %p9147_p5 = pnand %p9146_p4, %p9140_p1 }
  0xf9   :  { %9150 = shalt.err (!%p9147_p5)
}
  0xfa   :  { %144 = dma.hbm_to_vmem [thread:$0]  %s10741_s12, 512, %s139_s30, [#allocation15], %s10770_s1, %s10770_s1, %s9284_s27  }
  0xfb   :  { %s9151_s4 = scalar_lea.hbm %s10743_s14, 512 }
  0xfc   :  { %p9152_p6 = scmp.ne.s32.totalorder %s10743_s14, %s9151_s4  ;;  %p9155_p7 = scmp.lt.u32.totalorder %s9151_s4, %s10743_s14 }
  0xfe   :  { %p9157_p8 = pnand %p9155_p7, %p9152_p6 }
 0x100   :  { %9160 = shalt.err (!%p9157_p8)
}
 0x101   :  { %s9161_s2 = scalar_lea.vmem %s9603_s11, 512  ;;  %p9166_p10 = scmp.lt.s32.totalorder %s9603_s11, %s9603_s11 }
 0x102   :  { %p9162_p9 = scmp.ne.s32.totalorder %s9603_s11, %s9161_s2  ;;  %p9167_p11 = scmp.lt.s32.totalorder %s9161_s2, %s9161_s2 }
 0x104   :  { %p9168_p12 = por %p9167_p11, %p9166_p10 }
 0x106   :  { %p9169_p13 = pnand %p9168_p12, %p9162_p9 }
 0x108   :  { %9172 = shalt.err (!%p9169_p13)
}
 0x109   :  { %166 = dma.hbm_to_vmem [thread:$0]  %s10743_s14, 512, %s9603_s11, [#allocation18], %s10770_s1, %s10770_s1, %s9284_s27  }
 0x10a   :  { %s9297_s30 = smov [#allocation22]   ;;  %s9298_s26 = smov [#allocation25]  }
 0x10b   :  { %s182_s6 = sshll.u32 %s9297_s30, 4  ;;  %s207_s17 = sshll.u32 %s9298_s26, 4  ;;  %s183_s6 = int_to_ptr.vmem [resolvable:$true] %s182_s6  ;;  %s208_s17 = int_to_ptr.vmem [resolvable:$true] %s207_s17 }
 0x10c   :  { %s9173_s28 = scalar_lea.hbm %s10745_s16, 512 }
 0x10d   :  { %p9174_p0 = scmp.ne.s32.totalorder %s10745_s16, %s9173_s28  ;;  %p9177_p1 = scmp.lt.u32.totalorder %s9173_s28, %s10745_s16 }
 0x10f   :  { %p9179_p2 = pnand %p9177_p1, %p9174_p0 }
 0x111   :  { %9182 = shalt.err (!%p9179_p2)
}
 0x112   :  { %s9183_s14 = scalar_lea.vmem %s183_s6, 512  ;;  %p9188_p4 = scmp.lt.s32.totalorder %s183_s6, %s183_s6 }
 0x113   :  { %p9184_p3 = scmp.ne.s32.totalorder %s183_s6, %s9183_s14  ;;  %p9189_p5 = scmp.lt.s32.totalorder %s9183_s14, %s9183_s14 }
 0x115   :  { %p9190_p6 = por %p9189_p5, %p9188_p4 }
 0x117   :  { %p9191_p7 = pnand %p9190_p6, %p9184_p3 }
 0x119   :  { %9194 = shalt.err (!%p9191_p7)
}
 0x11a   :  { %188 = dma.hbm_to_vmem [thread:$0]  %s10745_s16, 512, %s183_s6, [#allocation21], %s10770_s1, %s10770_s1, %s9284_s27  }
 0x11b   :  { %s9195_s4 = scalar_lea.hbm %s10748_s19, 16 }
 0x11c   :  { %p9196_p8 = scmp.ne.s32.totalorder %s10748_s19, %s9195_s4  ;;  %p9199_p9 = scmp.lt.u32.totalorder %s9195_s4, %s10748_s19 }
 0x11e   :  { %p9201_p10 = pnand %p9199_p9, %p9196_p8 }
 0x120   :  { %9204 = shalt.err (!%p9201_p10)
}
 0x121   :  { %s9205_s2 = scalar_lea.vmem %s208_s17, 16  ;;  %s9209_s12 = scalar_lea.vmem %s208_s17, 32 }
 0x122   :  { %p9206_p11 = scmp.ne.s32.totalorder %s208_s17, %s9205_s2  ;;  %p9210_p12 = scmp.lt.s32.totalorder %s208_s17, %s208_s17 }
 0x123   :  { %p9211_p13 = scmp.lt.s32.totalorder %s9209_s12, %s9205_s2 }
 0x125   :  { %p9212_p0 = por %p9211_p13, %p9210_p12 }
 0x127   :  { %p9213_p1 = pnand %p9212_p0, %p9206_p11 }
 0x129   :  { %9216 = shalt.err (!%p9213_p1)
}
 0x12a   :  { %210 = dma.hbm_to_vmem [thread:$0]  %s10748_s19, 16, %s208_s17, [#allocation24]  }
 0x12b   :  { %s9299_s30 = smov [#allocation28]   ;;  %s9217_s23 = scalar_lea.hbm %s10750_s21, 64 }
 0x12c   :  { %s227_s6 = sshll.u32 %s9299_s30, 4  ;;  %p9218_p2 = scmp.ne.s32.totalorder %s10750_s21, %s9217_s23  ;;  %s228_s6 = int_to_ptr.vmem [resolvable:$true] %s227_s6 }
 0x12d   :  { %p9221_p3 = scmp.lt.u32.totalorder %s9217_s23, %s10750_s21 }
 0x12f   :  { %p9223_p4 = pnand %p9221_p3, %p9218_p2 }
 0x131   :  { %9226 = shalt.err (!%p9223_p4)
}
 0x132   :  { %s9227_s13 = scalar_lea.vmem %s228_s6, 64  ;;  %p9232_p6 = scmp.lt.s32.totalorder %s228_s6, %s228_s6 }
 0x133   :  { %p9228_p5 = scmp.ne.s32.totalorder %s228_s6, %s9227_s13  ;;  %p9233_p7 = scmp.lt.s32.totalorder %s9227_s13, %s9227_s13 }
 0x135   :  { %p9234_p8 = por %p9233_p7, %p9232_p6 }
 0x137   :  { %p9235_p9 = pnand %p9234_p8, %p9228_p5 }
 0x139   :  { %9238 = shalt.err (!%p9235_p9)
}
 0x13a   :  { %230 = dma.hbm_to_vmem [thread:$0]  %s10750_s21, 64, %s228_s6, [#allocation27]  }
 0x13b   :  { %9261 = dma.done.wait [#allocation3], 256  }
 0x13c   :  { %9262 = vsyncadd [#allocation3], 4294967040 }
 0x13d   :  { %9263 = dma.done.wait [#allocation6], 272  }
 0x13e   :  { %9264 = vsyncadd [#allocation6], 4294967024 }
 0x13f   :  { %9265 = dma.done.wait [#allocation9], 528  }
 0x140   :  { %9266 = vsyncadd [#allocation9], 4294966768 }
 0x141   :  { %9267 = dma.done.wait [#allocation12], 528  }
 0x142   :  { %9268 = vsyncadd [#allocation12], 4294966768 }
 0x143   :  { %9269 = dma.done.wait [#allocation15], 528  }
 0x144   :  { %9270 = vsyncadd [#allocation15], 4294966768 }
 0x145   :  { %9271 = dma.done.wait [#allocation18], 528  }
 0x146   :  { %9272 = vsyncadd [#allocation18], 4294966768 }
 0x147   :  { %9273 = dma.done.wait [#allocation21], 528  }
 0x148   :  { %9274 = vsyncadd [#allocation21], 4294966768 }
 0x149   :  { %9275 = dma.done.wait [#allocation24], 32  }
 0x14a   :  { %9276 = vsyncadd [#allocation24], 4294967264 }
 0x14b   :  { %9277 = dma.done.wait [#allocation27], 128  }
 0x14c   :  { %9278 = vsyncadd [#allocation27], 4294967168  ;;  %vm388_vm0 = vcmask 261120   ;;  %s10772_s11 = sld [smem:[#allocation44_spill]]  ;;  %v284_v5 = vld [vmem:[#allocation5] sm:$0xff]  ;;  %v304_v7 = vld [vmem:[#allocation10] sm:$0xff] }
 0x14d   :  { %7783 = vmatprep.mubr.msk.f32.mxu0 %vm388_vm0, %v284_v5  ;;  %v305_v8 = vld [vmem:[#allocation10 + $0x8] sm:$0xff]  ;;  %s10773_s2 = sld [smem:[#allocation41_spill]]  ;;  %v306_v11 = vld [vmem:[#allocation10 + $0x10] sm:$0xff]  ;;  %v307_v12 = vld [vmem:[#allocation10 + $0x18] sm:$0xff]  ;;  %s10774_s20 = sld [smem:[#allocation42_spill]]  ;;  %v9300_v39 = vmov 0.0  }
 0x14e   :  { %v9702_v10 = vpack.c.bf16 %v305_v8, %v304_v7  ;;  %v285_v13 = vld [vmem:[#allocation5 + $0x8] sm:$0xff]  ;;  %v9707_v14 = vpack.c.bf16 %v307_v12, %v306_v11  ;;  %v309_v15 = vld [vmem:[#allocation13] sm:$0xff]  ;;  %v310_v16 = vld [vmem:[#allocation13 + $0x8] sm:$0xff]  ;;  %vm470_vm1 = vcmask 523264   ;;  %vm9301_vm2 = vmmov 0   ;;  %s9302_s21 = smov 96  }
 0x14f   :  { %v8373_v17 = vpack.c.bf16 %v310_v16, %v309_v15  ;;  %v311_v19 = vld [vmem:[#allocation13 + $0x10] sm:$0xff]  ;;  %v312_v20 = vld [vmem:[#allocation13 + $0x18] sm:$0xff]  ;;  %v9748_v33 = vld [vmem:[#allocation2 + $0x8] sm:$0xff]  ;;  %vm856_vm3 = vcmask 64512   ;;  %s9303_s14 = smov 64   ;;  %s9305_s29 = smov 120  }
 0x150   :  { %v8377_v22 = vpack.c.bf16 %v312_v20, %v311_v19  ;;  %v9742_v32 = vld [vmem:[#allocation2] sm:$0xff]  ;;  %v314_v34 = vld [vmem:[#allocation16] sm:$0xff]  ;;  %v315_v35 = vld [vmem:[#allocation16 + $0x8] sm:$0xff]  ;;  %s9306_s15 = smov 56   ;;  %s9307_s0 = smov 80   ;;  %vm2198_vm4 = vcmask 130048  }
 0x151   :  { %v316_v36 = vld [vmem:[#allocation16 + $0x10] sm:$0xff]  ;;  %v8381_v37 = vpack.c.bf16 %v315_v35, %v314_v34  ;;  %v317_v38 = vld [vmem:[#allocation16 + $0x18] sm:$0xff]  ;;  %v7366_v12 = vld [vmem:[#allocation17] ss:$0 sm:$0xff]  ;;  %s9308_s4 = smov 112   ;;  %s9309_s3 = smov 48  }
 0x152   :  { %v294_v0 = vld [vmem:[%s10772_s11] sm:$0xff]  ;;  %v295_v1 = vld [vmem:[%s10772_s11 + $0x8] sm:$0xff]  ;;  %v296_v2 = vld [vmem:[%s10772_s11 + $0x10] sm:$0xff]  ;;  %v8385_v40 = vpack.c.bf16 %v317_v38, %v316_v36  ;;  %s9310_s5 = smov 72   ;;  %s9311_s24 = smov 104   ;;  %vm2201_vm5 = vcmask 195584  }
 0x153   :  { %v9688_v3 = vpack.c.bf16 %v295_v1, %v294_v0  ;;  %v297_v4 = vld [vmem:[%s10772_s11 + $0x18] sm:$0xff]  ;;  %v286_v9 = vld [vmem:[%s10773_s2] sm:$0xff]  ;;  %v287_v23 = vld [vmem:[%s10773_s2 + $0x8] sm:$0xff]  ;;  %8382 = vmatprep.subr.bf16.mxu1 %v8381_v37  ;;  %s9304_s11 = smov 88   ;;  %s9312_s8 = smov 40  }
 0x154   :  { %v9693_v6 = vpack.c.bf16 %v297_v4, %v296_v2  ;;  %7819 = vmatprep.mubr.msk.f32.mxu1 %vm388_vm0, %v286_v9  ;;  %v290_v18 = vld [vmem:[%s10774_s20] sm:$0xff]  ;;  %v291_v24 = vld [vmem:[%s10774_s20 + $0x8] sm:$0xff]  ;;  %v288_v25 = vld [vmem:[%s10773_s2 + $0x10] sm:$0xff]  ;;  %8384 = vmatpush3.bf16.msra.mxu1 %v8381_v37  ;;  %s9315_s9 = smov 24  }
 0x155   :  { %8358 = vmatprep.subr.bf16.mxu0 %v9688_v3  ;;  %v562_v21 = vadd.f32 %v290_v18, %v286_v9  ;;  %v292_v26 = vld [vmem:[%s10774_s20 + $0x10] sm:$0xff]  ;;  %v563_v27 = vadd.f32 %v291_v24, %v287_v23  ;;  %v289_v29 = vld [vmem:[%s10773_s2 + $0x18] sm:$0xff]  ;;  %8386 = vmatprep.subr.bf16.mxu1 %v8385_v40  ;;  %v7361_v45 = vld [vmem:[#allocation14] ss:$0 sm:$0xff]  ;;  %s9313_s2 = smov 16  }
 0x156   :  { %8360 = vmatpush3.bf16.msra.mxu0 %v9688_v3  ;;  %v564_v28 = vadd.f32 %v292_v26, %v288_v25  ;;  %v293_v30 = vld [vmem:[%s10774_s20 + $0x18] sm:$0xff]  ;;  %v7357_v51 = vld [vmem:[#allocation7] ss:$0 sm:$0xff]  ;;  %s10775_s20 = sld [smem:[#allocation46_spill]]  ;;  %vm9972_vm6 = vmpackc.low %vm856_vm3, %vm856_vm3 }
 0x157   :  { %8362 = vmatprep.subr.bf16.mxu0 %v9693_v6  ;;  %v565_v31 = vadd.f32 %v293_v30, %v289_v29 }
 0x158   :  { %8388 = vmatpush3.bf16.msra.mxu1 %v8385_v40 }
 0x159   :  { %7836 = vmatprep.subr.mxu1 %v9300_v39 }
 0x15a   :  { %8364 = vmatpush3.bf16.msra.mxu0 %v9693_v6 }
 0x15b   :  { %8366 = vmatprep.subr.bf16.mxu0 %v9702_v10  ;;  %7820 = vmatmul.mubr.msk.f32.vlgmr.msra.gmra.mrb[0].mxu1 %vm388_vm0, %v287_v23 }
 0x15c   :  { %7822 = vmatprep.mubr.msk.f32.mxu1 %vm388_vm0, %v288_v25 }
 0x15d   :  { %7784 = vmatmul.mubr.msk.f32.vlgmr.msra.gmra.mrb[0].mxu0 %vm388_vm0, %v285_v13 }
 0x15e   :  { %8368 = vmatpush3.bf16.msra.mxu0 %v9702_v10  ;;  %7794 = vmatprep.mubr.msk.f32.mxu0 %vm388_vm0, %v284_v5 }
 0x15f   :  { %8370 = vmatprep.subr.bf16.mxu0 %v9707_v14  ;;  %7823 = vmatmul.mubr.msk.f32.gmra.mrb[2].mxu1 %vm388_vm0, %v289_v29 }
 0x160   :  { %7838 = vmatprep.mubr.msk.f32.mxu1 %vm9301_vm2, %v9300_v39 }
 0x162   :  { %8372 = vmatpush3.bf16.msra.mxu0 %v9707_v14 }
 0x163   :  { %8374 = vmatprep.subr.bf16.mxu0 %v8373_v17 }
 0x165   :  { %7795 = vmatmul.mubr.msk.f32.vlgmr.msra.gmra.mrb[2].mxu0 %vm388_vm0, %v285_v13 }
 0x166   :  { %8376 = vmatpush3.bf16.msra.mxu0 %v8373_v17  ;;  %7805 = vmatprep.mubr.msk.f32.mxu0 %vm388_vm0, %v562_v21 }
 0x167   :  { %8378 = vmatprep.subr.bf16.mxu0 %v8377_v22 }
 0x16a   :  { %8380 = vmatpush3.bf16.msra.mxu0 %v8377_v22 }
 0x16b   :  { %8390 = vmatprep.subr.bf16.mxu0 %v9688_v3 }
 0x16d   :  { %7806 = vmatmul.mubr.msk.f32.vlgmr.msra.gmra.mrb[4].mxu0 %vm388_vm0, %v563_v27 }
 0x16e   :  { %8392 = vmatpush3.bf16.msra.mxu0 %v9688_v3  ;;  %7808 = vmatprep.mubr.msk.f32.mxu0 %vm388_vm0, %v564_v28 }
 0x16f   :  { %8394 = vmatprep.subr.bf16.mxu0 %v9693_v6 }
 0x171   :  { %7809 = vmatmul.mubr.msk.f32.gmra.mrb[6].mxu0 %vm388_vm0, %v565_v31 }
 0x172   :  { %8396 = vmatpush3.bf16.msra.mxu0 %v9693_v6  ;;  %7833 = vmatprep.mubr.msk.f32.mxu0 %vm388_vm0, %v9742_v32 }
 0x173   :  { %7841 = vmatprep.subr.mxu0 %v9300_v39 }
 0x175   :  { %7834 = vmatmul.mubr.msk.f32.vlgmr.msra.gmra.mrb[8].mxu0 %vm388_vm0, %v9748_v33 }
 0x176   :  { %7843 = vmatprep.mubr.msk.f32.mxu0 %vm9301_vm2, %v9300_v39 }
 0x22e   :  { %v7821_v4 = vpop.f32.mrb[0].mxu1 }
 0x22f   :  { %v753_v5 = vpop.f32.mrb[1].mxu1  ;;  %v759_v13 = vadd.f32 %v7821_v4, %v7366_v12 }
 0x230   :  { %v7785_v41 = vpop.f32.mrb[0].mxu0  ;;  %v754_v15 = vadd.f32 %v7366_v12, %v753_v5 }
 0x231   :  { %v461_v42 = vpop.f32.mrb[1].mxu0  ;;  %v472_v62 = vsel %vm470_vm1, %v7785_v41, 0.0 }
 0x232   :  { %v471_v50 = vsel %vm470_vm1, %v461_v42, 0.0  ;;  %v9780_v1 = vadd.f32 %v7357_v51, %v472_v62  ;;  %v7824_v7 = vpop.f32.mrb[2].mxu1  ;;  %v9801_v18 = vpack.c.bf16 %v759_v13, %v754_v15  ;;  %v9803_v19 = vpack.i.bf16 %v759_v13, %v754_v15 }
 0x233   :  { %v9770_v58 = vadd.f32 %v7357_v51, %v471_v50  ;;  %v763_v8 = vpop.f32.mrb[3].mxu1  ;;  %v769_v16 = vadd.f32 %v7824_v7, %v7366_v12 }
 0x234   :  { %v764_v17 = vadd.f32 %v7366_v12, %v763_v8 }
 0x236   :  { %v9805_v20 = vpack.c.bf16 %v769_v16, %v764_v17  ;;  %v9807_v21 = vpack.i.bf16 %v769_v16, %v764_v17 }
 0x238   :  { %v9757_v43 = vpop.f32.mrb[2].mxu0 }
 0x239   :  { %v9759_v44 = vpop.f32.mrb[3].mxu0 }
 0x240   :  { %v7807_v46 = vpop.f32.mrb[4].mxu0 }
 0x241   :  { %v656_v47 = vadd.f32 %v7807_v46, %v7361_v45  ;;  %v650_v48 = vpop.f32.mrb[5].mxu0 }
 0x242   :  { %v651_v49 = vadd.f32 %v7361_v45, %v650_v48 }
 0x244   :  { %v9766_v52 = vpack.c.bf16 %v656_v47, %v651_v49  ;;  %v7810_v53 = vpop.f32.mrb[6].mxu0  ;;  %v9768_v54 = vpack.i.bf16 %v656_v47, %v651_v49 }
 0x245   :  { %v666_v55 = vadd.f32 %v7810_v53, %v7361_v45  ;;  %v660_v56 = vpop.f32.mrb[7].mxu0 }
 0x246   :  { %v661_v57 = vadd.f32 %v7361_v45, %v660_v56 }
 0x248   :  { %v9772_v59 = vpack.c.bf16 %v666_v55, %v661_v57  ;;  %v7835_v60 = vpop.f32.mrb[8].mxu0  ;;  %v9774_v61 = vpack.i.bf16 %v666_v55, %v661_v57 }
 0x249   :  { %v844_v63 = vpop.f32.mrb[9].mxu0  ;;  %v9785_v2 = vadd.f32 %v7835_v60, %v9780_v1 }
 0x24a   :  { %v9778_v0 = vadd.f32 %v844_v63, %v9770_v58 }
 0x24c   :  { %854 = vrot.lane.b32.xlu0 %v9778_v0, %s9302_s21 }
 0x250   :  { %932 = vrot.lane.b32.xlu0 %v9785_v2, %s9302_s21 }
 0x2be   :  { %v855_v9 = vpop.permute.xlu0 %854 }
 0x2bf   :  { %7837 = vmatpush3.xpose.msk.msra.mxu1 %vm856_vm3, %v855_v9 }
 0x2c0   :  { %7846 = vmatprep.subr.mxu1 %v9300_v39 }
 0x2c2   :  { %7839 = vmatmul.mubr.msk.f32.vlgmr.msra.gmra.mrb[4].mxu1 %vm856_vm3, %v9778_v0  ;;  %v933_v11 = vpop.permute.xlu0 %932 }
 0x2c3   :  { %7842 = vmatpush3.xpose.msk.msra.mxu0 %vm856_vm3, %v933_v11  ;;  %7848 = vmatprep.mubr.msk.f32.mxu1 %vm9301_vm2, %v9300_v39 }
 0x2c4   :  { %7851 = vmatprep.subr.mxu0 %v9300_v39 }
 0x2c6   :  { %7844 = vmatmul.mubr.msk.f32.vlgmr.msra.gmra.mrb[10].mxu0 %vm856_vm3, %v9785_v2 }
 0x2c7   :  { %7853 = vmatprep.mubr.msk.f32.mxu0 %vm9301_vm2, %v9300_v39 }
 0x395   :  { %v927_v22 = vpop.f32.mrb[4].mxu1 }
 0x396   :  { %v7840_v23 = vpop.f32.mrb[5].mxu1  ;;  %v1008_v24 = vsel %vm856_vm3, %v927_v22, -inf }
 0x397   :  { %1009 = vmax.xlane.f32.xlu1 %v1008_v24 }
 0x399   :  { %v1004_v25 = vpop.f32.mrb[10].mxu0 }
 0x39a   :  { %v7845_v26 = vpop.f32.mrb[11].mxu0  ;;  %v1011_v27 = vsel %vm856_vm3, %v1004_v25, -inf }
 0x39b   :  { %1012 = vmax.xlane.f32.xlu1 %v1011_v27 }
 0x3ac   :  { %1030 = vrot.lane.b32.xlu1 %v9778_v0, %s9303_s14 }
 0x3b0   :  { %1106 = vrot.lane.b32.xlu1 %v9785_v2, %s9303_s14 }
 0x3b4   :  { %1184 = vrot.lane.b32.xlu1 %v9778_v0, %s9304_s11 }
 0x3b8   :  { %1262 = vrot.lane.b32.xlu1 %v9785_v2, %s9304_s11 }
 0x424   :  { %v1010_v28 = vpop.xlane.xlu1 %1009 }
 0x425   :  { %v1014_v29 = vsub.f32 %v927_v22, %v1010_v28 }
 0x427   :  { %v1016_v30 = vmul.f32 1.442695, %v1014_v29 }
 0x428   :  { %v1013_v31 = vpop.xlane.xlu1 %1012 }
 0x429   :  { %8709 = vpow2.f32 %v1016_v30  ;;  %v1015_v34 = vsub.f32 %v1004_v25, %v1013_v31 }
 0x42b   :  { %v1018_v35 = vmul.f32 1.442695, %v1015_v34 }
 0x42c   :  { %v1031_v36 = vpop.permute.xlu1 %1030 }
 0x42d   :  { %8711 = vpow2.f32 %v1018_v35  ;;  %7847 = vmatpush3.msra.mxu1 %v1031_v36 }
 0x42e   :  { %7856 = vmatprep.subr.mxu1 %v9300_v39 }
 0x430   :  { %v1107_v37 = vpop.permute.xlu1 %1106 }
 0x431   :  { %7852 = vmatpush3.msra.mxu0 %v1107_v37 }
 0x432   :  { %7861 = vmatprep.subr.mxu0 %v9300_v39 }
 0x433   :  { %v8710_v38 = vpop.eup %8709 }
 0x434   :  { %v1020_v40 = vsel %vm856_vm3, %v8710_v38, 0.0  ;;  %v1185_v45 = vpop.permute.xlu1 %1184 }
 0x435   :  { %1021 = vadd.xlane.f32.xlu0 %v1020_v40 }
 0x437   :  { %v8712_v41 = vpop.eup %8711 }
 0x438   :  { %v1023_v42 = vsel %vm856_vm3, %v8712_v41, 0.0  ;;  %v1263_v46 = vpop.permute.xlu1 %1262 }
 0x439   :  { %1024 = vadd.xlane.f32.xlu1 %v1023_v42 }
 0x44a   :  { %1260 = vrot.lane.b32.xlu1 %v9785_v2, %s9305_s29 }
 0x44b   :  { %1182 = vrot.lane.b32.xlu0 %v9778_v0, %s9305_s29 }
 0x4c2   :  { %v1022_v47 = vpop.xlane.xlu0 %1021 }
 0x4c3   :  { %8713 = vrcp.f32 %v1022_v47 }
 0x4c6   :  { %v1025_v48 = vpop.xlane.xlu1 %1024  ;;  %v1183_v55 = vpop.permute.xlu0 %1182 }
 0x4c7   :  { %8715 = vrcp.f32 %v1025_v48 }
 0x4ca   :  { %v1261_v56 = vpop.permute.xlu1 %1260 }
 0x4cd   :  { %v8714_v49 = vpop.eup %8713 }
 0x4ce   :  { %v1028_v50 = vmul.f32 %v8714_v49, %v8710_v38 }
 0x4d0   :  { %7849 = vmatmul.mubr.msk.f32.vlgmr.msra.gmra.mrb[6].mxu1 %vm856_vm3, %v1028_v50 }
 0x4d1   :  { %v8716_v51 = vpop.eup %8715  ;;  %7857 = vmatpush3.xpose.msk.msra.mxu1 %vm856_vm3, %v1185_v45  ;;  %7858 = vmatprep.mubr.msk.f32.mxu1 %vm9301_vm2, %v9300_v39 }
 0x4d2   :  { %v1029_v53 = vmul.f32 %v8716_v51, %v8712_v41  ;;  %7866 = vmatprep.subr.mxu1 %v9300_v39 }
 0x4d4   :  { %7854 = vmatmul.mubr.msk.f32.vlgmr.msra.gmra.mrb[12].mxu0 %vm856_vm3, %v1029_v53  ;;  %7859 = vmatmul.mubr.msk.f32.vlgmr.msra.gmra.mrb[8].mxu1 %vm856_vm3, %v1183_v55 }
 0x4d5   :  { %7862 = vmatpush3.xpose.msk.msra.mxu0 %vm856_vm3, %v1263_v46  ;;  %7863 = vmatprep.mubr.msk.f32.mxu0 %vm9301_vm2, %v9300_v39 }
 0x4d6   :  { %7871 = vmatprep.subr.mxu0 %v9300_v39  ;;  %7868 = vmatprep.mubr.msk.f32.mxu1 %vm9301_vm2, %v9300_v39 }
 0x4d8   :  { %7864 = vmatmul.mubr.msk.f32.vlgmr.msra.gmra.mrb[14].mxu0 %vm856_vm3, %v1261_v56 }
 0x4d9   :  { %7873 = vmatprep.mubr.msk.f32.mxu0 %vm9301_vm2, %v9300_v39 }
 0x5a3   :  { %v9843_v57 = vpop.f32.mrb[6].mxu1 }
 0x5a4   :  { %v7850_v60 = vpop.f32.mrb[7].mxu1 }
 0x5a7   :  { %v9845_v62 = vpop.f32.mrb[12].mxu0  ;;  %v1256_v63 = vpop.f32.mrb[8].mxu1 }
 0x5a8   :  { %v7855_v4 = vpop.f32.mrb[13].mxu0  ;;  %v7860_v5 = vpop.f32.mrb[9].mxu1  ;;  %v1338_v7 = vsel %vm856_vm3, %v1256_v63, -inf }
 0x5a9   :  { %1339 = vmax.xlane.f32.xlu1 %v1338_v7 }
 0x5ab   :  { %v1334_v8 = vpop.f32.mrb[14].mxu0 }
 0x5ac   :  { %v7865_v9 = vpop.f32.mrb[15].mxu0  ;;  %v1341_v11 = vsel %vm856_vm3, %v1334_v8, -inf }
 0x5ad   :  { %1342 = vmax.xlane.f32.xlu0 %v1341_v11 }
 0x5ba   :  { %1360 = vrot.lane.b32.xlu1 %v9778_v0, %s9306_s15 }
 0x5be   :  { %1514 = vrot.lane.b32.xlu1 %v9778_v0, %s9307_s0 }
 0x5c2   :  { %1592 = vrot.lane.b32.xlu1 %v9785_v2, %s9307_s0 }
 0x5c3   :  { %1436 = vrot.lane.b32.xlu0 %v9785_v2, %s9306_s15 }
 0x5c7   :  { %1512 = vrot.lane.b32.xlu0 %v9778_v0, %s9308_s4 }
 0x636   :  { %v1340_v12 = vpop.xlane.xlu1 %1339 }
 0x637   :  { %v1344_v13 = vsub.f32 %v1256_v63, %v1340_v12 }
 0x639   :  { %v1346_v22 = vmul.f32 1.442695, %v1344_v13 }
 0x63a   :  { %v1361_v15 = vpop.permute.xlu1 %1360  ;;  %v1343_v16 = vpop.xlane.xlu0 %1342 }
 0x63b   :  { %v1345_v17 = vsub.f32 %v1334_v8, %v1343_v16  ;;  %7867 = vmatpush3.msra.mxu1 %v1361_v15 }
 0x63c   :  { %7876 = vmatprep.subr.mxu1 %v9300_v39 }
 0x63d   :  { %v1348_v23 = vmul.f32 1.442695, %v1345_v17 }
 0x63e   :  { %v1437_v24 = vpop.permute.xlu0 %1436  ;;  %v1515_v29 = vpop.permute.xlu1 %1514 }
 0x63f   :  { %8717 = vpow2.f32 %v1348_v23  ;;  %7872 = vmatpush3.msra.mxu0 %v1437_v24 }
 0x640   :  { %7881 = vmatprep.subr.mxu0 %v9300_v39  ;;  %8719 = vpow2.f32 %v1346_v22 }
 0x642   :  { %v1593_v30 = vpop.permute.xlu1 %1592  ;;  %v1513_v41 = vpop.permute.xlu0 %1512 }
 0x649   :  { %v8718_v25 = vpop.eup %8717 }
 0x64a   :  { %v1353_v26 = vsel %vm856_vm3, %v8718_v25, 0.0  ;;  %v8720_v27 = vpop.eup %8719 }
 0x64b   :  { %1354 = vadd.xlane.f32.xlu1 %v1353_v26  ;;  %v1350_v28 = vsel %vm856_vm3, %v8720_v27, 0.0 }
 0x64f   :  { %1351 = vadd.xlane.f32.xlu1 %v1350_v28 }
 0x660   :  { %1590 = vrot.lane.b32.xlu1 %v9785_v2, %s9308_s4 }
 0x6d8   :  { %v1355_v31 = vpop.xlane.xlu1 %1354 }
 0x6d9   :  { %8721 = vrcp.f32 %v1355_v31 }
 0x6dc   :  { %v1352_v34 = vpop.xlane.xlu1 %1351 }
 0x6dd   :  { %8723 = vrcp.f32 %v1352_v34 }
 0x6e0   :  { %v1591_v40 = vpop.permute.xlu1 %1590 }
 0x6e3   :  { %v8722_v35 = vpop.eup %8721 }
 0x6e4   :  { %v1359_v36 = vmul.f32 %v8722_v35, %v8718_v25 }
 0x6e6   :  { %7874 = vmatmul.mubr.msk.f32.vlgmr.msra.gmra.mrb[16].mxu0 %vm856_vm3, %v1359_v36 }
 0x6e7   :  { %v8724_v37 = vpop.eup %8723  ;;  %7882 = vmatpush3.xpose.msk.msra.mxu0 %vm856_vm3, %v1593_v30  ;;  %7883 = vmatprep.mubr.msk.f32.mxu0 %vm9301_vm2, %v9300_v39 }
 0x6e8   :  { %v1358_v38 = vmul.f32 %v8724_v37, %v8720_v27  ;;  %7891 = vmatprep.subr.mxu0 %v9300_v39 }
 0x6ea   :  { %7869 = vmatmul.mubr.msk.f32.vlgmr.msra.gmra.mrb[10].mxu1 %vm856_vm3, %v1358_v38  ;;  %7884 = vmatmul.mubr.msk.f32.vlgmr.msra.gmra.mrb[18].mxu0 %vm856_vm3, %v1591_v40 }
 0x6eb   :  { %7877 = vmatpush3.xpose.msk.msra.mxu1 %vm856_vm3, %v1515_v29  ;;  %7878 = vmatprep.mubr.msk.f32.mxu1 %vm9301_vm2, %v9300_v39 }
 0x6ec   :  { %7886 = vmatprep.subr.mxu1 %v9300_v39  ;;  %7893 = vmatprep.mubr.msk.f32.mxu0 %vm9301_vm2, %v9300_v39 }
 0x6ee   :  { %7879 = vmatmul.mubr.msk.f32.vlgmr.msra.gmra.mrb[12].mxu1 %vm856_vm3, %v1513_v41 }
 0x6ef   :  { %7888 = vmatprep.mubr.msk.f32.mxu1 %vm9301_vm2, %v9300_v39 }
 0x7b9   :  { %v9881_v42 = vpop.f32.mrb[16].mxu0 }
 0x7ba   :  { %v7875_v45 = vpop.f32.mrb[17].mxu0 }
 0x7bd   :  { %v9883_v46 = vpop.f32.mrb[10].mxu1  ;;  %v1664_v47 = vpop.f32.mrb[18].mxu0 }
 0x7be   :  { %v7870_v48 = vpop.f32.mrb[11].mxu1  ;;  %v7885_v49 = vpop.f32.mrb[19].mxu0  ;;  %v1671_v50 = vsel %vm856_vm3, %v1664_v47, -inf }
 0x7bf   :  { %1672 = vmax.xlane.f32.xlu1 %v1671_v50 }
 0x7c1   :  { %v1586_v51 = vpop.f32.mrb[12].mxu1 }
 0x7c2   :  { %v7880_v53 = vpop.f32.mrb[13].mxu1  ;;  %v1668_v55 = vsel %vm856_vm3, %v1586_v51, -inf }
 0x7c3   :  { %1669 = vmax.xlane.f32.xlu0 %v1668_v55 }
 0x7d0   :  { %1690 = vrot.lane.b32.xlu1 %v9778_v0, %s9309_s3 }
 0x7d4   :  { %1844 = vrot.lane.b32.xlu1 %v9778_v0, %s9310_s5 }
 0x7d8   :  { %1922 = vrot.lane.b32.xlu1 %v9785_v2, %s9310_s5 }
 0x7d9   :  { %1766 = vrot.lane.b32.xlu0 %v9785_v2, %s9309_s3 }
 0x7dc   :  { %1920 = vrot.lane.b32.xlu1 %v9785_v2, %s9311_s24 }
 0x84c   :  { %v1673_v56 = vpop.xlane.xlu1 %1672 }
 0x84d   :  { %v1675_v60 = vsub.f32 %v1664_v47, %v1673_v56 }
 0x84f   :  { %v1678_v63 = vmul.f32 1.442695, %v1675_v60 }
 0x850   :  { %v1691_v4 = vpop.permute.xlu1 %1690  ;;  %v1670_v5 = vpop.xlane.xlu0 %1669 }
 0x851   :  { %8725 = vpow2.f32 %v1678_v63  ;;  %v1674_v7 = vsub.f32 %v1586_v51, %v1670_v5  ;;  %7887 = vmatpush3.msra.mxu1 %v1691_v4 }
 0x852   :  { %7896 = vmatprep.subr.mxu1 %v9300_v39 }
 0x853   :  { %v1676_v8 = vmul.f32 1.442695, %v1674_v7 }
 0x854   :  { %v1767_v9 = vpop.permute.xlu0 %1766  ;;  %v1845_v22 = vpop.permute.xlu1 %1844 }
 0x855   :  { %8727 = vpow2.f32 %v1676_v8  ;;  %7892 = vmatpush3.msra.mxu0 %v1767_v9 }
 0x856   :  { %7901 = vmatprep.subr.mxu0 %v9300_v39 }
 0x858   :  { %v1923_v24 = vpop.permute.xlu1 %1922 }
 0x85b   :  { %v8726_v11 = vpop.eup %8725 }
 0x85c   :  { %v1683_v12 = vsel %vm856_vm3, %v8726_v11, 0.0  ;;  %v1921_v28 = vpop.permute.xlu1 %1920 }
 0x85d   :  { %1684 = vadd.xlane.f32.xlu0 %v1683_v12  ;;  %v301_v12 = vld [vmem:[%s10775_s20 + $0x10] sm:$0xff] }
 0x85f   :  { %v8728_v13 = vpop.eup %8727 }
 0x860   :  { %v1680_v15 = vsel %vm856_vm3, %v8728_v13, 0.0 }
 0x861   :  { %1681 = vadd.xlane.f32.xlu0 %v1680_v15  ;;  %v302_v15 = vld [vmem:[%s10775_s20 + $0x18] sm:$0xff] }
 0x877   :  { %1842 = vrot.lane.b32.xlu0 %v9778_v0, %s9311_s24 }
 0x8ea   :  { %v1685_v16 = vpop.xlane.xlu0 %1684 }
 0x8eb   :  { %8729 = vrcp.f32 %v1685_v16  ;;  %v9953_v16 = vpack.c.bf16 %v302_v15, %v301_v12 }
 0x8ee   :  { %v1682_v17 = vpop.xlane.xlu0 %1681 }
 0x8ef   :  { %8731 = vrcp.f32 %v1682_v17  ;;  %v9314_v17 = vmov 0.0|0.0  }
 0x8f2   :  { %v1843_v29 = vpop.permute.xlu0 %1842 }
 0x8f5   :  { %v8730_v23 = vpop.eup %8729 }
 0x8f6   :  { %v1689_v25 = vmul.f32 %v8730_v23, %v8726_v11  ;;  %v300_v11 = vld [vmem:[%s10775_s20 + $0x8] sm:$0xff] }
 0x8f8   :  { %7894 = vmatmul.mubr.msk.f32.vlgmr.msra.gmra.mrb[20].mxu0 %vm856_vm3, %v1689_v25 }
 0x8f9   :  { %v8732_v26 = vpop.eup %8731  ;;  %7902 = vmatpush3.xpose.msk.msra.mxu0 %vm856_vm3, %v1923_v24  ;;  %7903 = vmatprep.mubr.msk.f32.mxu0 %vm9301_vm2, %v9300_v39 }
 0x8fa   :  { %v1688_v27 = vmul.f32 %v8732_v26, %v8728_v13  ;;  %7911 = vmatprep.subr.mxu0 %v9300_v39 }
 0x8fc   :  { %7889 = vmatmul.mubr.msk.f32.vlgmr.msra.gmra.mrb[14].mxu1 %vm856_vm3, %v1688_v27  ;;  %7904 = vmatmul.mubr.msk.f32.vlgmr.msra.gmra.mrb[22].mxu0 %vm856_vm3, %v1921_v28 }
 0x8fd   :  { %7897 = vmatpush3.xpose.msk.msra.mxu1 %vm856_vm3, %v1845_v22  ;;  %7898 = vmatprep.mubr.msk.f32.mxu1 %vm9301_vm2, %v9300_v39 }
 0x8fe   :  { %7906 = vmatprep.subr.mxu1 %v9300_v39  ;;  %7913 = vmatprep.mubr.msk.f32.mxu0 %vm9301_vm2, %v9300_v39 }
 0x900   :  { %7899 = vmatmul.mubr.msk.f32.vlgmr.msra.gmra.mrb[16].mxu1 %vm856_vm3, %v1843_v29 }
 0x901   :  { %7908 = vmatprep.mubr.msk.f32.mxu1 %vm9301_vm2, %v9300_v39 }
 0x9cb   :  { %v1838_v30 = vpop.f32.mrb[20].mxu0 }
 0x9cc   :  { %v7895_v31 = vpop.f32.mrb[21].mxu0 }
 0x9cf   :  { %v1762_v34 = vpop.f32.mrb[14].mxu1  ;;  %v1994_v35 = vpop.f32.mrb[22].mxu0 }
 0x9d0   :  { %v7890_v36 = vpop.f32.mrb[15].mxu1  ;;  %v7905_v37 = vpop.f32.mrb[23].mxu0  ;;  %v2001_v38 = vsel %vm856_vm3, %v1994_v35, -inf }
 0x9d1   :  { %2002 = vmax.xlane.f32.xlu1 %v2001_v38 }
 0x9d3   :  { %v1916_v40 = vpop.f32.mrb[16].mxu1 }
 0x9d4   :  { %v7900_v41 = vpop.f32.mrb[17].mxu1  ;;  %v1998_v45 = vsel %vm856_vm3, %v1916_v40, -inf }
 0x9d5   :  { %1999 = vmax.xlane.f32.xlu0 %v1998_v45 }
 0x9e2   :  { %2020 = vrot.lane.b32.xlu1 %v9778_v0, %s9312_s8 }
 0x9e6   :  { %2174 = vrot.lane.b32.xlu1 %v9883_v46, %s9284_s27 }
 0x9ea   :  { %2176 = vrot.lane.b32.xlu1 %v9881_v42, %s9284_s27 }
 0x9ee   :  { %2184 = vrot.lane.b32.xlu1 %v1838_v30, %s9313_s2 }
 0xa5e   :  { %v2003_v47 = vpop.xlane.xlu1 %2002 }
 0xa5f   :  { %v2005_v48 = vsub.f32 %v1994_v35, %v2003_v47 }
 0xa61   :  { %v2008_v49 = vmul.f32 1.442695, %v2005_v48 }
 0xa62   :  { %v2021_v50 = vpop.permute.xlu1 %2020  ;;  %v2000_v51 = vpop.xlane.xlu0 %1999 }
 0xa63   :  { %8733 = vpow2.f32 %v2008_v49  ;;  %v2004_v53 = vsub.f32 %v1916_v40, %v2000_v51  ;;  %7907 = vmatpush3.msra.mxu1 %v2021_v50 }
 0xa65   :  { %v2006_v55 = vmul.f32 1.442695, %v2004_v53 }
 0xa66   :  { %v2175_v26 = vpop.permute.xlu1 %2174 }
 0xa67   :  { %8735 = vpow2.f32 %v2006_v55  ;;  %v2196_v30 = vsel %vm856_vm3, %v9843_v57, %v2175_v26 }
 0xa6a   :  { %v2177_v27 = vpop.permute.xlu1 %2176 }
 0xa6d   :  { %v8734_v0 = vpop.eup %8733 }
 0xa6e   :  { %v2013_v56 = vsel %vm856_vm3, %v8734_v0, 0.0  ;;  %v2185_v28 = vpop.permute.xlu1 %2184 }
 0xa6f   :  { %2014 = vadd.xlane.f32.xlu0 %v2013_v56 }
 0xa71   :  { %v8736_v46 = vpop.eup %8735 }
 0xa72   :  { %v2010_v42 = vsel %vm856_vm3, %v8736_v46, 0.0 }
 0xa73   :  { %2011 = vadd.xlane.f32.xlu0 %v2010_v42 }
 0xa89   :  { %2096 = vrot.lane.b32.xlu0 %v9785_v2, %s9312_s8  ;;  %v299_v2 = vld [vmem:[%s10775_s20] sm:$0xff] }
 0xa8a   :  { %v9948_v13 = vpack.c.bf16 %v300_v11, %v299_v2 }
 0xa8c   :  { %8398 = vmatprep.subr.bf16.mxu1 %v9948_v13 }
 0xa8d   :  { %2182 = vrot.lane.b32.xlu0 %v1762_v34, %s9313_s2  ;;  %v2197_v34 = vsel %vm856_vm3, %v9845_v62, %v2177_v27  ;;  %v7351_v62 = vld [vmem:[#allocation8] ss:$0 sm:$0xff] }
 0xa8e   :  { %v2200_v37 = vsel %vm2198_vm4, %v2197_v34, %v2185_v28 }
 0xafc   :  { %v2015_v60 = vpop.xlane.xlu0 %2014 }
 0xafd   :  { %8737 = vrcp.f32 %v2015_v60 }
 0xb00   :  { %v2012_v63 = vpop.xlane.xlu0 %2011 }
 0xb01   :  { %8739 = vrcp.f32 %v2012_v63 }
 0xb04   :  { %v2097_v4 = vpop.permute.xlu0 %2096 }
 0xb05   :  { %7912 = vmatpush3.msra.mxu0 %v2097_v4 }
 0xb06   :  { %8406 = vmatprep.subr.bf16.mxu0 %v9702_v10 }
 0xb07   :  { %v8738_v5 = vpop.eup %8737 }
 0xb08   :  { %v2019_v7 = vmul.f32 %v8738_v5, %v8734_v0  ;;  %v2183_v29 = vpop.permute.xlu0 %2182 }
 0xb09   :  { %v2199_v35 = vsel %vm2198_vm4, %v2196_v30, %v2183_v29 }
 0xb0a   :  { %7914 = vmatmul.mubr.msk.f32.vlgmr.msra.gmra.mrb[24].mxu0 %vm856_vm3, %v2019_v7 }
 0xb0b   :  { %v8740_v8 = vpop.eup %8739  ;;  %8408 = vmatpush3.bf16.msra.mxu0 %v9702_v10 }
 0xb0c   :  { %v2018_v9 = vmul.f32 %v8740_v8, %v8736_v46  ;;  %8410 = vmatprep.subr.bf16.mxu0 %v9707_v14  ;;  %v364_v8 = vlaneseq }
 0xb0e   :  { %7909 = vmatmul.mubr.msk.f32.vlgmr.msra.gmra.mrb[18].mxu1 %vm856_vm3, %v2018_v9  ;;  %v9991_v12 = vshrl.u32 %v364_v8, 7 }
 0xb0f   :  { %8412 = vmatpush3.bf16.msra.mxu0 %v9707_v14  ;;  %8400 = vmatpush3.bf16.msra.mxu1 %v9948_v13 }
 0xb10   :  { %8402 = vmatprep.subr.bf16.mxu1 %v9953_v16  ;;  %8417 = vmatprep.subr.bf16.mxu0 %v9314_v17 }
 0xb13   :  { %8404 = vmatpush3.bf16.msra.mxu1 %v9953_v16 }
 0xb14   :  { %8413 = vmatprep.subr.bf16.mxu1 %v9314_v17 }
 0xbdd   :  { %v2168_v22 = vpop.f32.mrb[24].mxu0 }
 0xbde   :  { %2192 = vrot.lane.b32.xlu1 %v2168_v22, %s9315_s9  ;;  %v7915_v23 = vpop.f32.mrb[25].mxu0  ;;  %v366_v22 = vsub.s32 0, %v9991_v12 }
 0xbdf   :  { %v9994_v23 = vld [vmem:[#allocation26] sm:$0x7] }
 0xbe1   :  { %v2092_v24 = vpop.f32.mrb[18].mxu1 }
 0xbe2   :  { %2190 = vrot.lane.b32.xlu0 %v2092_v24, %s9315_s9  ;;  %v7910_v25 = vpop.f32.mrb[19].mxu1  ;;  %v9996_v24 = vld [vmem:[#allocation28] sm:$0x7] }
 0xbe3   :  { %v9999_v25 = vrot.slane %v9994_v23, %v366_v22  ;;  %v10002_v27 = vrot.slane %v9996_v24, %v366_v22 }
 0xc50   :  { %v2193_v31 = vpop.permute.xlu1 %2192 }
 0xc51   :  { %v2203_v57 = vsel %vm2201_vm5, %v2200_v37, %v2193_v31  ;;  %v7358_v37 = vld [vmem:[#allocation11] ss:$0 sm:$0xff] }
 0xc54   :  { %v2191_v36 = vpop.permute.xlu0 %2190 }
 0xc55   :  { %v2202_v38 = vsel %vm2201_vm5, %v2199_v35, %v2191_v36 }
 0xc56   :  { %7924 = vmatprep.mubr.msk.f32.mxu1 %vm388_vm0, %v2202_v38  ;;  %v10023_v38 = vadd.f32 %v9757_v43, %v7358_v37 }
 0xc57   :  { %7925 = vmatmul.mubr.msk.f32.vlgmr.msra.gmra.mrb[20].mxu1 %vm388_vm0, %v2203_v57  ;;  %v10026_v57 = vadd.f32 %v7358_v37, %v9759_v44 }
 0xc58   :  { %8416 = vmatpush3.bf16.xpose.msk.msra.mxu1 %vm9972_vm6, %v9766_v52  ;;  %7942 = vmatprep.mubr.msk.f32.mxu1 %vm9301_vm2, %v9300_v39 }
 0xc59   :  { %8421 = vmatprep.subr.bf16.mxu1 %v9314_v17 }
 0xd2a   :  { %v7926_v41 = vpop.f32.mrb[20].mxu1 }
 0xd2b   :  { %v2282_v45 = vadd.f32 %v7926_v41, %v7351_v62  ;;  %v2276_v47 = vpop.f32.mrb[21].mxu1 }
 0xd2c   :  { %v2277_v48 = vadd.f32 %v7351_v62, %v2276_v47 }
 0xd2d   :  { %v2286_v49 = vadd.f32 %v2282_v45, %v9748_v33 }
 0xd2e   :  { %v2285_v50 = vadd.f32 %v2277_v48, %v9742_v32 }
 0xd2f   :  { %v2290_v51 = vsel %vm388_vm0, %v2286_v49, 0.0 }
 0xd30   :  { %2291 = vadd.xlane.f32.xlu1 %v2290_v51  ;;  %v2287_v53 = vsel %vm388_vm0, %v2285_v50, 0.0 }
 0xd31   :  { %2288 = vadd.xlane.f32.xlu0 %v2287_v53 }
 0xdbd   :  { %v2292_v55 = vpop.xlane.xlu1 %2291 }
 0xdbe   :  { %v2295_v0 = vmul.f32 0.03125, %v2292_v55  ;;  %v2289_v56 = vpop.xlane.xlu0 %2288 }
 0xdbf   :  { %v2294_v46 = vmul.f32 0.03125, %v2289_v56 }
 0xdc0   :  { %v2297_v42 = vsub.f32 %v2286_v49, %v2295_v0 }
 0xdc1   :  { %v2296_v60 = vsub.f32 %v2285_v50, %v2294_v46 }
 0xdc2   :  { %v2299_v5 = vmul.f32 %v2297_v42, %v2297_v42 }
 0xdc3   :  { %v2298_v63 = vmul.f32 %v2296_v60, %v2296_v60 }
 0xdc4   :  { %v2303_v33 = vsel %vm388_vm0, %v2299_v5, 0.0 }
 0xdc5   :  { %v2300_v4 = vsel %vm388_vm0, %v2298_v63, 0.0 }
 0xdc6   :  { %2301 = vadd.xlane.f32.xlu0 %v2300_v4 }
 0xdca   :  { %2304 = vadd.xlane.f32.xlu0 %v2303_v33 }
 0xe53   :  { %v2302_v32 = vpop.xlane.xlu0 %2301 }
 0xe54   :  { %v2306_v7 = vmul.f32 0.03125, %v2302_v32 }
 0xe56   :  { %v2308_v9 = vadd.f32 1e-05, %v2306_v7 }
 0xe57   :  { %v2305_v2 = vpop.xlane.xlu0 %2304 }
 0xe58   :  { %8741 = vrsqrt.f32 %v2308_v9  ;;  %v2307_v11 = vmul.f32 0.03125, %v2305_v2 }
 0xe5a   :  { %v2309_v15 = vadd.f32 1e-05, %v2307_v11 }
 0xe5c   :  { %8743 = vrsqrt.f32 %v2309_v15 }
 0xe62   :  { %v8742_v26 = vpop.eup %8741 }
 0xe63   :  { %v2312_v28 = vmul.f32 %v8742_v26, %v2296_v60 }
 0xe65   :  { %v2314_v29 = vmul.f32 %v2312_v28, %v9999_v25 }
 0xe66   :  { %v8744_v30 = vpop.eup %8743 }
 0xe67   :  { %v2313_v31 = vmul.f32 %v8744_v30, %v2297_v42  ;;  %v10006_v34 = vadd.f32 %v2314_v29, %v10002_v27 }
 0xe69   :  { %7935 = vmatprep.mubr.msk.f32.mxu0 %vm388_vm0, %v10006_v34  ;;  %v2315_v35 = vmul.f32 %v2313_v31, %v9999_v25 }
 0xe6b   :  { %v10012_v36 = vadd.f32 %v2315_v35, %v10002_v27 }
 0xe6d   :  { %7936 = vmatmul.mubr.msk.f32.vlgmr.msra.gmra.mrb[26].mxu0 %vm388_vm0, %v10012_v36 }
 0xe6e   :  { %8420 = vmatpush3.bf16.xpose.msk.msra.mxu0 %vm9972_vm6, %v9772_v59  ;;  %7949 = vmatprep.mubr.msk.f32.mxu0 %vm9301_vm2, %v9300_v39 }
 0xe6f   :  { %8424 = vmatprep.subr.bf16.mxu0 %v9314_v17 }
 0xf40   :  { %v7937_v62 = vpop.f32.mrb[26].mxu0 }
 0xf41   :  { %v10029_v41 = vadd.f32 %v7937_v62, %v10023_v38  ;;  %v2390_v45 = vpop.f32.mrb[27].mxu0 }
 0xf42   :  { %v10032_v47 = vadd.f32 %v2390_v45, %v10026_v57 }
 0xf43   :  { %7950 = vmatmul.mubr.msk.f32.vlgmr.msra.gmra.mrb[28].mxu0 %vm856_vm3, %v10029_v41 }
 0xf44   :  { %8426 = vmatpush3.bf16.msra.mxu0 %v9805_v20  ;;  %7943 = vmatmul.mubr.msk.f32.vlgmr.msra.gmra.mrb[22].mxu1 %vm856_vm3, %v10032_v47 }
 0xf45   :  { %8423 = vmatpush3.bf16.msra.mxu1 %v9801_v18  ;;  %7963 = vmatprep.mubr.msk.f32.mxu0 %vm9301_vm2, %v9300_v39 }
 0xf46   :  { %8431 = vmatprep.subr.bf16.mxu0 %v9314_v17  ;;  %7956 = vmatprep.mubr.msk.f32.mxu1 %vm9301_vm2, %v9300_v39 }
 0xf47   :  { %8427 = vmatprep.subr.bf16.mxu1 %v9314_v17 }
0x1016   :  { %v2553_v43 = vpop.f32.mrb[28].mxu0 }
0x1017   :  { %v2474_v44 = vpop.f32.mrb[22].mxu1  ;;  %v7951_v48 = vpop.f32.mrb[29].mxu0  ;;  %v2560_v49 = vsel %vm2198_vm4, %v2553_v43, -inf }
0x1018   :  { %2561 = vmax.xlane.f32.xlu0 %v2560_v49  ;;  %v7944_v50 = vpop.f32.mrb[23].mxu1  ;;  %v2557_v51 = vsel %vm2198_vm4, %v2474_v44, -inf }
0x1019   :  { %2558 = vmax.xlane.f32.xlu1 %v2557_v51 }
0x102a   :  { %8650 = vrot.lane.b32.xlu1 %v9768_v54, %s9305_s29 }
0x102e   :  { %2725 = vrot.lane.b32.xlu1 %v10032_v47, %s9305_s29 }
0x10a5   :  { %v2562_v53 = vpop.xlane.xlu0 %2561 }
0x10a6   :  { %v2564_v55 = vsub.f32 %v2553_v43, %v2562_v53  ;;  %v2559_v0 = vpop.xlane.xlu1 %2558 }
0x10a7   :  { %v2563_v56 = vsub.f32 %v2474_v44, %v2559_v0 }
0x10a8   :  { %v2567_v46 = vmul.f32 1.442695, %v2564_v55 }
0x10a9   :  { %v2565_v42 = vmul.f32 1.442695, %v2563_v56 }
0x10aa   :  { %8745 = vpow2.f32 %v2567_v46  ;;  %v8651_v33 = vpop.permute.xlu1 %8650 }
0x10ab   :  { %8747 = vpow2.f32 %v2565_v42  ;;  %v8653_v15 = vunpack.i.h.bf16 %v8651_v33  ;;  %v8652_v22 = vunpack.i.l.bf16 %v8651_v33 }
0x10ad   :  { %v10060_v35 = vpack.c.bf16 %v8653_v15, %v8652_v22 }
0x10ae   :  { %v2726_v32 = vpop.permute.xlu1 %2725 }
0x10b4   :  { %v8746_v60 = vpop.eup %8745 }
0x10b5   :  { %v8748_v63 = vpop.eup %8747  ;;  %v2572_v4 = vsel %vm2198_vm4, %v8746_v60, 0.0 }
0x10b6   :  { %2573 = vadd.xlane.f32.xlu0 %v2572_v4  ;;  %v2569_v5 = vsel %vm2198_vm4, %v8748_v63, 0.0 }
0x10b7   :  { %2570 = vadd.xlane.f32.xlu1 %v2569_v5 }
0x10c8   :  { %2807 = vrot.lane.b32.xlu1 %v10029_v41, %s9305_s29 }
0x10cc   :  { %8655 = vrot.lane.b32.xlu0 %v9774_v61, %s9305_s29 }
0x1143   :  { %v2574_v7 = vpop.xlane.xlu0 %2573 }
0x1144   :  { %8749 = vrcp.f32 %v2574_v7  ;;  %v2571_v8 = vpop.xlane.xlu1 %2570 }
0x1145   :  { %8751 = vrcp.f32 %v2571_v8 }
0x1147   :  { %v8656_v9 = vpop.permute.xlu0 %8655 }
0x1148   :  { %v8658_v2 = vunpack.i.h.bf16 %v8656_v9  ;;  %v8657_v11 = vunpack.i.l.bf16 %v8656_v9  ;;  %v2808_v37 = vpop.permute.xlu1 %2807 }
0x114a   :  { %v10058_v30 = vpack.c.bf16 %v8658_v2, %v8657_v11 }
0x114e   :  { %v8750_v26 = vpop.eup %8749 }
0x114f   :  { %v8752_v28 = vpop.eup %8751  ;;  %v2578_v29 = vmul.f32 %v8750_v26, %v8746_v60 }
0x1150   :  { %v2577_v31 = vmul.f32 %v8752_v28, %v8748_v63 }
0x1151   :  { %7964 = vmatmul.mubr.msk.f32.vlgmr.msra.gmra.mrb[30].mxu0 %vm2198_vm4, %v2578_v29 }
0x1152   :  { %8434 = vmatpush3.bf16.xpose.msk.msra.mxu0 %vm9972_vm6, %v10058_v30  ;;  %7957 = vmatmul.mubr.msk.f32.vlgmr.msra.gmra.mrb[24].mxu1 %vm2198_vm4, %v2577_v31 }
0x1153   :  { %8430 = vmatpush3.bf16.xpose.msk.msra.mxu1 %vm9972_vm6, %v10060_v35  ;;  %7977 = vmatprep.mubr.msk.f32.mxu0 %vm9301_vm2, %v9300_v39 }
0x1154   :  { %7970 = vmatprep.mubr.msk.f32.mxu1 %vm9301_vm2, %v9300_v39  ;;  %8435 = vmatprep.subr.bf16.mxu1 %v9314_v17 }
0x1155   :  { %8438 = vmatprep.subr.bf16.mxu0 %v9314_v17 }
0x1159   :  { %7978 = vmatmul.mubr.msk.f32.vlgmr.msra.gmra.mrb[32].mxu0 %vm856_vm3, %v2808_v37 }
0x115a   :  { %7971 = vmatmul.mubr.msk.f32.vlgmr.msra.gmra.mrb[26].mxu1 %vm856_vm3, %v2726_v32  ;;  %7991 = vmatprep.mubr.msk.f32.mxu0 %vm9301_vm2, %v9300_v39 }
0x115b   :  { %7984 = vmatprep.mubr.msk.f32.mxu1 %vm9301_vm2, %v9300_v39 }
0x1224   :  { %v10082_v62 = vpop.f32.mrb[30].mxu0 }
0x1225   :  { %v10084_v45 = vpop.f32.mrb[24].mxu1  ;;  %v7965_v43 = vpop.f32.mrb[31].mxu0 }
0x1226   :  { %v7958_v44 = vpop.f32.mrb[25].mxu1 }
0x122c   :  { %v2885_v48 = vpop.f32.mrb[32].mxu0 }
0x122d   :  { %v2803_v49 = vpop.f32.mrb[26].mxu1  ;;  %v7979_v50 = vpop.f32.mrb[33].mxu0  ;;  %v2892_v51 = vsel %vm2198_vm4, %v2885_v48, -inf }
0x122e   :  { %2893 = vmax.xlane.f32.xlu1 %v2892_v51  ;;  %v7972_v53 = vpop.f32.mrb[27].mxu1  ;;  %v2889_v55 = vsel %vm2198_vm4, %v2803_v49, -inf }
0x122f   :  { %2890 = vmax.xlane.f32.xlu0 %v2889_v55 }
0x123f   :  { %8660 = vrot.lane.b32.xlu1 %v9803_v19, %s9305_s29 }
0x1243   :  { %8670 = vrot.lane.b32.xlu1 %v9768_v54, %s9308_s4 }
0x1247   :  { %8675 = vrot.lane.b32.xlu1 %v9774_v61, %s9308_s4 }
0x124b   :  { %3155 = vrot.lane.b32.xlu1 %v10029_v41, %s9308_s4 }
0x12bb   :  { %v2894_v0 = vpop.xlane.xlu1 %2893 }
0x12bc   :  { %v2896_v56 = vsub.f32 %v2885_v48, %v2894_v0  ;;  %v2891_v46 = vpop.xlane.xlu0 %2890 }
0x12bd   :  { %v2895_v42 = vsub.f32 %v2803_v49, %v2891_v46 }
0x12be   :  { %v2899_v60 = vmul.f32 1.442695, %v2896_v56 }
0x12bf   :  { %v2897_v63 = vmul.f32 1.442695, %v2895_v42  ;;  %v8661_v4 = vpop.permute.xlu1 %8660 }
0x12c0   :  { %8753 = vpow2.f32 %v2899_v60  ;;  %v8663_v5 = vunpack.i.h.bf16 %v8661_v4  ;;  %v8662_v33 = vunpack.i.l.bf16 %v8661_v4 }
0x12c1   :  { %8755 = vpow2.f32 %v2897_v63 }
0x12c2   :  { %v10096_v32 = vpack.c.bf16 %v8663_v5, %v8662_v33 }
0x12c3   :  { %v8671_v22 = vpop.permute.xlu1 %8670 }
0x12c4   :  { %8437 = vmatpush3.bf16.msra.mxu1 %v10096_v32  ;;  %v8673_v43 = vunpack.i.h.bf16 %v8671_v22  ;;  %v8672_v44 = vunpack.i.l.bf16 %v8671_v22 }
0x12c5   :  { %8441 = vmatprep.subr.bf16.mxu1 %v9314_v17 }
0x12c6   :  { %v10111_v0 = vpack.c.bf16 %v8673_v43, %v8672_v44 }
0x12c7   :  { %v8676_v48 = vpop.permute.xlu1 %8675 }
0x12c8   :  { %v8678_v51 = vunpack.i.h.bf16 %v8676_v48  ;;  %v8677_v53 = vunpack.i.l.bf16 %v8676_v48 }
0x12ca   :  { %v8754_v7 = vpop.eup %8753  ;;  %v10121_v56 = vpack.c.bf16 %v8678_v51, %v8677_v53 }
0x12cb   :  { %v2904_v8 = vsel %vm2198_vm4, %v8754_v7, 0.0  ;;  %v8756_v9 = vpop.eup %8755  ;;  %v3156_v42 = vpop.permute.xlu1 %3155 }
0x12cc   :  { %2905 = vadd.xlane.f32.xlu0 %v2904_v8  ;;  %v2901_v2 = vsel %vm2198_vm4, %v8756_v9, 0.0 }
0x12d0   :  { %2902 = vadd.xlane.f32.xlu0 %v2901_v2 }
0x12e6   :  { %8665 = vrot.lane.b32.xlu0 %v9807_v21, %s9305_s29 }
0x12ea   :  { %3073 = vrot.lane.b32.xlu0 %v10032_v47, %s9308_s4 }
0x1359   :  { %v2906_v11 = vpop.xlane.xlu0 %2905 }
0x135a   :  { %8757 = vrcp.f32 %v2906_v11 }
0x135d   :  { %v2903_v15 = vpop.xlane.xlu0 %2902 }
0x135e   :  { %8759 = vrcp.f32 %v2903_v15 }
0x1361   :  { %v8666_v26 = vpop.permute.xlu0 %8665 }
0x1362   :  { %v8668_v28 = vunpack.i.h.bf16 %v8666_v26  ;;  %v8667_v29 = vunpack.i.l.bf16 %v8666_v26 }
0x1364   :  { %v8758_v31 = vpop.eup %8757  ;;  %v10106_v37 = vpack.c.bf16 %v8668_v28, %v8667_v29 }
0x1365   :  { %v2910_v49 = vmul.f32 %v8758_v31, %v8754_v7  ;;  %v3074_v46 = vpop.permute.xlu0 %3073 }
0x1366   :  { %8440 = vmatpush3.bf16.msra.mxu0 %v10106_v37 }
0x1367   :  { %8445 = vmatprep.subr.bf16.mxu0 %v9314_v17 }
0x1368   :  { %v8760_v50 = vpop.eup %8759 }
0x1369   :  { %7992 = vmatmul.mubr.msk.f32.vlgmr.msra.gmra.mrb[34].mxu0 %vm2198_vm4, %v2910_v49  ;;  %v2909_v55 = vmul.f32 %v8760_v50, %v8756_v9 }
0x136a   :  { %8005 = vmatprep.mubr.msk.f32.mxu0 %vm9301_vm2, %v9300_v39 }
0x136b   :  { %7985 = vmatmul.mubr.msk.f32.vlgmr.msra.gmra.mrb[28].mxu1 %vm2198_vm4, %v2909_v55 }
0x136c   :  { %8444 = vmatpush3.bf16.xpose.msk.msra.mxu1 %vm9972_vm6, %v10111_v0  ;;  %7998 = vmatprep.mubr.msk.f32.mxu1 %vm9301_vm2, %v9300_v39 }
0x136d   :  { %8449 = vmatprep.subr.bf16.mxu1 %v9314_v17 }
0x136f   :  { %8448 = vmatpush3.bf16.xpose.msk.msra.mxu0 %vm9972_vm6, %v10121_v56 }
0x1370   :  { %8452 = vmatprep.subr.bf16.mxu0 %v9314_v17 }
0x1373   :  { %7999 = vmatmul.mubr.msk.f32.vlgmr.msra.gmra.mrb[30].mxu1 %vm856_vm3, %v3074_v46 }
0x1374   :  { %8012 = vmatprep.mubr.msk.f32.mxu1 %vm9301_vm2, %v9300_v39 }
0x1376   :  { %8006 = vmatmul.mubr.msk.f32.vlgmr.msra.gmra.mrb[36].mxu0 %vm856_vm3, %v3156_v42 }
0x1377   :  { %8019 = vmatprep.mubr.msk.f32.mxu0 %vm9301_vm2, %v9300_v39 }
0x143c   :  { %v10134_v60 = vpop.f32.mrb[34].mxu0 }
0x143d   :  { %v7993_v63 = vpop.f32.mrb[35].mxu0 }
0x143e   :  { %v10136_v4 = vpop.f32.mrb[28].mxu1 }
0x143f   :  { %v7986_v5 = vpop.f32.mrb[29].mxu1 }
0x1446   :  { %v3151_v33 = vpop.f32.mrb[30].mxu1 }
0x1447   :  { %v8000_v7 = vpop.f32.mrb[31].mxu1  ;;  %v3237_v8 = vsel %vm2198_vm4, %v3151_v33, -inf }
0x1448   :  { %3238 = vmax.xlane.f32.xlu0 %v3237_v8 }
0x1449   :  { %v3233_v9 = vpop.f32.mrb[36].mxu0 }
0x144a   :  { %v8007_v2 = vpop.f32.mrb[37].mxu0  ;;  %v3240_v11 = vsel %vm2198_vm4, %v3233_v9, -inf }
0x144b   :  { %3241 = vmax.xlane.f32.xlu1 %v3240_v11 }
0x145c   :  { %8680 = vrot.lane.b32.xlu1 %v9803_v19, %s9308_s4 }
0x1460   :  { %8690 = vrot.lane.b32.xlu1 %v9768_v54, %s9311_s24 }
0x1464   :  { %8695 = vrot.lane.b32.xlu1 %v9774_v61, %s9311_s24 }
0x1468   :  { %3499 = vrot.lane.b32.xlu1 %v10029_v41, %s9311_s24 }
0x14d5   :  { %v3239_v15 = vpop.xlane.xlu0 %3238 }
0x14d6   :  { %v3243_v22 = vsub.f32 %v3151_v33, %v3239_v15 }
0x14d8   :  { %v3242_v26 = vpop.xlane.xlu1 %3241  ;;  %v3245_v29 = vmul.f32 1.442695, %v3243_v22 }
0x14d9   :  { %v3244_v28 = vsub.f32 %v3233_v9, %v3242_v26 }
0x14db   :  { %v3247_v31 = vmul.f32 1.442695, %v3244_v28 }
0x14dc   :  { %v8681_v43 = vpop.permute.xlu1 %8680 }
0x14dd   :  { %8761 = vpow2.f32 %v3247_v31  ;;  %v8683_v44 = vunpack.i.h.bf16 %v8681_v43  ;;  %v8682_v48 = vunpack.i.l.bf16 %v8681_v43 }
0x14de   :  { %8763 = vpow2.f32 %v3245_v29 }
0x14df   :  { %v10148_v49 = vpack.c.bf16 %v8683_v44, %v8682_v48 }
0x14e0   :  { %v8691_v55 = vpop.permute.xlu1 %8690 }
0x14e1   :  { %8451 = vmatpush3.bf16.msra.mxu1 %v10148_v49  ;;  %v8693_v7 = vunpack.i.h.bf16 %v8691_v55  ;;  %v8692_v8 = vunpack.i.l.bf16 %v8691_v55 }
0x14e2   :  { %8455 = vmatprep.subr.bf16.mxu1 %v9314_v17 }
0x14e3   :  { %v10163_v26 = vpack.c.bf16 %v8693_v7, %v8692_v8 }
0x14e4   :  { %v8696_v9 = vpop.permute.xlu1 %8695 }
0x14e5   :  { %v8698_v11 = vunpack.i.h.bf16 %v8696_v9  ;;  %v8697_v15 = vunpack.i.l.bf16 %v8696_v9 }
0x14e7   :  { %v8762_v54 = vpop.eup %8761  ;;  %v10173_v28 = vpack.c.bf16 %v8698_v11, %v8697_v15 }
0x14e8   :  { %v3252_v61 = vsel %vm2198_vm4, %v8762_v54, 0.0  ;;  %v8764_v41 = vpop.eup %8763  ;;  %v3500_v31 = vpop.permute.xlu1 %3499 }
0x14e9   :  { %3253 = vadd.xlane.f32.xlu0 %v3252_v61  ;;  %v3249_v50 = vsel %vm2198_vm4, %v8764_v41, 0.0 }
0x14ed   :  { %3250 = vadd.xlane.f32.xlu0 %v3249_v50 }
0x1503   :  { %8685 = vrot.lane.b32.xlu0 %v9807_v21, %s9308_s4 }
0x1507   :  { %3417 = vrot.lane.b32.xlu0 %v10032_v47, %s9311_s24 }
0x1576   :  { %v3254_v51 = vpop.xlane.xlu0 %3253 }
0x1577   :  { %8765 = vrcp.f32 %v3254_v51 }
0x157a   :  { %v3251_v53 = vpop.xlane.xlu0 %3250 }
0x157b   :  { %8767 = vrcp.f32 %v3251_v53 }
0x157e   :  { %v8686_v46 = vpop.permute.xlu0 %8685 }
0x157f   :  { %v8688_v42 = vunpack.i.h.bf16 %v8686_v46  ;;  %v8687_v63 = vunpack.i.l.bf16 %v8686_v46 }
0x1581   :  { %v8766_v5 = vpop.eup %8765  ;;  %v10158_v33 = vpack.c.bf16 %v8688_v42, %v8687_v63 }
0x1582   :  { %v3258_v2 = vmul.f32 %v8766_v5, %v8762_v54  ;;  %v3418_v29 = vpop.permute.xlu0 %3417 }
0x1583   :  { %8454 = vmatpush3.bf16.msra.mxu0 %v10158_v33 }
0x1584   :  { %8459 = vmatprep.subr.bf16.mxu0 %v9314_v17 }
0x1585   :  { %v8768_v47 = vpop.eup %8767 }
0x1586   :  { %8020 = vmatmul.mubr.msk.f32.vlgmr.msra.gmra.mrb[38].mxu0 %vm2198_vm4, %v3258_v2  ;;  %v3257_v22 = vmul.f32 %v8768_v47, %v8764_v41 }
0x1587   :  { %8033 = vmatprep.mubr.msk.f32.mxu0 %vm9301_vm2, %v9300_v39 }
0x1588   :  { %8013 = vmatmul.mubr.msk.f32.vlgmr.msra.gmra.mrb[32].mxu1 %vm2198_vm4, %v3257_v22 }
0x1589   :  { %8458 = vmatpush3.bf16.xpose.msk.msra.mxu1 %vm9972_vm6, %v10163_v26  ;;  %8026 = vmatprep.mubr.msk.f32.mxu1 %vm9301_vm2, %v9300_v39 }
0x158a   :  { %8463 = vmatprep.subr.bf16.mxu1 %v9314_v17 }
0x158c   :  { %8462 = vmatpush3.bf16.xpose.msk.msra.mxu0 %vm9972_vm6, %v10173_v28 }
0x158d   :  { %8466 = vmatprep.subr.bf16.mxu0 %v9314_v17 }
0x1590   :  { %8027 = vmatmul.mubr.msk.f32.vlgmr.msra.gmra.mrb[34].mxu1 %vm856_vm3, %v3418_v29 }
0x1591   :  { %8040 = vmatprep.mubr.msk.f32.mxu1 %vm9301_vm2, %v9300_v39 }
0x1593   :  { %8034 = vmatmul.mubr.msk.f32.vlgmr.msra.gmra.mrb[40].mxu0 %vm856_vm3, %v3500_v31 }
0x1594   :  { %8047 = vmatprep.mubr.msk.f32.mxu0 %vm9301_vm2, %v9300_v39 }
0x1659   :  { %v3413_v43 = vpop.f32.mrb[38].mxu0 }
0x165a   :  { %v8021_v44 = vpop.f32.mrb[39].mxu0 }
0x165b   :  { %v3334_v48 = vpop.f32.mrb[32].mxu1 }
0x165c   :  { %v8014_v54 = vpop.f32.mrb[33].mxu1 }
0x1663   :  { %v3495_v61 = vpop.f32.mrb[34].mxu1 }
0x1664   :  { %v8028_v41 = vpop.f32.mrb[35].mxu1  ;;  %v3581_v50 = vsel %vm2198_vm4, %v3495_v61, -inf }
0x1665   :  { %3582 = vmax.xlane.f32.xlu0 %v3581_v50 }
0x1666   :  { %v3577_v51 = vpop.f32.mrb[40].mxu0 }
0x1667   :  { %v8035_v53 = vpop.f32.mrb[41].mxu0  ;;  %v3584_v55 = vsel %vm2198_vm4, %v3577_v51, -inf }
0x1668   :  { %3585 = vmax.xlane.f32.xlu1 %v3584_v55  ;;  %v321_v55 = vld [vmem:[#allocation19 + $0x10] sm:$0xff] }
0x1679   :  { %8700 = vrot.lane.b32.xlu1 %v9803_v19, %s9311_s24 }
0x167d   :  { %3763 = vrot.lane.b32.xlu1 %v10136_v4, %s9284_s27 }
0x1681   :  { %3765 = vrot.lane.b32.xlu1 %v10134_v60, %s9284_s27 }
0x1685   :  { %3773 = vrot.lane.b32.xlu1 %v3413_v43, %s9313_s2 }
0x16f2   :  { %v3583_v46 = vpop.xlane.xlu0 %3582 }
0x16f3   :  { %v3587_v42 = vsub.f32 %v3495_v61, %v3583_v46  ;;  %v322_v46 = vld [vmem:[#allocation19 + $0x18] sm:$0xff] }
0x16f5   :  { %v3586_v63 = vpop.xlane.xlu1 %3585  ;;  %v3589_v7 = vmul.f32 1.442695, %v3587_v42  ;;  %v10212_v42 = vpack.c.bf16 %v322_v46, %v321_v55 }
0x16f6   :  { %v3588_v5 = vsub.f32 %v3577_v51, %v3586_v63 }
0x16f8   :  { %v3591_v8 = vmul.f32 1.442695, %v3588_v5 }
0x16f9   :  { %v8701_v9 = vpop.permute.xlu1 %8700 }
0x16fa   :  { %8769 = vpow2.f32 %v3591_v8  ;;  %v8703_v2 = vunpack.i.h.bf16 %v8701_v9  ;;  %v8702_v47 = vunpack.i.l.bf16 %v8701_v9 }
0x16fb   :  { %8771 = vpow2.f32 %v3589_v7 }
0x16fc   :  { %v10195_v19 = vpack.c.bf16 %v8703_v2, %v8702_v47 }
0x16fd   :  { %v3764_v9 = vpop.permute.xlu1 %3763 }
0x16fe   :  { %8465 = vmatpush3.bf16.msra.mxu1 %v10195_v19 }
0x1701   :  { %v3766_v2 = vpop.permute.xlu1 %3765 }
0x1704   :  { %v8770_v4 = vpop.eup %8769 }
0x1705   :  { %v3596_v60 = vsel %vm2198_vm4, %v8770_v4, 0.0  ;;  %v8772_v11 = vpop.eup %8771  ;;  %v3774_v47 = vpop.permute.xlu1 %3773 }
0x1706   :  { %3597 = vadd.xlane.f32.xlu0 %v3596_v60  ;;  %v3593_v15 = vsel %vm2198_vm4, %v8772_v11, 0.0  ;;  %v3785_v60 = vsel %vm856_vm3, %v10084_v45, %v3764_v9 }
0x170a   :  { %3594 = vadd.xlane.f32.xlu0 %v3593_v15  ;;  %v3786_v15 = vsel %vm856_vm3, %v10082_v62, %v3766_v2 }
0x1720   :  { %8705 = vrot.lane.b32.xlu0 %v9807_v21, %s9311_s24  ;;  %v319_v21 = vld [vmem:[#allocation19] sm:$0xff] }
0x1724   :  { %3771 = vrot.lane.b32.xlu0 %v3334_v48, %s9313_s2  ;;  %v320_v48 = vld [vmem:[#allocation19 + $0x8] sm:$0xff] }
0x1725   :  { %v10208_v53 = vpack.c.bf16 %v320_v48, %v319_v21 }
0x1727   :  { %8470 = vmatprep.subr.bf16.mxu1 %v10208_v53 }
0x1793   :  { %v3598_v22 = vpop.xlane.xlu0 %3597 }
0x1794   :  { %8773 = vrcp.f32 %v3598_v22 }
0x1797   :  { %v3595_v29 = vpop.xlane.xlu0 %3594 }
0x1798   :  { %8775 = vrcp.f32 %v3595_v29 }
0x179b   :  { %v8706_v31 = vpop.permute.xlu0 %8705 }
0x179c   :  { %v8708_v43 = vunpack.i.h.bf16 %v8706_v31  ;;  %v8707_v44 = vunpack.i.l.bf16 %v8706_v31  ;;  %v3788_v31 = vsel %vm2198_vm4, %v3786_v15, %v3774_v47  ;;  %v326_v15 = vld [vmem:[#allocation22 + $0x10] sm:$0xff] }
0x179e   :  { %v8774_v54 = vpop.eup %8773  ;;  %v10203_v61 = vpack.c.bf16 %v8708_v43, %v8707_v44 }
0x179f   :  { %v3602_v41 = vmul.f32 %v8774_v54, %v8770_v4  ;;  %v3772_v4 = vpop.permute.xlu0 %3771  ;;  %v7352_v54 = vld [vmem:[#allocation20] ss:$0 sm:$0xff] }
0x17a0   :  { %8468 = vmatpush3.bf16.msra.mxu0 %v10203_v61  ;;  %v3787_v22 = vsel %vm2198_vm4, %v3785_v60, %v3772_v4  ;;  %v325_v60 = vld [vmem:[#allocation22 + $0x8] sm:$0xff] }
0x17a2   :  { %v8776_v50 = vpop.eup %8775 }
0x17a3   :  { %8048 = vmatmul.mubr.msk.f32.vlgmr.msra.gmra.mrb[42].mxu0 %vm2198_vm4, %v3602_v41  ;;  %v3601_v51 = vmul.f32 %v8776_v50, %v8772_v11 }
0x17a5   :  { %8041 = vmatmul.mubr.msk.f32.vlgmr.msra.gmra.mrb[36].mxu1 %vm2198_vm4, %v3601_v51 }
0x17a6   :  { %8472 = vmatpush3.bf16.msra.mxu1 %v10208_v53 }
0x17a7   :  { %8474 = vmatprep.subr.bf16.mxu1 %v10212_v42 }
0x17aa   :  { %8476 = vmatpush3.bf16.msra.mxu1 %v10212_v42 }
0x1876   :  { %v3757_v63 = vpop.f32.mrb[42].mxu0 }
0x1877   :  { %3781 = vrot.lane.b32.xlu1 %v3757_v63, %s9315_s9  ;;  %v8049_v5 = vpop.f32.mrb[43].mxu0 }
0x1878   :  { %v3678_v7 = vpop.f32.mrb[36].mxu1 }
0x1879   :  { %3779 = vrot.lane.b32.xlu0 %v3678_v7, %s9315_s9  ;;  %v8042_v8 = vpop.f32.mrb[37].mxu1 }
0x18e9   :  { %v3782_v11 = vpop.permute.xlu1 %3781 }
0x18ea   :  { %v3790_v44 = vsel %vm2201_vm5, %v3788_v31, %v3782_v11  ;;  %v329_v31 = vld [vmem:[%s10747_s18] sm:$0xff] }
0x18eb   :  { %v3780_v29 = vpop.permute.xlu0 %3779 }
0x18ec   :  { %v3789_v43 = vsel %vm2201_vm5, %v3787_v22, %v3780_v29  ;;  %v327_v22 = vld [vmem:[#allocation22 + $0x18] sm:$0xff] }
0x18ed   :  { %8058 = vmatprep.mubr.msk.f32.mxu1 %vm388_vm0, %v3789_v43  ;;  %v10238_v29 = vpack.c.bf16 %v327_v22, %v326_v15  ;;  %v330_v43 = vld [vmem:[%s10747_s18 + $0x8] sm:$0xff] }
0x18ee   :  { %8059 = vmatmul.mubr.msk.f32.vlgmr.msra.gmra.mrb[38].mxu1 %vm388_vm0, %v3790_v44  ;;  %v331_v44 = vld [vmem:[%s10747_s18 + $0x10] sm:$0xff] }
0x19c1   :  { %v8060_v41 = vpop.f32.mrb[38].mxu1 }
0x19c2   :  { %v3869_v45 = vadd.f32 %v8060_v41, %v7352_v54  ;;  %v3863_v50 = vpop.f32.mrb[39].mxu1  ;;  %v332_v41 = vld [vmem:[%s10747_s18 + $0x18] sm:$0xff] }
0x19c3   :  { %v3864_v51 = vadd.f32 %v7352_v54, %v3863_v50  ;;  %v10252_v54 = vpack.c.bf16 %v330_v43, %v329_v31  ;;  %v333_v50 = vld [vmem:[%s10747_s18 + $0x20] sm:$0xff] }
0x19c4   :  { %v3873_v62 = vadd.f32 %v3869_v45, %v10012_v36  ;;  %v10257_v45 = vpack.c.bf16 %v332_v41, %v331_v44 }
0x19c5   :  { %v3872_v21 = vadd.f32 %v3864_v51, %v10006_v34  ;;  %v324_v34 = vld [vmem:[#allocation22] sm:$0xff]  ;;  %8486 = vmatprep.subr.bf16.mxu1 %v10252_v54 }
0x19c6   :  { %v3877_v48 = vsel %vm388_vm0, %v3873_v62, 0.0  ;;  %v10234_v11 = vpack.c.bf16 %v325_v60, %v324_v34  ;;  %v334_v51 = vld [vmem:[%s10747_s18 + $0x28] sm:$0xff]  ;;  %8488 = vmatpush3.bf16.msra.mxu1 %v10252_v54 }
0x19c7   :  { %3878 = vadd.xlane.f32.xlu1 %v3877_v48  ;;  %v3874_v55 = vsel %vm388_vm0, %v3872_v21, 0.0  ;;  %8490 = vmatprep.subr.bf16.mxu1 %v10257_v45 }
0x19c8   :  { %3875 = vadd.xlane.f32.xlu0 %v3874_v55  ;;  %8478 = vmatprep.subr.bf16.mxu0 %v10234_v11 }
0x19c9   :  { %8480 = vmatpush3.bf16.msra.mxu0 %v10234_v11 }
0x19ca   :  { %8482 = vmatprep.subr.bf16.mxu0 %v10238_v29  ;;  %8492 = vmatpush3.bf16.msra.mxu1 %v10257_v45 }
0x19cd   :  { %8484 = vmatpush3.bf16.msra.mxu0 %v10238_v29 }
0x19ce   :  { %8502 = vmatprep.subr.bf16.mxu0 %v9688_v3 }
0x1a54   :  { %v3879_v46 = vpop.xlane.xlu1 %3878 }
0x1a55   :  { %v3881_v63 = vmul.f32 0.03125, %v3879_v46  ;;  %v3876_v5 = vpop.xlane.xlu0 %3875 }
0x1a56   :  { %v3880_v7 = vmul.f32 0.03125, %v3876_v5 }
0x1a57   :  { %v3883_v8 = vsub.f32 %v3873_v62, %v3881_v63  ;;  %v10268_v62 = vpack.c.bf16 %v334_v51, %v333_v50 }
0x1a58   :  { %v3882_v9 = vsub.f32 %v3872_v21, %v3880_v7  ;;  %v370_v7 = vsub.s32 1, %v9991_v12 }
0x1a59   :  { %v3885_v4 = vmul.f32 %v3883_v8, %v3883_v8  ;;  %8494 = vmatprep.subr.bf16.mxu1 %v10268_v62 }
0x1a5a   :  { %v3884_v2 = vmul.f32 %v3882_v9, %v3882_v9  ;;  %8496 = vmatpush3.bf16.msra.mxu1 %v10268_v62 }
0x1a5b   :  { %v3889_v36 = vsel %vm388_vm0, %v3885_v4, 0.0  ;;  %v10278_v4 = vrot.slane %v9996_v24, %v370_v7 }
0x1a5c   :  { %v3886_v47 = vsel %vm388_vm0, %v3884_v2, 0.0  ;;  %v10275_v2 = vrot.slane %v9994_v23, %v370_v7 }
0x1a5d   :  { %3887 = vadd.xlane.f32.xlu0 %v3886_v47 }
0x1a61   :  { %3890 = vadd.xlane.f32.xlu0 %v3889_v36 }
0x1aea   :  { %v3888_v21 = vpop.xlane.xlu0 %3887 }
0x1aeb   :  { %v3892_v48 = vmul.f32 0.03125, %v3888_v21 }
0x1aed   :  { %v3894_v55 = vadd.f32 1e-05, %v3892_v48 }
0x1aee   :  { %v3891_v46 = vpop.xlane.xlu0 %3890 }
0x1aef   :  { %8777 = vrsqrt.f32 %v3894_v55  ;;  %v3893_v63 = vmul.f32 0.03125, %v3891_v46  ;;  %v7354_v55 = vld [vmem:[#allocation25] ss:$0 sm:$0xff] }
0x1af1   :  { %v3895_v5 = vadd.f32 1e-05, %v3893_v63 }
0x1af3   :  { %8779 = vrsqrt.f32 %v3895_v5 }
0x1af9   :  { %v8778_v47 = vpop.eup %8777 }
0x1afa   :  { %v3898_v36 = vmul.f32 %v8778_v47, %v3882_v9  ;;  %v336_v9 = vld [vmem:[%s10747_s18 + $0x38] sm:$0xff] }
0x1afc   :  { %v3900_v34 = vmul.f32 %v3898_v36, %v10275_v2 }
0x1afd   :  { %v8780_v60 = vpop.eup %8779 }
0x1afe   :  { %v3899_v15 = vmul.f32 %v8780_v60, %v3883_v8  ;;  %v3902_v22 = vadd.f32 %v3900_v34, %v10278_v4  ;;  %v335_v8 = vld [vmem:[%s10747_s18 + $0x30] sm:$0xff]  ;;  %s9316_s18 = smov [#allocation29]  }
0x1aff   :  { %v10296_v44 = vpack.c.bf16 %v336_v9, %v335_v8 }
0x1b00   :  { %8069 = vmatprep.mubr.msk.f32.mxu0 %vm388_vm0, %v3902_v22  ;;  %v3901_v31 = vmul.f32 %v3899_v15, %v10275_v2 }
0x1b01   :  { %8498 = vmatprep.subr.bf16.mxu1 %v10296_v44 }
0x1b02   :  { %v3903_v43 = vadd.f32 %v3901_v31, %v10278_v4  ;;  %8500 = vmatpush3.bf16.msra.mxu1 %v10296_v44 }
0x1b03   :  { %8112 = vmatprep.subr.mxu1 %v9300_v39 }
0x1b04   :  { %8070 = vmatmul.mubr.msk.f32.vlgmr.msra.gmra.mrb[44].mxu0 %vm388_vm0, %v3903_v43 }
0x1b05   :  { %8504 = vmatpush3.bf16.msra.mxu0 %v9688_v3  ;;  %v7353_v3 = vld [vmem:[#allocation23] ss:$0 sm:$0xff] }
0x1b06   :  { %8506 = vmatprep.subr.bf16.mxu0 %v9693_v6 }
0x1b09   :  { %8508 = vmatpush3.bf16.msra.mxu0 %v9693_v6 }
0x1b0a   :  { %8102 = vmatprep.subr.mxu0 %v9300_v39 }
0x1bd7   :  { %v8071_v6 = vpop.f32.mrb[44].mxu0 }
0x1bd8   :  { %v3982_v41 = vadd.f32 %v8071_v6, %v7353_v3  ;;  %v3976_v50 = vpop.f32.mrb[45].mxu0 }
0x1bd9   :  { %v3977_v51 = vadd.f32 %v7353_v3, %v3976_v50 }
0x1bda   :  { %v3986_v48 = vmax.f32 %v3982_v41, 0.0 }
0x1bdb   :  { %v3985_v21 = vmax.f32 %v3977_v51, 0.0 }
0x1bdd   :  { %8088 = vmatprep.mubr.msk.f32.mxu1 %vm470_vm1, %v3985_v21 }
0x1bde   :  { %8089 = vmatmul.mubr.msk.f32.vlgmr.msra.gmra.mrb[40].mxu1 %vm470_vm1, %v3986_v48 }
0x1bdf   :  { %8114 = vmatprep.mubr.msk.f32.mxu1 %vm9301_vm2, %v9300_v39 }
0x1cb1   :  { %v8090_v46 = vpop.f32.mrb[40].mxu1 }
0x1cb2   :  { %v4065_v63 = vadd.f32 %v8090_v46, %v7354_v55  ;;  %v4059_v5 = vpop.f32.mrb[41].mxu1 }
0x1cb3   :  { %v4060_v7 = vadd.f32 %v7354_v55, %v4059_v5  ;;  %v374_v5 = vsub.s32 2, %v9991_v12 }
0x1cb4   :  { %v4069_v47 = vadd.f32 %v4065_v63, %v3903_v43 }
0x1cb5   :  { %v4068_v36 = vadd.f32 %v4060_v7, %v3902_v22  ;;  %v10311_v7 = vrot.slane %v9994_v23, %v374_v5 }
0x1cb6   :  { %v4073_v34 = vsel %vm388_vm0, %v4069_v47, 0.0 }
0x1cb7   :  { %4074 = vadd.xlane.f32.xlu0 %v4073_v34  ;;  %v4070_v60 = vsel %vm388_vm0, %v4068_v36, 0.0 }
0x1cb8   :  { %4071 = vadd.xlane.f32.xlu1 %v4070_v60  ;;  %v10314_v60 = vrot.slane %v9996_v24, %v374_v5 }
0x1d44   :  { %v4075_v15 = vpop.xlane.xlu0 %4074 }
0x1d45   :  { %v4077_v31 = vmul.f32 0.03125, %v4075_v15  ;;  %v4072_v8 = vpop.xlane.xlu1 %4071 }
0x1d46   :  { %v4076_v9 = vmul.f32 0.03125, %v4072_v8 }
0x1d47   :  { %v4079_v3 = vsub.f32 %v4069_v47, %v4077_v31 }
0x1d48   :  { %v4078_v6 = vsub.f32 %v4068_v36, %v4076_v9 }
0x1d49   :  { %v4081_v41 = vmul.f32 %v4079_v3, %v4079_v3 }
0x1d4a   :  { %v4080_v50 = vmul.f32 %v4078_v6, %v4078_v6 }
0x1d4b   :  { %v4085_v51 = vsel %vm388_vm0, %v4081_v41, 0.0 }
0x1d4c   :  { %4086 = vadd.xlane.f32.xlu0 %v4085_v51  ;;  %v4082_v43 = vsel %vm388_vm0, %v4080_v50, 0.0 }
0x1d4d   :  { %4083 = vadd.xlane.f32.xlu1 %v4082_v43 }
0x1dd9   :  { %v4087_v22 = vpop.xlane.xlu0 %4086 }
0x1dda   :  { %v4089_v21 = vmul.f32 0.03125, %v4087_v22  ;;  %v4084_v48 = vpop.xlane.xlu1 %4083 }
0x1ddb   :  { %v4088_v55 = vmul.f32 0.03125, %v4084_v48 }
0x1ddc   :  { %v4091_v46 = vadd.f32 1e-05, %v4089_v21 }
0x1ddd   :  { %v4090_v63 = vadd.f32 1e-05, %v4088_v55 }
0x1dde   :  { %8781 = vrsqrt.f32 %v4091_v46 }
0x1ddf   :  { %8783 = vrsqrt.f32 %v4090_v63 }
0x1de8   :  { %v8782_v47 = vpop.eup %8781 }
0x1de9   :  { %v8784_v36 = vpop.eup %8783  ;;  %v4095_v34 = vmul.f32 %v8782_v47, %v4079_v3 }
0x1dea   :  { %v4094_v15 = vmul.f32 %v8784_v36, %v4078_v6 }
0x1deb   :  { %v4097_v31 = vmul.f32 %v4095_v34, %v10311_v7 }
0x1dec   :  { %v4096_v8 = vmul.f32 %v4094_v15, %v10311_v7 }
0x1ded   :  { %v10322_v41 = vadd.f32 %v4097_v31, %v10314_v60 }
0x1dee   :  { %v10319_v9 = vadd.f32 %v4096_v8, %v10314_v60 }
0x1df0   :  { %8099 = vmatprep.mubr.msk.f32.mxu0 %vm388_vm0, %v10319_v9 }
0x1df1   :  { %8100 = vmatmul.mubr.msk.f32.vlgmr.msra.gmra.mrb[46].mxu0 %vm388_vm0, %v10322_v41 }
0x1df2   :  { %8104 = vmatprep.mubr.msk.f32.mxu0 %vm9301_vm2, %v9300_v39 }
0x1ec4   :  { %v8101_v12 = vpop.f32.mrb[46].mxu0 }
0x1ec5   :  { %v10331_v23 = vadd.f32 %v8101_v12, %v9780_v1  ;;  %v4172_v24 = vpop.f32.mrb[47].mxu0 }
0x1ec6   :  { %v10334_v3 = vadd.f32 %v4172_v24, %v9770_v58 }
0x1ec7   :  { %4259 = vrot.lane.b32.xlu0 %v10331_v23, %s9302_s21 }
0x1ec8   :  { %4182 = vrot.lane.b32.xlu1 %v10334_v3, %s9302_s21  ;;  %s7331_s21 = sshll.u32 %s9316_s18, 4  ;;  %s7332_s21 = int_to_ptr.vmem [resolvable:$true] %s7331_s21 }
0x1ec9   :  { %p9244_p11 = scmp.lt.s32.totalorder %s7332_s21, %s7332_s21 }
0x1f39   :  { %v4260_v50 = vpop.permute.xlu0 %4259 }
0x1f3a   :  { %v4183_v6 = vpop.permute.xlu1 %4182 }
0x1f3b   :  { %8103 = vmatpush3.xpose.msk.msra.mxu0 %vm856_vm3, %v4183_v6 }
0x1f3c   :  { %8107 = vmatprep.subr.mxu0 %v9300_v39 }
0x1f3e   :  { %8105 = vmatmul.mubr.msk.f32.vlgmr.msra.gmra.mrb[48].mxu0 %vm856_vm3, %v10334_v3 }
0x1f3f   :  { %8108 = vmatpush3.xpose.msk.msra.mxu0 %vm856_vm3, %v4260_v50  ;;  %8109 = vmatprep.mubr.msk.f32.mxu0 %vm9301_vm2, %v9300_v39 }
0x1f40   :  { %8117 = vmatprep.subr.mxu0 %v9300_v39 }
0x1f42   :  { %8110 = vmatmul.mubr.msk.f32.vlgmr.msra.gmra.mrb[50].mxu0 %vm856_vm3, %v10331_v23 }
0x1f43   :  { %8119 = vmatprep.mubr.msk.f32.mxu0 %vm9301_vm2, %v9300_v39 }
0x2011   :  { %v4254_v58 = vpop.f32.mrb[48].mxu0 }
0x2012   :  { %v8106_v1 = vpop.f32.mrb[49].mxu0  ;;  %v4335_v51 = vsel %vm856_vm3, %v4254_v58, -inf }
0x2013   :  { %4336 = vmax.xlane.f32.xlu1 %v4335_v51 }
0x2015   :  { %v4331_v43 = vpop.f32.mrb[50].mxu0 }
0x2016   :  { %v8111_v22 = vpop.f32.mrb[51].mxu0  ;;  %v4338_v21 = vsel %vm856_vm3, %v4331_v43, -inf }
0x2017   :  { %4339 = vmax.xlane.f32.xlu0 %v4338_v21 }
0x2024   :  { %4357 = vrot.lane.b32.xlu1 %v10334_v3, %s9303_s14 }
0x2028   :  { %4511 = vrot.lane.b32.xlu1 %v10334_v3, %s9304_s11 }
0x202c   :  { %4589 = vrot.lane.b32.xlu1 %v10331_v23, %s9304_s11 }
0x202d   :  { %4433 = vrot.lane.b32.xlu0 %v10331_v23, %s9303_s14  ;;  %s9239_s14 = scalar_lea.vmem %s7332_s21, 256 }
0x202e   :  { %p9240_p10 = scmp.ne.s32.totalorder %s7332_s21, %s9239_s14  ;;  %p9245_p12 = scmp.lt.s32.totalorder %s9239_s14, %s9239_s14 }
0x2030   :  { %p9246_p13 = por %p9245_p12, %p9244_p11 }
0x2032   :  { %p9247_p0 = pnand %p9246_p13, %p9240_p10 }
0x20a0   :  { %v4337_v48 = vpop.xlane.xlu1 %4336 }
0x20a1   :  { %v4341_v55 = vsub.f32 %v4254_v58, %v4337_v48 }
0x20a3   :  { %v4343_v46 = vmul.f32 1.442695, %v4341_v55 }
0x20a4   :  { %v4358_v63 = vpop.permute.xlu1 %4357  ;;  %v4340_v5 = vpop.xlane.xlu0 %4339 }
0x20a5   :  { %8785 = vpow2.f32 %v4343_v46  ;;  %v4342_v47 = vsub.f32 %v4331_v43, %v4340_v5  ;;  %8113 = vmatpush3.msra.mxu1 %v4358_v63 }
0x20a6   :  { %8122 = vmatprep.subr.mxu1 %v9300_v39 }
0x20a7   :  { %v4345_v36 = vmul.f32 1.442695, %v4342_v47 }
0x20a8   :  { %v4434_v34 = vpop.permute.xlu0 %4433  ;;  %v4512_v24 = vpop.permute.xlu1 %4511 }
0x20a9   :  { %8787 = vpow2.f32 %v4345_v36  ;;  %8118 = vmatpush3.msra.mxu0 %v4434_v34 }
0x20aa   :  { %8127 = vmatprep.subr.mxu0 %v9300_v39 }
0x20ac   :  { %v4590_v6 = vpop.permute.xlu1 %4589 }
0x20af   :  { %v8786_v15 = vpop.eup %8785 }
0x20b0   :  { %v4347_v31 = vsel %vm856_vm3, %v8786_v15, 0.0 }
0x20b1   :  { %4348 = vadd.xlane.f32.xlu1 %v4347_v31 }
0x20b3   :  { %v8788_v8 = vpop.eup %8787 }
0x20b4   :  { %v4350_v12 = vsel %vm856_vm3, %v8788_v8, 0.0 }
0x20b5   :  { %4351 = vadd.xlane.f32.xlu0 %v4350_v12 }
0x20c2   :  { %4587 = vrot.lane.b32.xlu1 %v10331_v23, %s9305_s29 }
0x20cb   :  { %4509 = vrot.lane.b32.xlu0 %v10334_v3, %s9305_s29 }
0x213e   :  { %v4349_v50 = vpop.xlane.xlu1 %4348 }
0x213f   :  { %8789 = vrcp.f32 %v4349_v50 }
0x2142   :  { %v4352_v58 = vpop.xlane.xlu0 %4351  ;;  %v4588_v48 = vpop.permute.xlu1 %4587 }
0x2143   :  { %8791 = vrcp.f32 %v4352_v58 }
0x2146   :  { %v4510_v21 = vpop.permute.xlu0 %4509 }
0x2149   :  { %v8790_v1 = vpop.eup %8789 }
0x214a   :  { %v4355_v51 = vmul.f32 %v8790_v1, %v8786_v15 }
0x214c   :  { %8115 = vmatmul.mubr.msk.f32.vlgmr.msra.gmra.mrb[42].mxu1 %vm856_vm3, %v4355_v51 }
0x214d   :  { %v8792_v43 = vpop.eup %8791  ;;  %8123 = vmatpush3.xpose.msk.msra.mxu1 %vm856_vm3, %v4512_v24  ;;  %8124 = vmatprep.mubr.msk.f32.mxu1 %vm9301_vm2, %v9300_v39 }
0x214e   :  { %v4356_v22 = vmul.f32 %v8792_v43, %v8788_v8  ;;  %8132 = vmatprep.subr.mxu1 %v9300_v39 }
0x2150   :  { %8120 = vmatmul.mubr.msk.f32.vlgmr.msra.gmra.mrb[52].mxu0 %vm856_vm3, %v4356_v22  ;;  %8125 = vmatmul.mubr.msk.f32.vlgmr.msra.gmra.mrb[44].mxu1 %vm856_vm3, %v4510_v21 }
0x2151   :  { %8128 = vmatpush3.xpose.msk.msra.mxu0 %vm856_vm3, %v4590_v6  ;;  %8129 = vmatprep.mubr.msk.f32.mxu0 %vm9301_vm2, %v9300_v39 }
0x2152   :  { %8137 = vmatprep.subr.mxu0 %v9300_v39  ;;  %8134 = vmatprep.mubr.msk.f32.mxu1 %vm9301_vm2, %v9300_v39 }
0x2154   :  { %8130 = vmatmul.mubr.msk.f32.vlgmr.msra.gmra.mrb[54].mxu0 %vm856_vm3, %v4588_v48 }
0x2155   :  { %8139 = vmatprep.mubr.msk.f32.mxu0 %vm9301_vm2, %v9300_v39 }
0x221f   :  { %v10386_v55 = vpop.f32.mrb[42].mxu1 }
0x2220   :  { %v8116_v46 = vpop.f32.mrb[43].mxu1 }
0x2223   :  { %v10388_v63 = vpop.f32.mrb[52].mxu0  ;;  %v4583_v5 = vpop.f32.mrb[44].mxu1 }
0x2224   :  { %v8121_v47 = vpop.f32.mrb[53].mxu0  ;;  %v8126_v36 = vpop.f32.mrb[45].mxu1  ;;  %v4665_v34 = vsel %vm856_vm3, %v4583_v5, -inf }
0x2225   :  { %4666 = vmax.xlane.f32.xlu0 %v4665_v34 }
0x2227   :  { %v4661_v15 = vpop.f32.mrb[54].mxu0 }
0x2228   :  { %v8131_v31 = vpop.f32.mrb[55].mxu0  ;;  %v4668_v8 = vsel %vm856_vm3, %v4661_v15, -inf }
0x2229   :  { %4669 = vmax.xlane.f32.xlu1 %v4668_v8 }
0x223a   :  { %4687 = vrot.lane.b32.xlu1 %v10334_v3, %s9306_s15 }
0x223b   :  { %4763 = vrot.lane.b32.xlu0 %v10331_v23, %s9306_s15 }
0x223e   :  { %4841 = vrot.lane.b32.xlu1 %v10334_v3, %s9307_s0 }
0x2242   :  { %4919 = vrot.lane.b32.xlu1 %v10331_v23, %s9307_s0 }
0x2246   :  { %4917 = vrot.lane.b32.xlu1 %v10331_v23, %s9308_s4 }
0x22b2   :  { %v4667_v12 = vpop.xlane.xlu0 %4666 }
0x22b3   :  { %v4671_v24 = vsub.f32 %v4583_v5, %v4667_v12 }
0x22b5   :  { %v4673_v6 = vmul.f32 1.442695, %v4671_v24 }
0x22b6   :  { %v4764_v50 = vpop.permute.xlu0 %4763  ;;  %v4670_v58 = vpop.xlane.xlu1 %4669 }
0x22b7   :  { %8793 = vpow2.f32 %v4673_v6  ;;  %v4672_v1 = vsub.f32 %v4661_v15, %v4670_v58  ;;  %8138 = vmatpush3.msra.mxu0 %v4764_v50 }
0x22b8   :  { %8147 = vmatprep.subr.mxu0 %v9300_v39 }
0x22b9   :  { %v4675_v51 = vmul.f32 1.442695, %v4672_v1 }
0x22ba   :  { %v4688_v43 = vpop.permute.xlu1 %4687 }
0x22bb   :  { %8795 = vpow2.f32 %v4675_v51  ;;  %8133 = vmatpush3.msra.mxu1 %v4688_v43 }
0x22bc   :  { %8142 = vmatprep.subr.mxu1 %v9300_v39 }
0x22be   :  { %v4842_v36 = vpop.permute.xlu1 %4841 }
0x22c1   :  { %v8794_v22 = vpop.eup %8793 }
0x22c2   :  { %v4677_v21 = vsel %vm856_vm3, %v8794_v22, 0.0  ;;  %v4920_v8 = vpop.permute.xlu1 %4919 }
0x22c3   :  { %4678 = vadd.xlane.f32.xlu0 %v4677_v21 }
0x22c5   :  { %v8796_v48 = vpop.eup %8795 }
0x22c6   :  { %v4680_v46 = vsel %vm856_vm3, %v8796_v48, 0.0  ;;  %v4918_v6 = vpop.permute.xlu1 %4917 }
0x22c7   :  { %4681 = vadd.xlane.f32.xlu0 %v4680_v46 }
0x22dd   :  { %4839 = vrot.lane.b32.xlu0 %v10334_v3, %s9308_s4 }
0x2350   :  { %v4679_v5 = vpop.xlane.xlu0 %4678 }
0x2351   :  { %8797 = vrcp.f32 %v4679_v5 }
0x2354   :  { %v4682_v47 = vpop.xlane.xlu0 %4681 }
0x2355   :  { %8799 = vrcp.f32 %v4682_v47 }
0x2358   :  { %v4840_v24 = vpop.permute.xlu0 %4839 }
0x235b   :  { %v8798_v34 = vpop.eup %8797 }
0x235c   :  { %v4685_v15 = vmul.f32 %v8798_v34, %v8794_v22 }
0x235e   :  { %8135 = vmatmul.mubr.msk.f32.vlgmr.msra.gmra.mrb[46].mxu1 %vm856_vm3, %v4685_v15 }
0x235f   :  { %v8800_v31 = vpop.eup %8799  ;;  %8143 = vmatpush3.xpose.msk.msra.mxu1 %vm856_vm3, %v4842_v36  ;;  %8144 = vmatprep.mubr.msk.f32.mxu1 %vm9301_vm2, %v9300_v39 }
0x2360   :  { %v4686_v12 = vmul.f32 %v8800_v31, %v8796_v48  ;;  %8152 = vmatprep.subr.mxu1 %v9300_v39 }
0x2362   :  { %8140 = vmatmul.mubr.msk.f32.vlgmr.msra.gmra.mrb[56].mxu0 %vm856_vm3, %v4686_v12  ;;  %8145 = vmatmul.mubr.msk.f32.vlgmr.msra.gmra.mrb[48].mxu1 %vm856_vm3, %v4840_v24 }
0x2363   :  { %8148 = vmatpush3.xpose.msk.msra.mxu0 %vm856_vm3, %v4920_v8  ;;  %8149 = vmatprep.mubr.msk.f32.mxu0 %vm9301_vm2, %v9300_v39 }
0x2364   :  { %8157 = vmatprep.subr.mxu0 %v9300_v39  ;;  %8154 = vmatprep.mubr.msk.f32.mxu1 %vm9301_vm2, %v9300_v39 }
0x2366   :  { %8150 = vmatmul.mubr.msk.f32.vlgmr.msra.gmra.mrb[58].mxu0 %vm856_vm3, %v4918_v6 }
0x2367   :  { %8159 = vmatprep.mubr.msk.f32.mxu0 %vm9301_vm2, %v9300_v39 }
0x2431   :  { %v10424_v50 = vpop.f32.mrb[46].mxu1 }
0x2432   :  { %v8136_v58 = vpop.f32.mrb[47].mxu1 }
0x2435   :  { %v10426_v1 = vpop.f32.mrb[56].mxu0  ;;  %v4913_v51 = vpop.f32.mrb[48].mxu1 }
0x2436   :  { %v8141_v43 = vpop.f32.mrb[57].mxu0  ;;  %v8146_v22 = vpop.f32.mrb[49].mxu1  ;;  %v4995_v21 = vsel %vm856_vm3, %v4913_v51, -inf }
0x2437   :  { %4996 = vmax.xlane.f32.xlu0 %v4995_v21 }
0x2439   :  { %v4991_v48 = vpop.f32.mrb[58].mxu0 }
0x243a   :  { %v8151_v46 = vpop.f32.mrb[59].mxu0  ;;  %v4998_v5 = vsel %vm856_vm3, %v4991_v48, -inf }
0x243b   :  { %4999 = vmax.xlane.f32.xlu1 %v4998_v5 }
0x244c   :  { %5017 = vrot.lane.b32.xlu1 %v10334_v3, %s9309_s3 }
0x244d   :  { %5093 = vrot.lane.b32.xlu0 %v10331_v23, %s9309_s3 }
0x2450   :  { %5171 = vrot.lane.b32.xlu1 %v10334_v3, %s9310_s5 }
0x2454   :  { %5249 = vrot.lane.b32.xlu1 %v10331_v23, %s9310_s5 }
0x2458   :  { %5247 = vrot.lane.b32.xlu1 %v10331_v23, %s9311_s24 }
0x24c4   :  { %v4997_v47 = vpop.xlane.xlu0 %4996 }
0x24c5   :  { %v5001_v36 = vsub.f32 %v4913_v51, %v4997_v47 }
0x24c7   :  { %v5003_v34 = vmul.f32 1.442695, %v5001_v36 }
0x24c8   :  { %v5094_v15 = vpop.permute.xlu0 %5093  ;;  %v5000_v31 = vpop.xlane.xlu1 %4999 }
0x24c9   :  { %8801 = vpow2.f32 %v5003_v34  ;;  %v5002_v8 = vsub.f32 %v4991_v48, %v5000_v31  ;;  %8158 = vmatpush3.msra.mxu0 %v5094_v15 }
0x24ca   :  { %8167 = vmatprep.subr.mxu0 %v9300_v39 }
0x24cb   :  { %v5005_v12 = vmul.f32 1.442695, %v5002_v8 }
0x24cc   :  { %v5018_v24 = vpop.permute.xlu1 %5017 }
0x24cd   :  { %8803 = vpow2.f32 %v5005_v12  ;;  %8153 = vmatpush3.msra.mxu1 %v5018_v24 }
0x24ce   :  { %8162 = vmatprep.subr.mxu1 %v9300_v39 }
0x24d0   :  { %v5172_v48 = vpop.permute.xlu1 %5171 }
0x24d3   :  { %v8802_v6 = vpop.eup %8801 }
0x24d4   :  { %v5007_v58 = vsel %vm856_vm3, %v8802_v6, 0.0  ;;  %v5250_v36 = vpop.permute.xlu1 %5249 }
0x24d5   :  { %5008 = vadd.xlane.f32.xlu0 %v5007_v58 }
0x24d7   :  { %v8804_v43 = vpop.eup %8803 }
0x24d8   :  { %v5010_v51 = vsel %vm856_vm3, %v8804_v43, 0.0  ;;  %v5248_v31 = vpop.permute.xlu1 %5247 }
0x24d9   :  { %5011 = vadd.xlane.f32.xlu0 %v5010_v51 }
0x24ef   :  { %5169 = vrot.lane.b32.xlu0 %v10334_v3, %s9311_s24 }
0x2562   :  { %v5009_v22 = vpop.xlane.xlu0 %5008 }
0x2563   :  { %8805 = vrcp.f32 %v5009_v22 }
0x2566   :  { %v5012_v21 = vpop.xlane.xlu0 %5011 }
0x2567   :  { %8807 = vrcp.f32 %v5012_v21 }
0x256a   :  { %v5170_v15 = vpop.permute.xlu0 %5169 }
0x256d   :  { %v8806_v46 = vpop.eup %8805 }
0x256e   :  { %v5015_v5 = vmul.f32 %v8806_v46, %v8802_v6 }
0x2570   :  { %8155 = vmatmul.mubr.msk.f32.vlgmr.msra.gmra.mrb[50].mxu1 %vm856_vm3, %v5015_v5 }
0x2571   :  { %v8808_v47 = vpop.eup %8807  ;;  %8163 = vmatpush3.xpose.msk.msra.mxu1 %vm856_vm3, %v5172_v48  ;;  %8164 = vmatprep.mubr.msk.f32.mxu1 %vm9301_vm2, %v9300_v39 }
0x2572   :  { %v5016_v34 = vmul.f32 %v8808_v47, %v8804_v43  ;;  %8172 = vmatprep.subr.mxu1 %v9300_v39 }
0x2574   :  { %8160 = vmatmul.mubr.msk.f32.vlgmr.msra.gmra.mrb[60].mxu0 %vm856_vm3, %v5016_v34  ;;  %8165 = vmatmul.mubr.msk.f32.vlgmr.msra.gmra.mrb[52].mxu1 %vm856_vm3, %v5170_v15 }
0x2575   :  { %8168 = vmatpush3.xpose.msk.msra.mxu0 %vm856_vm3, %v5250_v36  ;;  %8169 = vmatprep.mubr.msk.f32.mxu0 %vm9301_vm2, %v9300_v39 }
0x2576   :  { %8177 = vmatprep.subr.mxu0 %v9300_v39  ;;  %8174 = vmatprep.mubr.msk.f32.mxu1 %vm9301_vm2, %v9300_v39 }
0x2578   :  { %8170 = vmatmul.mubr.msk.f32.vlgmr.msra.gmra.mrb[62].mxu0 %vm856_vm3, %v5248_v31 }
0x2579   :  { %8179 = vmatprep.mubr.msk.f32.mxu0 %vm9301_vm2, %v9300_v39 }
0x2643   :  { %v5089_v8 = vpop.f32.mrb[50].mxu1 }
0x2644   :  { %v8156_v12 = vpop.f32.mrb[51].mxu1 }
0x2647   :  { %v5165_v24 = vpop.f32.mrb[60].mxu0  ;;  %v5243_v6 = vpop.f32.mrb[52].mxu1 }
0x2648   :  { %v8161_v58 = vpop.f32.mrb[61].mxu0  ;;  %v8166_v43 = vpop.f32.mrb[53].mxu1  ;;  %v5325_v51 = vsel %vm856_vm3, %v5243_v6, -inf }
0x2649   :  { %5326 = vmax.xlane.f32.xlu0 %v5325_v51 }
0x264b   :  { %v5321_v22 = vpop.f32.mrb[62].mxu0 }
0x264c   :  { %v8171_v21 = vpop.f32.mrb[63].mxu0  ;;  %v5328_v48 = vsel %vm856_vm3, %v5321_v22, -inf }
0x264d   :  { %5329 = vmax.xlane.f32.xlu1 %v5328_v48 }
0x265e   :  { %5347 = vrot.lane.b32.xlu1 %v10334_v3, %s9312_s8 }
0x2662   :  { %5501 = vrot.lane.b32.xlu1 %v10424_v50, %s9284_s27 }
0x2666   :  { %5503 = vrot.lane.b32.xlu1 %v10426_v1, %s9284_s27 }
0x266a   :  { %5511 = vrot.lane.b32.xlu1 %v5165_v24, %s9313_s2 }
0x26d6   :  { %v5327_v46 = vpop.xlane.xlu0 %5326 }
0x26d7   :  { %v5331_v5 = vsub.f32 %v5243_v6, %v5327_v46 }
0x26d9   :  { %v5333_v47 = vmul.f32 1.442695, %v5331_v5 }
0x26da   :  { %v5330_v36 = vpop.xlane.xlu1 %5329 }
0x26db   :  { %8809 = vpow2.f32 %v5333_v47  ;;  %v5332_v34 = vsub.f32 %v5321_v22, %v5330_v36 }
0x26dd   :  { %v5335_v15 = vmul.f32 1.442695, %v5332_v34 }
0x26de   :  { %v5348_v31 = vpop.permute.xlu1 %5347 }
0x26df   :  { %8811 = vpow2.f32 %v5335_v15  ;;  %8173 = vmatpush3.msra.mxu1 %v5348_v31 }
0x26e0   :  { %8510 = vmatprep.subr.bf16.mxu1 %v9948_v13 }
0x26e2   :  { %v5502_v46 = vpop.permute.xlu1 %5501 }
0x26e5   :  { %v8810_v3 = vpop.eup %8809 }
0x26e6   :  { %v5337_v50 = vsel %vm856_vm3, %v8810_v3, 0.0 }
0x26e7   :  { %5338 = vadd.xlane.f32.xlu0 %v5337_v50 }
0x26e9   :  { %v8812_v12 = vpop.eup %8811 }
0x26ea   :  { %v5340_v1 = vsel %vm856_vm3, %v8812_v12, 0.0 }
0x26eb   :  { %5341 = vadd.xlane.f32.xlu0 %v5340_v1 }
0x2701   :  { %5423 = vrot.lane.b32.xlu0 %v10331_v23, %s9312_s8 }
0x2705   :  { %5509 = vrot.lane.b32.xlu0 %v5089_v8, %s9313_s2 }
0x2774   :  { %v5339_v24 = vpop.xlane.xlu0 %5338 }
0x2775   :  { %8813 = vrcp.f32 %v5339_v24 }
0x2778   :  { %v5342_v6 = vpop.xlane.xlu0 %5341 }
0x2779   :  { %8815 = vrcp.f32 %v5342_v6 }
0x277c   :  { %v5424_v58 = vpop.permute.xlu0 %5423 }
0x277d   :  { %8178 = vmatpush3.msra.mxu0 %v5424_v58 }
0x277e   :  { %8518 = vmatprep.subr.bf16.mxu0 %v9702_v10 }
0x277f   :  { %v8814_v43 = vpop.eup %8813 }
0x2780   :  { %v5345_v51 = vmul.f32 %v8814_v43, %v8810_v3  ;;  %v5510_v5 = vpop.permute.xlu0 %5509 }
0x2782   :  { %8175 = vmatmul.mubr.msk.f32.vlgmr.msra.gmra.mrb[54].mxu1 %vm856_vm3, %v5345_v51 }
0x2783   :  { %v8816_v22 = vpop.eup %8815  ;;  %8512 = vmatpush3.bf16.msra.mxu1 %v9948_v13 }
0x2784   :  { %v5346_v21 = vmul.f32 %v8816_v22, %v8812_v12  ;;  %8514 = vmatprep.subr.bf16.mxu1 %v9953_v16  ;;  %v8861_v12 = vld [vmem:[#allocation8] ss:$0 sm:$0xff] }
0x2786   :  { %8180 = vmatmul.mubr.msk.f32.vlgmr.msra.gmra.mrb[64].mxu0 %vm856_vm3, %v5346_v21 }
0x2787   :  { %8516 = vmatpush3.bf16.msra.mxu1 %v9953_v16  ;;  %8520 = vmatpush3.bf16.msra.mxu0 %v9702_v10  ;;  %v5504_v16 = vpop.permute.xlu1 %5503  ;;  %v5523_v10 = vsel %vm856_vm3, %v10386_v55, %v5502_v46 }
0x2788   :  { %8525 = vmatprep.subr.bf16.mxu1 %v9314_v17  ;;  %8522 = vmatprep.subr.bf16.mxu0 %v9707_v14  ;;  %v5525_v36 = vsel %vm2198_vm4, %v5523_v10, %v5510_v5  ;;  %v5524_v15 = vsel %vm856_vm3, %v10388_v63, %v5504_v16 }
0x278b   :  { %8524 = vmatpush3.bf16.msra.mxu0 %v9707_v14  ;;  %v5512_v47 = vpop.permute.xlu1 %5511 }
0x278c   :  { %8529 = vmatprep.subr.bf16.mxu0 %v9314_v17  ;;  %v5526_v31 = vsel %vm2198_vm4, %v5524_v15, %v5512_v47 }
0x2855   :  { %v5419_v23 = vpop.f32.mrb[54].mxu1 }
0x2856   :  { %5517 = vrot.lane.b32.xlu0 %v5419_v23, %s9315_s9  ;;  %v8176_v13 = vpop.f32.mrb[55].mxu1 }
0x2859   :  { %v5495_v8 = vpop.f32.mrb[64].mxu0 }
0x285a   :  { %5519 = vrot.lane.b32.xlu1 %v5495_v8, %s9315_s9  ;;  %v8181_v48 = vpop.f32.mrb[65].mxu0 }
0x28c8   :  { %v5518_v14 = vpop.permute.xlu0 %5517 }
0x28c9   :  { %v5527_v34 = vsel %vm2201_vm5, %v5525_v36, %v5518_v14 }
0x28ca   :  { %8190 = vmatprep.mubr.msk.f32.mxu1 %vm388_vm0, %v5527_v34 }
0x28cc   :  { %v5520_v3 = vpop.permute.xlu1 %5519 }
0x28cd   :  { %v5528_v50 = vsel %vm2201_vm5, %v5526_v31, %v5520_v3 }
0x28ce   :  { %8191 = vmatmul.mubr.msk.f32.vlgmr.msra.gmra.mrb[56].mxu1 %vm388_vm0, %v5528_v50 }
0x28cf   :  { %8528 = vmatpush3.bf16.xpose.msk.msra.mxu1 %vm9972_vm6, %v9766_v52  ;;  %8208 = vmatprep.mubr.msk.f32.mxu1 %vm9301_vm2, %v9300_v39 }
0x28d0   :  { %8533 = vmatprep.subr.bf16.mxu1 %v9314_v17 }
0x29a1   :  { %v8192_v55 = vpop.f32.mrb[56].mxu1 }
0x29a2   :  { %v5607_v1 = vadd.f32 %v8861_v12, %v8192_v55  ;;  %v5601_v63 = vpop.f32.mrb[57].mxu1 }
0x29a3   :  { %v5602_v24 = vadd.f32 %v8861_v12, %v5601_v63 }
0x29a4   :  { %v5611_v6 = vadd.f32 %v5607_v1, %v10322_v41 }
0x29a5   :  { %v5610_v58 = vadd.f32 %v5602_v24, %v10319_v9 }
0x29a6   :  { %v5615_v43 = vsel %vm388_vm0, %v5611_v6, 0.0 }
0x29a7   :  { %5616 = vadd.xlane.f32.xlu1 %v5615_v43  ;;  %v5612_v51 = vsel %vm388_vm0, %v5610_v58, 0.0 }
0x29a8   :  { %5613 = vadd.xlane.f32.xlu0 %v5612_v51 }
0x2a34   :  { %v5617_v52 = vpop.xlane.xlu1 %5616 }
0x2a35   :  { %v5619_v22 = vmul.f32 0.03125, %v5617_v52  ;;  %v5614_v21 = vpop.xlane.xlu0 %5613 }
0x2a36   :  { %v5618_v23 = vmul.f32 0.03125, %v5614_v21 }
0x2a37   :  { %v5621_v13 = vsub.f32 %v5611_v6, %v5619_v22 }
0x2a38   :  { %v5620_v8 = vsub.f32 %v5610_v58, %v5618_v23 }
0x2a39   :  { %v5623_v16 = vmul.f32 %v5621_v13, %v5621_v13 }
0x2a3a   :  { %v5622_v48 = vmul.f32 %v5620_v8, %v5620_v8 }
0x2a3b   :  { %v5627_v41 = vsel %vm388_vm0, %v5623_v16, 0.0 }
0x2a3c   :  { %v5624_v46 = vsel %vm388_vm0, %v5622_v48, 0.0 }
0x2a3d   :  { %5625 = vadd.xlane.f32.xlu0 %v5624_v46 }
0x2a41   :  { %5628 = vadd.xlane.f32.xlu0 %v5627_v41 }
0x2aca   :  { %v5626_v9 = vpop.xlane.xlu0 %5625 }
0x2acb   :  { %v5630_v5 = vmul.f32 0.03125, %v5626_v9 }
0x2acd   :  { %v5632_v10 = vadd.f32 1e-05, %v5630_v5 }
0x2ace   :  { %v5629_v47 = vpop.xlane.xlu0 %5628 }
0x2acf   :  { %8817 = vrsqrt.f32 %v5632_v10  ;;  %v5631_v36 = vmul.f32 0.03125, %v5629_v47 }
0x2ad1   :  { %v5633_v14 = vadd.f32 1e-05, %v5631_v36 }
0x2ad3   :  { %8819 = vrsqrt.f32 %v5633_v14 }
0x2ad9   :  { %v8818_v34 = vpop.eup %8817 }
0x2ada   :  { %v5636_v15 = vmul.f32 %v8818_v34, %v5620_v8 }
0x2adc   :  { %v5638_v31 = vmul.f32 %v5636_v15, %v9999_v25 }
0x2add   :  { %v8820_v3 = vpop.eup %8819 }
0x2ade   :  { %v5637_v50 = vmul.f32 %v8820_v3, %v5621_v13  ;;  %v10514_v55 = vadd.f32 %v5638_v31, %v10002_v27 }
0x2ae0   :  { %8201 = vmatprep.mubr.msk.f32.mxu0 %vm388_vm0, %v10514_v55  ;;  %v5639_v12 = vmul.f32 %v5637_v50, %v9999_v25 }
0x2ae2   :  { %v10520_v1 = vadd.f32 %v5639_v12, %v10002_v27 }
0x2ae4   :  { %8202 = vmatmul.mubr.msk.f32.vlgmr.msra.gmra.mrb[66].mxu0 %vm388_vm0, %v10520_v1 }
0x2ae5   :  { %8532 = vmatpush3.bf16.xpose.msk.msra.mxu0 %vm9972_vm6, %v9772_v59  ;;  %8215 = vmatprep.mubr.msk.f32.mxu0 %vm9301_vm2, %v9300_v39 }
0x2ae6   :  { %8536 = vmatprep.subr.bf16.mxu0 %v9314_v17 }
0x2bb7   :  { %v8203_v63 = vpop.f32.mrb[66].mxu0 }
0x2bb8   :  { %v10531_v24 = vadd.f32 %v8203_v63, %v10023_v38  ;;  %v5714_v25 = vpop.f32.mrb[67].mxu0 }
0x2bb9   :  { %v10534_v27 = vadd.f32 %v5714_v25, %v10026_v57 }
0x2bba   :  { %8216 = vmatmul.mubr.msk.f32.vlgmr.msra.gmra.mrb[68].mxu0 %vm856_vm3, %v10531_v24 }
0x2bbb   :  { %8538 = vmatpush3.bf16.msra.mxu0 %v9805_v20  ;;  %8209 = vmatmul.mubr.msk.f32.vlgmr.msra.gmra.mrb[58].mxu1 %vm856_vm3, %v10534_v27 }
0x2bbc   :  { %8535 = vmatpush3.bf16.msra.mxu1 %v9801_v18  ;;  %8229 = vmatprep.mubr.msk.f32.mxu0 %vm9301_vm2, %v9300_v39 }
0x2bbd   :  { %8543 = vmatprep.subr.bf16.mxu0 %v9314_v17  ;;  %8222 = vmatprep.mubr.msk.f32.mxu1 %vm9301_vm2, %v9300_v39 }
0x2bbe   :  { %8539 = vmatprep.subr.bf16.mxu1 %v9314_v17 }
0x2c8d   :  { %v5865_v59 = vpop.f32.mrb[68].mxu0 }
0x2c8e   :  { %v5792_v38 = vpop.f32.mrb[58].mxu1  ;;  %v8217_v57 = vpop.f32.mrb[69].mxu0  ;;  %v5872_v20 = vsel %vm2198_vm4, %v5865_v59, -inf }
0x2c8f   :  { %5873 = vmax.xlane.f32.xlu0 %v5872_v20  ;;  %v8210_v6 = vpop.f32.mrb[59].mxu1  ;;  %v5869_v58 = vsel %vm2198_vm4, %v5792_v38, -inf }
0x2c90   :  { %5870 = vmax.xlane.f32.xlu1 %v5869_v58 }
0x2d1c   :  { %v5874_v18 = vpop.xlane.xlu0 %5873 }
0x2d1d   :  { %v5876_v43 = vsub.f32 %v5865_v59, %v5874_v18  ;;  %v5871_v51 = vpop.xlane.xlu1 %5870 }
0x2d1e   :  { %v5875_v52 = vsub.f32 %v5792_v38, %v5871_v51 }
0x2d1f   :  { %v5879_v22 = vmul.f32 1.442695, %v5876_v43 }
0x2d20   :  { %v5877_v21 = vmul.f32 1.442695, %v5875_v52 }
0x2d21   :  { %8821 = vpow2.f32 %v5879_v22 }
0x2d22   :  { %8823 = vpow2.f32 %v5877_v21 }
0x2d2b   :  { %v8822_v23 = vpop.eup %8821 }
0x2d2c   :  { %v8824_v13 = vpop.eup %8823  ;;  %v5884_v8 = vsel %vm2198_vm4, %v8822_v23, 0.0 }
0x2d2d   :  { %5885 = vadd.xlane.f32.xlu0 %v5884_v8  ;;  %v5881_v48 = vsel %vm2198_vm4, %v8824_v13, 0.0 }
0x2d2e   :  { %5882 = vadd.xlane.f32.xlu1 %v5881_v48 }
0x2d3f   :  { %6037 = vrot.lane.b32.xlu1 %v10534_v27, %s9305_s29 }
0x2d43   :  { %6111 = vrot.lane.b32.xlu0 %v10531_v24, %s9305_s29 }
0x2dba   :  { %v5886_v46 = vpop.xlane.xlu0 %5885 }
0x2dbb   :  { %8825 = vrcp.f32 %v5886_v46  ;;  %v5883_v16 = vpop.xlane.xlu1 %5882 }
0x2dbc   :  { %8827 = vrcp.f32 %v5883_v16 }
0x2dbe   :  { %v6112_v47 = vpop.permute.xlu0 %6111 }
0x2dbf   :  { %v6038_v36 = vpop.permute.xlu1 %6037 }
0x2dc5   :  { %v8826_v41 = vpop.eup %8825 }
0x2dc6   :  { %v8828_v9 = vpop.eup %8827  ;;  %v5890_v5 = vmul.f32 %v8826_v41, %v8822_v23 }
0x2dc7   :  { %v5889_v10 = vmul.f32 %v8828_v9, %v8824_v13 }
0x2dc8   :  { %8230 = vmatmul.mubr.msk.f32.vlgmr.msra.gmra.mrb[70].mxu0 %vm2198_vm4, %v5890_v5 }
0x2dc9   :  { %8546 = vmatpush3.bf16.xpose.msk.msra.mxu0 %vm9972_vm6, %v10058_v30  ;;  %8223 = vmatmul.mubr.msk.f32.vlgmr.msra.gmra.mrb[60].mxu1 %vm2198_vm4, %v5889_v10 }
0x2dca   :  { %8542 = vmatpush3.bf16.xpose.msk.msra.mxu1 %vm9972_vm6, %v10060_v35  ;;  %8243 = vmatprep.mubr.msk.f32.mxu0 %vm9301_vm2, %v9300_v39 }
0x2dcb   :  { %8236 = vmatprep.mubr.msk.f32.mxu1 %vm9301_vm2, %v9300_v39  ;;  %8550 = vmatprep.subr.bf16.mxu0 %v9314_v17 }
0x2dcc   :  { %8547 = vmatprep.subr.bf16.mxu1 %v9314_v17 }
0x2dd0   :  { %8244 = vmatmul.mubr.msk.f32.vlgmr.msra.gmra.mrb[72].mxu0 %vm856_vm3, %v6112_v47 }
0x2dd1   :  { %8237 = vmatmul.mubr.msk.f32.vlgmr.msra.gmra.mrb[62].mxu1 %vm856_vm3, %v6038_v36  ;;  %8552 = vmatpush3.bf16.msra.mxu0 %v10106_v37 }
0x2dd2   :  { %8549 = vmatpush3.bf16.msra.mxu1 %v10096_v32  ;;  %8257 = vmatprep.mubr.msk.f32.mxu0 %vm9301_vm2, %v9300_v39 }
0x2dd3   :  { %8557 = vmatprep.subr.bf16.mxu0 %v9314_v17  ;;  %8250 = vmatprep.mubr.msk.f32.mxu1 %vm9301_vm2, %v9300_v39 }
0x2dd4   :  { %8553 = vmatprep.subr.bf16.mxu1 %v9314_v17 }
0x2e9b   :  { %v10580_v30 = vpop.f32.mrb[70].mxu0 }
0x2e9c   :  { %v10582_v35 = vpop.f32.mrb[60].mxu1  ;;  %v8231_v14 = vpop.f32.mrb[71].mxu0 }
0x2e9d   :  { %v8224_v34 = vpop.f32.mrb[61].mxu1 }
0x2ea3   :  { %v6181_v15 = vpop.f32.mrb[72].mxu0 }
0x2ea4   :  { %v6107_v37 = vpop.f32.mrb[62].mxu1  ;;  %v8245_v31 = vpop.f32.mrb[73].mxu0  ;;  %v6188_v32 = vsel %vm2198_vm4, %v6181_v15, -inf }
0x2ea5   :  { %6189 = vmax.xlane.f32.xlu0 %v6188_v32  ;;  %v8238_v3 = vpop.f32.mrb[63].mxu1  ;;  %v6185_v50 = vsel %vm2198_vm4, %v6107_v37, -inf }
0x2ea6   :  { %6186 = vmax.xlane.f32.xlu1 %v6185_v50 }
0x2f32   :  { %v6190_v12 = vpop.xlane.xlu0 %6189 }
0x2f33   :  { %v6192_v63 = vsub.f32 %v6181_v15, %v6190_v12  ;;  %v6187_v25 = vpop.xlane.xlu1 %6186 }
0x2f34   :  { %v6191_v59 = vsub.f32 %v6107_v37, %v6187_v25 }
0x2f35   :  { %v6195_v38 = vmul.f32 1.442695, %v6192_v63 }
0x2f36   :  { %v6193_v57 = vmul.f32 1.442695, %v6191_v59 }
0x2f37   :  { %8829 = vpow2.f32 %v6195_v38 }
0x2f38   :  { %8831 = vpow2.f32 %v6193_v57 }
0x2f41   :  { %v8830_v20 = vpop.eup %8829 }
0x2f42   :  { %v8832_v6 = vpop.eup %8831  ;;  %v6200_v58 = vsel %vm2198_vm4, %v8830_v20, 0.0 }
0x2f43   :  { %6201 = vadd.xlane.f32.xlu0 %v6200_v58  ;;  %v6197_v18 = vsel %vm2198_vm4, %v8832_v6, 0.0 }
0x2f44   :  { %6198 = vadd.xlane.f32.xlu1 %v6197_v18 }
0x2f55   :  { %6353 = vrot.lane.b32.xlu1 %v10534_v27, %s9308_s4 }
0x2f59   :  { %6427 = vrot.lane.b32.xlu0 %v10531_v24, %s9308_s4 }
0x2fd0   :  { %v6202_v43 = vpop.xlane.xlu0 %6201 }
0x2fd1   :  { %8833 = vrcp.f32 %v6202_v43  ;;  %v6199_v51 = vpop.xlane.xlu1 %6198 }
0x2fd2   :  { %8835 = vrcp.f32 %v6199_v51 }
0x2fd4   :  { %v6428_v13 = vpop.permute.xlu0 %6427 }
0x2fd5   :  { %v6354_v8 = vpop.permute.xlu1 %6353 }
0x2fdb   :  { %v8834_v52 = vpop.eup %8833 }
0x2fdc   :  { %v8836_v22 = vpop.eup %8835  ;;  %v6206_v21 = vmul.f32 %v8834_v52, %v8830_v20 }
0x2fdd   :  { %v6205_v23 = vmul.f32 %v8836_v22, %v8832_v6 }
0x2fde   :  { %8258 = vmatmul.mubr.msk.f32.vlgmr.msra.gmra.mrb[74].mxu0 %vm2198_vm4, %v6206_v21 }
0x2fdf   :  { %8560 = vmatpush3.bf16.xpose.msk.msra.mxu0 %vm9972_vm6, %v10121_v56  ;;  %8251 = vmatmul.mubr.msk.f32.vlgmr.msra.gmra.mrb[64].mxu1 %vm2198_vm4, %v6205_v23 }
0x2fe0   :  { %8556 = vmatpush3.bf16.xpose.msk.msra.mxu1 %vm9972_vm6, %v10111_v0  ;;  %8271 = vmatprep.mubr.msk.f32.mxu0 %vm9301_vm2, %v9300_v39 }
0x2fe1   :  { %8264 = vmatprep.mubr.msk.f32.mxu1 %vm9301_vm2, %v9300_v39  ;;  %8564 = vmatprep.subr.bf16.mxu0 %v9314_v17 }
0x2fe2   :  { %8561 = vmatprep.subr.bf16.mxu1 %v9314_v17 }
0x2fe6   :  { %8272 = vmatmul.mubr.msk.f32.vlgmr.msra.gmra.mrb[76].mxu0 %vm856_vm3, %v6428_v13 }
0x2fe7   :  { %8265 = vmatmul.mubr.msk.f32.vlgmr.msra.gmra.mrb[66].mxu1 %vm856_vm3, %v6354_v8  ;;  %8566 = vmatpush3.bf16.msra.mxu0 %v10158_v33 }
0x2fe8   :  { %8563 = vmatpush3.bf16.msra.mxu1 %v10148_v49  ;;  %8285 = vmatprep.mubr.msk.f32.mxu0 %vm9301_vm2, %v9300_v39 }
0x2fe9   :  { %8571 = vmatprep.subr.bf16.mxu0 %v9314_v17  ;;  %8278 = vmatprep.mubr.msk.f32.mxu1 %vm9301_vm2, %v9300_v39 }
0x2fea   :  { %8567 = vmatprep.subr.bf16.mxu1 %v9314_v17 }
0x30b1   :  { %v10616_v0 = vpop.f32.mrb[74].mxu0 }
0x30b2   :  { %v10618_v56 = vpop.f32.mrb[64].mxu1  ;;  %v8259_v48 = vpop.f32.mrb[75].mxu0 }
0x30b3   :  { %v8252_v46 = vpop.f32.mrb[65].mxu1 }
0x30b9   :  { %v6497_v16 = vpop.f32.mrb[76].mxu0 }
0x30ba   :  { %v6423_v33 = vpop.f32.mrb[66].mxu1  ;;  %v8273_v41 = vpop.f32.mrb[77].mxu0  ;;  %v6504_v49 = vsel %vm2198_vm4, %v6497_v16, -inf }
0x30bb   :  { %6505 = vmax.xlane.f32.xlu0 %v6504_v49  ;;  %v8266_v9 = vpop.f32.mrb[67].mxu1  ;;  %v6501_v5 = vsel %vm2198_vm4, %v6423_v33, -inf }
0x30bc   :  { %6502 = vmax.xlane.f32.xlu1 %v6501_v5 }
0x3148   :  { %v6506_v10 = vpop.xlane.xlu0 %6505 }
0x3149   :  { %v6508_v47 = vsub.f32 %v6497_v16, %v6506_v10  ;;  %v6503_v36 = vpop.xlane.xlu1 %6502 }
0x314a   :  { %v6507_v14 = vsub.f32 %v6423_v33, %v6503_v36 }
0x314b   :  { %v6511_v34 = vmul.f32 1.442695, %v6508_v47 }
0x314c   :  { %v6509_v15 = vmul.f32 1.442695, %v6507_v14 }
0x314d   :  { %8837 = vpow2.f32 %v6511_v34 }
0x314e   :  { %8839 = vpow2.f32 %v6509_v15 }
0x3157   :  { %v8838_v37 = vpop.eup %8837 }
0x3158   :  { %v8840_v31 = vpop.eup %8839  ;;  %v6516_v32 = vsel %vm2198_vm4, %v8838_v37, 0.0 }
0x3159   :  { %6517 = vadd.xlane.f32.xlu0 %v6516_v32  ;;  %v6513_v3 = vsel %vm2198_vm4, %v8840_v31, 0.0 }
0x315a   :  { %6514 = vadd.xlane.f32.xlu1 %v6513_v3 }
0x316b   :  { %6669 = vrot.lane.b32.xlu1 %v10534_v27, %s9311_s24 }
0x316f   :  { %6743 = vrot.lane.b32.xlu0 %v10531_v24, %s9311_s24 }
0x31e6   :  { %v6518_v50 = vpop.xlane.xlu0 %6517 }
0x31e7   :  { %8841 = vrcp.f32 %v6518_v50  ;;  %v6515_v12 = vpop.xlane.xlu1 %6514 }
0x31e8   :  { %8843 = vrcp.f32 %v6515_v12 }
0x31ea   :  { %v6744_v24 = vpop.permute.xlu0 %6743 }
0x31eb   :  { %v6670_v27 = vpop.permute.xlu1 %6669 }
0x31f1   :  { %v8842_v63 = vpop.eup %8841 }
0x31f2   :  { %v8844_v25 = vpop.eup %8843  ;;  %v6522_v59 = vmul.f32 %v8842_v63, %v8838_v37 }
0x31f3   :  { %v6521_v38 = vmul.f32 %v8844_v25, %v8840_v31 }
0x31f4   :  { %8286 = vmatmul.mubr.msk.f32.vlgmr.msra.gmra.mrb[78].mxu0 %vm2198_vm4, %v6522_v59 }
0x31f5   :  { %8574 = vmatpush3.bf16.xpose.msk.msra.mxu0 %vm9972_vm6, %v10173_v28  ;;  %8279 = vmatmul.mubr.msk.f32.vlgmr.msra.gmra.mrb[68].mxu1 %vm2198_vm4, %v6521_v38 }
0x31f6   :  { %8570 = vmatpush3.bf16.xpose.msk.msra.mxu1 %vm9972_vm6, %v10163_v26  ;;  %8299 = vmatprep.mubr.msk.f32.mxu0 %vm9301_vm2, %v9300_v39 }
0x31f7   :  { %8292 = vmatprep.mubr.msk.f32.mxu1 %vm9301_vm2, %v9300_v39  ;;  %8578 = vmatprep.subr.bf16.mxu0 %v9314_v17 }
0x31f8   :  { %8575 = vmatprep.subr.bf16.mxu1 %v9314_v17 }
0x31fc   :  { %8300 = vmatmul.mubr.msk.f32.vlgmr.msra.gmra.mrb[80].mxu0 %vm856_vm3, %v6744_v24 }
0x31fd   :  { %8293 = vmatmul.mubr.msk.f32.vlgmr.msra.gmra.mrb[70].mxu1 %vm856_vm3, %v6670_v27  ;;  %8580 = vmatpush3.bf16.msra.mxu0 %v10203_v61 }
0x31fe   :  { %8577 = vmatpush3.bf16.msra.mxu1 %v10195_v19  ;;  %8313 = vmatprep.mubr.msk.f32.mxu0 %vm9301_vm2, %v9300_v39 }
0x31ff   :  { %8306 = vmatprep.mubr.msk.f32.mxu1 %vm9301_vm2, %v9300_v39  ;;  %8582 = vmatprep.subr.bf16.mxu1 %v10208_v53 }
0x3200   :  { %8590 = vmatprep.subr.bf16.mxu0 %v10234_v11 }
0x32c7   :  { %v6665_v17 = vpop.f32.mrb[78].mxu0 }
0x32c8   :  { %v6592_v40 = vpop.f32.mrb[68].mxu1  ;;  %v8287_v26 = vpop.f32.mrb[79].mxu0 }
0x32c9   :  { %v8280_v28 = vpop.f32.mrb[69].mxu1 }
0x32cf   :  { %v6813_v57 = vpop.f32.mrb[80].mxu0 }
0x32d0   :  { %v6739_v20 = vpop.f32.mrb[70].mxu1  ;;  %v8301_v6 = vpop.f32.mrb[81].mxu0  ;;  %v6820_v61 = vsel %vm2198_vm4, %v6813_v57, -inf }
0x32d1   :  { %6821 = vmax.xlane.f32.xlu0 %v6820_v61  ;;  %v8294_v19 = vpop.f32.mrb[71].mxu1  ;;  %v6817_v58 = vsel %vm2198_vm4, %v6739_v20, -inf }
0x32d2   :  { %6818 = vmax.xlane.f32.xlu1 %v6817_v58 }
0x335e   :  { %v6822_v18 = vpop.xlane.xlu0 %6821 }
0x335f   :  { %v6824_v39 = vsub.f32 %v6813_v57, %v6822_v18  ;;  %v6819_v43 = vpop.xlane.xlu1 %6818 }
0x3360   :  { %v6823_v51 = vsub.f32 %v6739_v20, %v6819_v43 }
0x3361   :  { %v6827_v52 = vmul.f32 1.442695, %v6824_v39 }
0x3362   :  { %v6825_v22 = vmul.f32 1.442695, %v6823_v51 }
0x3363   :  { %8845 = vpow2.f32 %v6827_v52 }
0x3364   :  { %8847 = vpow2.f32 %v6825_v22 }
0x336d   :  { %v8846_v21 = vpop.eup %8845 }
0x336e   :  { %v8848_v23 = vpop.eup %8847  ;;  %v6832_v13 = vsel %vm2198_vm4, %v8846_v21, 0.0 }
0x336f   :  { %6833 = vadd.xlane.f32.xlu0 %v6832_v13  ;;  %v6829_v8 = vsel %vm2198_vm4, %v8848_v23, 0.0 }
0x3370   :  { %6830 = vadd.xlane.f32.xlu1 %v6829_v8 }
0x3381   :  { %6987 = vrot.lane.b32.xlu1 %v10618_v56, %s9284_s27 }
0x3385   :  { %6989 = vrot.lane.b32.xlu0 %v10616_v0, %s9284_s27  ;;  %6995 = vrot.lane.b32.xlu1 %v6592_v40, %s9313_s2 }
0x3389   :  { %6997 = vrot.lane.b32.xlu1 %v6665_v17, %s9313_s2 }
0x33fc   :  { %v6834_v48 = vpop.xlane.xlu0 %6833 }
0x33fd   :  { %8849 = vrcp.f32 %v6834_v48  ;;  %v6831_v46 = vpop.xlane.xlu1 %6830 }
0x33fe   :  { %8851 = vrcp.f32 %v6831_v46 }
0x3400   :  { %v6990_v47 = vpop.permute.xlu0 %6989 }
0x3401   :  { %v6988_v5 = vpop.permute.xlu1 %6987 }
0x3402   :  { %v7009_v36 = vsel %vm856_vm3, %v10582_v35, %v6988_v5  ;;  %v8862_v35 = vld [vmem:[#allocation20] ss:$0 sm:$0xff] }
0x3407   :  { %v8850_v16 = vpop.eup %8849 }
0x3408   :  { %v8852_v33 = vpop.eup %8851  ;;  %v6838_v41 = vmul.f32 %v8850_v16, %v8846_v21  ;;  %v8863_v21 = vld [vmem:[#allocation23] ss:$0 sm:$0xff] }
0x3409   :  { %v6837_v49 = vmul.f32 %v8852_v33, %v8848_v23  ;;  %v8864_v33 = vld [vmem:[#allocation25] ss:$0 sm:$0xff] }
0x340a   :  { %8314 = vmatmul.mubr.msk.f32.vlgmr.msra.gmra.mrb[82].mxu0 %vm2198_vm4, %v6838_v41 }
0x340b   :  { %8307 = vmatmul.mubr.msk.f32.vlgmr.msra.gmra.mrb[72].mxu1 %vm2198_vm4, %v6837_v49  ;;  %8592 = vmatpush3.bf16.msra.mxu0 %v10234_v11 }
0x340c   :  { %8584 = vmatpush3.bf16.msra.mxu1 %v10208_v53  ;;  %8594 = vmatprep.subr.bf16.mxu0 %v10238_v29  ;;  %v6996_v53 = vpop.permute.xlu1 %6995 }
0x340d   :  { %8586 = vmatprep.subr.bf16.mxu1 %v10212_v42  ;;  %v7011_v14 = vsel %vm2198_vm4, %v7009_v36, %v6996_v53 }
0x340f   :  { %8596 = vmatpush3.bf16.msra.mxu0 %v10238_v29 }
0x3410   :  { %8588 = vmatpush3.bf16.msra.mxu1 %v10212_v42  ;;  %v6998_v10 = vpop.permute.xlu1 %6997  ;;  %v7010_v42 = vsel %vm856_vm3, %v10580_v30, %v6990_v47 }
0x3411   :  { %8598 = vmatprep.subr.bf16.mxu1 %v10252_v54  ;;  %v7012_v15 = vsel %vm2198_vm4, %v7010_v42, %v6998_v10 }
0x34dd   :  { %v6981_v0 = vpop.f32.mrb[82].mxu0 }
0x34de   :  { %v8315_v56 = vpop.f32.mrb[83].mxu0  ;;  %7005 = vrot.lane.b32.xlu1 %v6981_v0, %s9315_s9  ;;  %v6908_v9 = vpop.f32.mrb[72].mxu1 }
0x34df   :  { %7003 = vrot.lane.b32.xlu0 %v6908_v9, %s9315_s9  ;;  %v8308_v11 = vpop.f32.mrb[73].mxu1 }
0x3550   :  { %v7006_v29 = vpop.permute.xlu1 %7005 }
0x3551   :  { %v7004_v34 = vpop.permute.xlu0 %7003  ;;  %v7014_v31 = vsel %vm2201_vm5, %v7012_v15, %v7006_v29 }
0x3552   :  { %v7013_v37 = vsel %vm2201_vm5, %v7011_v14, %v7004_v34 }
0x3553   :  { %8324 = vmatprep.mubr.msk.f32.mxu1 %vm388_vm0, %v7013_v37 }
0x3554   :  { %8325 = vmatmul.mubr.msk.f32.vlgmr.msra.gmra.mrb[74].mxu1 %vm388_vm0, %v7014_v31 }
0x3555   :  { %8600 = vmatpush3.bf16.msra.mxu1 %v10252_v54 }
0x3556   :  { %8602 = vmatprep.subr.bf16.mxu1 %v10257_v45 }
0x3559   :  { %8604 = vmatpush3.bf16.msra.mxu1 %v10257_v45 }
0x355a   :  { %8606 = vmatprep.subr.bf16.mxu1 %v10268_v62 }
0x355d   :  { %8608 = vmatpush3.bf16.msra.mxu1 %v10268_v62 }
0x355e   :  { %8610 = vmatprep.subr.bf16.mxu1 %v10296_v44 }
0x3561   :  { %8612 = vmatpush3.bf16.msra.mxu1 %v10296_v44 }
0x3627   :  { %v8326_v30 = vpop.f32.mrb[74].mxu1 }
0x3628   :  { %v7093_v32 = vadd.f32 %v8862_v35, %v8326_v30  ;;  %v7087_v3 = vpop.f32.mrb[75].mxu1 }
0x3629   :  { %v7088_v50 = vadd.f32 %v8862_v35, %v7087_v3 }
0x362a   :  { %v7097_v12 = vadd.f32 %v7093_v32, %v10520_v1 }
0x362b   :  { %v7096_v54 = vadd.f32 %v7088_v50, %v10514_v55 }
0x362c   :  { %v7101_v63 = vsel %vm388_vm0, %v7097_v12, 0.0 }
0x362d   :  { %7102 = vadd.xlane.f32.xlu1 %v7101_v63  ;;  %v7098_v45 = vsel %vm388_vm0, %v7096_v54, 0.0 }
0x362e   :  { %7099 = vadd.xlane.f32.xlu0 %v7098_v45 }
0x36ba   :  { %v7103_v62 = vpop.xlane.xlu1 %7102 }
0x36bb   :  { %v7105_v25 = vmul.f32 0.03125, %v7103_v62  ;;  %v7100_v59 = vpop.xlane.xlu0 %7099 }
0x36bc   :  { %v7104_v38 = vmul.f32 0.03125, %v7100_v59 }
0x36bd   :  { %v7107_v44 = vsub.f32 %v7097_v12, %v7105_v25 }
0x36be   :  { %v7106_v24 = vsub.f32 %v7096_v54, %v7104_v38 }
0x36bf   :  { %v7109_v40 = vmul.f32 %v7107_v44, %v7107_v44 }
0x36c0   :  { %v7108_v27 = vmul.f32 %v7106_v24, %v7106_v24 }
0x36c1   :  { %v7113_v1 = vsel %vm388_vm0, %v7109_v40, 0.0 }
0x36c2   :  { %v7110_v17 = vsel %vm388_vm0, %v7108_v27, 0.0 }
0x36c3   :  { %7111 = vadd.xlane.f32.xlu0 %v7110_v17 }
0x36c7   :  { %7114 = vadd.xlane.f32.xlu0 %v7113_v1 }
0x3750   :  { %v7112_v55 = vpop.xlane.xlu0 %7111 }
0x3751   :  { %v7116_v26 = vmul.f32 0.03125, %v7112_v55 }
0x3753   :  { %v7118_v28 = vadd.f32 1e-05, %v7116_v26 }
0x3754   :  { %v7115_v57 = vpop.xlane.xlu0 %7114 }
0x3755   :  { %8853 = vrsqrt.f32 %v7118_v28  ;;  %v7117_v20 = vmul.f32 0.03125, %v7115_v57 }
0x3757   :  { %v7119_v6 = vadd.f32 1e-05, %v7117_v20 }
0x3759   :  { %8855 = vrsqrt.f32 %v7119_v6 }
0x375f   :  { %v8854_v61 = vpop.eup %8853 }
0x3760   :  { %v7122_v19 = vmul.f32 %v8854_v61, %v7106_v24 }
0x3762   :  { %v7124_v58 = vmul.f32 %v7122_v19, %v10275_v2 }
0x3763   :  { %v8856_v18 = vpop.eup %8855 }
0x3764   :  { %v7123_v39 = vmul.f32 %v8856_v18, %v7107_v44  ;;  %v7126_v43 = vadd.f32 %v7124_v58, %v10278_v4 }
0x3766   :  { %8335 = vmatprep.mubr.msk.f32.mxu0 %vm388_vm0, %v7126_v43  ;;  %v7125_v51 = vmul.f32 %v7123_v39, %v10275_v2 }
0x3768   :  { %v7127_v52 = vadd.f32 %v7125_v51, %v10278_v4 }
0x376a   :  { %8336 = vmatmul.mubr.msk.f32.vlgmr.msra.gmra.mrb[84].mxu0 %vm388_vm0, %v7127_v52 }
0x383d   :  { %v8337_v22 = vpop.f32.mrb[84].mxu0 }
0x383e   :  { %v7206_v23 = vadd.f32 %v8863_v21, %v8337_v22  ;;  %v7200_v13 = vpop.f32.mrb[85].mxu0 }
0x383f   :  { %v7201_v8 = vadd.f32 %v8863_v21, %v7200_v13 }
0x3840   :  { %v7210_v46 = vmax.f32 %v7206_v23, 0.0 }
0x3841   :  { %v7209_v48 = vmax.f32 %v7201_v8, 0.0 }
0x3843   :  { %8354 = vmatprep.mubr.msk.f32.mxu1 %vm470_vm1, %v7209_v48 }
0x3844   :  { %8355 = vmatmul.mubr.msk.f32.vlgmr.msra.gmra.mrb[76].mxu1 %vm470_vm1, %v7210_v46 }
0x3917   :  { %v8356_v16 = vpop.f32.mrb[76].mxu1 }
0x3918   :  { %v7289_v41 = vadd.f32 %v8864_v33, %v8356_v16  ;;  %v7283_v49 = vpop.f32.mrb[77].mxu1 }
0x3919   :  { %v7284_v2 = vadd.f32 %v8864_v33, %v7283_v49 }
0x391a   :  { %v7293_v0 = vadd.f32 %v7289_v41, %v7127_v52 }
0x391b   :  { %v7292_v4 = vadd.f32 %v7284_v2, %v7126_v43 }
0x391c   :  { %v7297_v56 = vsel %vm388_vm0, %v7293_v0, 0.0 }
0x391d   :  { %7298 = vadd.xlane.f32.xlu0 %v7297_v56  ;;  %v7294_v9 = vsel %vm388_vm0, %v7292_v4, 0.0 }
0x391e   :  { %7295 = vadd.xlane.f32.xlu1 %v7294_v9 }
0x39aa   :  { %v7299_v11 = vpop.xlane.xlu0 %7298 }
0x39ab   :  { %v7301_v5 = vmul.f32 0.03125, %v7299_v11  ;;  %v7296_v53 = vpop.xlane.xlu1 %7295 }
0x39ac   :  { %v7300_v10 = vmul.f32 0.03125, %v7296_v53 }
0x39ad   :  { %v7303_v47 = vsub.f32 %v7293_v0, %v7301_v5 }
0x39ae   :  { %v7302_v36 = vsub.f32 %v7292_v4, %v7300_v10 }
0x39af   :  { %v7305_v29 = vmul.f32 %v7303_v47, %v7303_v47 }
0x39b0   :  { %v7304_v42 = vmul.f32 %v7302_v36, %v7302_v36 }
0x39b1   :  { %v7309_v14 = vsel %vm388_vm0, %v7305_v29, 0.0 }
0x39b2   :  { %7310 = vadd.xlane.f32.xlu0 %v7309_v14  ;;  %v7306_v34 = vsel %vm388_vm0, %v7304_v42, 0.0 }
0x39b3   :  { %7307 = vadd.xlane.f32.xlu1 %v7306_v34 }
0x3a3f   :  { %v7311_v15 = vpop.xlane.xlu0 %7310 }
0x3a40   :  { %v7313_v37 = vmul.f32 0.03125, %v7311_v15  ;;  %v7308_v31 = vpop.xlane.xlu1 %7307 }
0x3a41   :  { %v7312_v30 = vmul.f32 0.03125, %v7308_v31 }
0x3a42   :  { %v7315_v35 = vadd.f32 1e-05, %v7313_v37 }
0x3a43   :  { %v7314_v32 = vadd.f32 1e-05, %v7312_v30 }
0x3a44   :  { %8857 = vrsqrt.f32 %v7315_v35 }
0x3a45   :  { %8859 = vrsqrt.f32 %v7314_v32 }
0x3a4e   :  { %v8858_v3 = vpop.eup %8857 }
0x3a4f   :  { %v8860_v50 = vpop.eup %8859  ;;  %v7319_v12 = vmul.f32 %v8858_v3, %v7303_v47 }
0x3a50   :  { %v7318_v54 = vmul.f32 %v8860_v50, %v7302_v36 }
0x3a51   :  { %v7321_v63 = vmul.f32 %v7319_v12, %v10311_v7 }
0x3a52   :  { %v7320_v45 = vmul.f32 %v7318_v54, %v10311_v7 }
0x3a53   :  { %v7323_v62 = vadd.f32 %v7321_v63, %v10314_v60 }
0x3a54   :  { %v7322_v25 = vadd.f32 %v7320_v45, %v10314_v60 }
0x3a55   :  { %7325 = vst.msk [vmem:[#allocation29 + $0x8] sm:$0xff] %vm388_vm0, %v7323_v62 }
0x3a56   :  { %7324 = vst.msk [vmem:[#allocation29] sm:$0xff] %vm388_vm0, %v7322_v25 }
0x3a57   :  { %9250 = shalt.err (!%p9247_p0)
}
0x3a58   :  { %s9251_s15 = scalar_lea.hbm %s10751_s22, 256 }
0x3a59   :  { %p9252_p1 = scmp.ne.s32.totalorder %s10751_s22, %s9251_s15  ;;  %p9255_p2 = scmp.lt.u32.totalorder %s9251_s15, %s10751_s22 }
0x3a5b   :  { %p9257_p3 = pnand %p9255_p2, %p9252_p1 }
0x3a5d   :  { %9260 = shalt.err (!%p9257_p3)
}
0x3a5e   :  { %7337 = dma.vmem_to_hbm [thread:$0]  %s7332_s21, 256, %s10751_s22, [#allocation4], %s10770_s1, %s10770_s1, %s9284_s27  }
0x3a5f   :  { %9279 = dma.done.wait [#allocation4], 256  }
0x3a60   :  { %9280 = vsyncadd [#allocation4], 4294967040 }
0x3a61   :  { %7341 = vsyncpa [#allocation3], 1 }
0x3a62   :  { %7342 = vsyncpa [#allocation6], 1 }
0x3a63   :  { %7343 = vsyncpa [#allocation9], 1 }
0x3a64   :  { %7344 = vsyncpa [#allocation12], 1 }
0x3a65   :  { %7345 = vsyncpa [#allocation15], 1 }
0x3a66   :  { %7346 = vsyncpa [#allocation18], 1 }
0x3a67   :  { %7347 = vsyncpa [#allocation21], 1 }
0x3a68   :  { %7348 = vsyncpa [#allocation24], 1 }
0x3a69   :  { %7349 = vsyncpa [#allocation27], 1 }
0x3a6a   :  { %7350 = vsyncpa [#allocation4], 1 }

</bundles_post_ra>
